<compile_context>
chip_gen: v6e
topology: v6e:2x2x1
jax: 0.10.0
libtpu: 0.0.40
codegen_flags: <defaults>
</compile_context>

<pallas_src>
import numpy as np
import jax
import jax.numpy as jnp
from jax import lax
from jax.experimental import pallas as pl
from jax.experimental.pallas import tpu as pltpu


def _round_up(x, m):
    return ((x + m - 1) // m) * m


def make_quant_embed_kernel(tb, F, M, K, D, out_w):
    """One-hot-over-(M*K) MXU matmul per field; single lane-dense store per tile."""
    MK = M * K
    pad_w = out_w - F * D

    def kernel(cols_ref, w_ref, out_ref):
        # cols_ref: (tb, F*M) int32 VMEM  one-hot column ids (i*K + code), per tile
        # w_ref:    (F, M*K, D) f32 VMEM  block-diagonal repacked codebooks (resident)
        # out_ref:  (tb, out_w) f32 VMEM  lane-dense output tile
        cols = cols_ref[...]                                        # (tb, F*M)
        iota_mk = lax.broadcasted_iota(jnp.int32, (1, MK), 1)       # (1, M*K)
        chunks = []
        for f in range(F):                                          # static, small
            onehot = jnp.zeros((tb, MK), jnp.float32)
            for i in range(M):                                      # static, small
                c = cols[:, f * M + i:f * M + i + 1]                # (tb, 1)
                onehot = onehot + (iota_mk == c).astype(jnp.float32)
            # (tb, M*K) @ (M*K, D) on the MXU -> exact row gather of field f.
            chunks.append(
                jnp.dot(onehot, w_ref[f],
                        preferred_element_type=jnp.float32,
                        precision=lax.Precision.HIGHEST))
        if pad_w:
            chunks.append(jnp.zeros((tb, pad_w), jnp.float32))
        out_ref[...] = jnp.concatenate(chunks, axis=-1)             # one unmasked store

    return kernel


def quantization_embedding(x, offsets_a, cb_index, index_offsets, codebooks, *, tb=128):
    """x: (B, F) int; cb_index: (V, M) int; codebooks: (F*K, D) f32 -> (B, F, D) f32."""
    B, F = x.shape
    V, M = cb_index.shape
    R, D = codebooks.shape
    assert R % F == 0, "codebooks rows must be F * max_K"
    K = R // F
    assert D % M == 0, "embed_dim must be divisible by M"
    plen = D // M

    # ---- hoisted integer index resolution (plain XLA gathers; no SMEM tables) ----
    x32 = x.astype(jnp.int32) + offsets_a.astype(jnp.int32)[None, :]          # (B, F)
    codes = cb_index.astype(jnp.int32)[x32]                                   # (B, F, M)
    oh_cols = (codes + (jnp.arange(M, dtype=jnp.int32) * K)[None, None, :])   # i*K + code
    oh_cols = oh_cols.reshape(B, F * M)

    # ---- block-diagonal repacked codebook, built once in the wrapper ----
    # W[f, i*K + k, i*plen + p] = codebooks[index_offsets[f] + k, i*plen + p], else 0.
    rows_per_field = (index_offsets.astype(jnp.int32)[:, None]
                      + jnp.arange(K, dtype=jnp.int32)[None, :])              # (F, K)
    cbf = codebooks.astype(jnp.float32)[rows_per_field]                       # (F, K, D)
    cb4 = cbf.reshape(F, K, M, plen)                                          # f,k,i,p
    eye = jnp.eye(M, dtype=jnp.float32)
    W = jnp.einsum('fkip,ij->fikjp', cb4, eye).reshape(F, M * K, D)           # (F, M*K, D)

    # ---- batch tiling (multiple of 8; pad ragged batches) ----
    tb = max(8, min(int(tb), _round_up(B, 8)))
    tb = _round_up(tb, 8)
    B_pad = _round_up(B, tb)
    if B_pad != B:
        oh_cols = jnp.pad(oh_cols, ((0, B_pad - B), (0, 0)))

    out_w = _round_up(F * D, 128)   # lane-dense, unmasked stores

    # ---- VMEM budget from actual buffer sizes (single-buffered W, 2x tiles) ----
    w_bytes = F * M * K * D * 4
    in_tile_bytes = tb * F * M * 4
    out_tile_bytes = tb * out_w * 4
    vmem_needed = w_bytes + 2 * (in_tile_bytes + out_tile_bytes)
    vmem_limit = int(min(128 * 1024 * 1024,
                         max(16 * 1024 * 1024, 2 * vmem_needed + (2 << 20))))

    kernel = make_quant_embed_kernel(tb, F, M, K, D, out_w)
    out_flat = pl.pallas_call(
        kernel,
        out_shape=jax.ShapeDtypeStruct((B_pad, out_w), jnp.float32),
        grid=(B_pad // tb,),
        in_specs=[
            pl.BlockSpec((tb, F * M), lambda t: (t, 0)),                # per-tile codes
            pl.BlockSpec(memory_space=pltpu.MemorySpace.VMEM),          # resident W
        ],
        out_specs=pl.BlockSpec((tb, out_w), lambda t: (t, 0)),
        compiler_params=pltpu.CompilerParams(
            dimension_semantics=("parallel",),
            vmem_limit_bytes=vmem_limit,
        ),
    )(oh_cols, W)

    return out_flat[:B, :F * D].reshape(B, F, D)


if __name__ == "__main__":
    key = jax.random.PRNGKey(0)
    k_cb, k_code, k_idx = jax.random.split(key, 3)

    # Small, module-consistent shapes.
    field_dims = (8, 8, 8, 8)      # F = 4 fields, vocab V = 32
    F = len(field_dims)
    V = int(sum(field_dims))
    D = 32                         # embed_dim
    K = 8                          # max_K (codewords per field)
    M = 4                          # PQ sub-vectors; plen = D // M = 8
    B = 512                        # batch
    TB = 128                       # batch tile -> grid = (4,)

    # Module parameters / buffers.
    offsets_a = jnp.asarray(np.array((0, *np.cumsum(field_dims)[:-1]), dtype=np.int32))
    index_offsets = jnp.asarray(np.array([f * K for f in range(F)], dtype=np.int32))
    codebooks = jax.random.normal(k_cb, (F * K, D), dtype=jnp.float32)
    cb_index = jax.random.randint(k_code, (V, M), 0, K, dtype=jnp.int32)

    # Raw per-field indices in [0, field_dims[f]).
    keys = jax.random.split(k_idx, F)
    cols = [jax.random.randint(keys[f], (B, 1), 0, field_dims[f], dtype=jnp.int32)
            for f in range(F)]
    x = jnp.concatenate(cols, axis=1)   # (B, F)

    out = quantization_embedding(x, offsets_a, cb_index, index_offsets, codebooks, tb=TB)
    out = jax.block_until_ready(out)

    # Pure-JAX reference mirroring the PyTorch forward.
    plen = D // M
    x_off = x + offsets_a[None, :]                       # (B, F)
    codes = cb_index[x_off]                              # (B, F, M)
    rows = codes + index_offsets[None, :, None]          # (B, F, M)
    gath = codebooks[rows]                               # (B, F, M, D)
    ref = jnp.concatenate(
        [gath[:, :, i, i * plen:(i + 1) * plen] for i in range(M)], axis=-1)

    assert out.shape == (B, F, D)
    np.testing.assert_allclose(np.asarray(out), np.asarray(ref), rtol=1e-5, atol=1e-6)

    # Ragged batch (exercises the wrapper-side padding / slicing path).
    B2 = 200
    out2 = quantization_embedding(x[:B2], offsets_a, cb_index, index_offsets,
                                  codebooks, tb=TB)
    out2 = jax.block_until_ready(out2)
    np.testing.assert_allclose(np.asarray(out2), np.asarray(ref[:B2]),
                               rtol=1e-5, atol=1e-6)

    print("KERNEL_OK")
</pallas_src>

<mosaic_0001>
module attributes {stable_mosaic.version = 11 : i64} {
  func.func @kernel(%arg0: i32, %arg1: memref<128x16xi32, #tpu.memory_space<vmem>>, %arg2: memref<4x32x32xf32, #tpu.memory_space<vmem>>, %arg3: memref<128x128xf32, #tpu.memory_space<vmem>>) attributes {dimension_semantics = [#tpu.dimension_semantics<parallel>], iteration_bounds = array<i64: 4>, scalar_prefetch = 0 : i64, scratch_operands = 0 : i64, tpu.core_type = #tpu.core_type<tc>, window_params = [{transform_indices = @transform_0, window_bounds = array<i64: 128, 16>}, {pipeline_mode = #tpu.pipeline_mode<synchronous>, transform_indices = @transform_1, window_bounds = array<i64: 4, 32, 32>}, {transform_indices = @transform_2, window_bounds = array<i64: 128, 128>}]} {
    %c0 = arith.constant 0 : index
    %c0_0 = arith.constant 0 : index
    %0 = vector.load %arg1[%c0, %c0_0] : memref<128x16xi32, #tpu.memory_space<vmem>>, vector<128x16xi32>
    %1 = tpu.iota {dimensions = array<i32: 1>} : vector<1x32xi32>
    %cst = arith.constant 0.000000e+00 : f32
    %2 = vector.broadcast %cst : f32 to vector<128x32xf32>
    %3 = vector.extract_strided_slice %0 {offsets = [0, 0], sizes = [128, 1], strides = [1, 1]} : vector<128x16xi32> to vector<128x1xi32>
    %4 = vector.broadcast %1 : vector<1x32xi32> to vector<128x32xi32>
    %5 = vector.broadcast %3 : vector<128x1xi32> to vector<128x32xi32>
    %6 = arith.cmpi eq, %4, %5 : vector<128x32xi32>
    %7 = arith.extui %6 : vector<128x32xi1> to vector<128x32xi32>
    %8 = arith.sitofp %7 : vector<128x32xi32> to vector<128x32xf32>
    %9 = arith.addf %2, %8 : vector<128x32xf32>
    %10 = vector.extract_strided_slice %0 {offsets = [0, 1], sizes = [128, 1], strides = [1, 1]} : vector<128x16xi32> to vector<128x1xi32>
    %11 = vector.broadcast %1 : vector<1x32xi32> to vector<128x32xi32>
    %12 = vector.broadcast %10 : vector<128x1xi32> to vector<128x32xi32>
    %13 = arith.cmpi eq, %11, %12 : vector<128x32xi32>
    %14 = arith.extui %13 : vector<128x32xi1> to vector<128x32xi32>
    %15 = arith.sitofp %14 : vector<128x32xi32> to vector<128x32xf32>
    %16 = arith.addf %9, %15 : vector<128x32xf32>
    %17 = vector.extract_strided_slice %0 {offsets = [0, 2], sizes = [128, 1], strides = [1, 1]} : vector<128x16xi32> to vector<128x1xi32>
    %18 = vector.broadcast %1 : vector<1x32xi32> to vector<128x32xi32>
    %19 = vector.broadcast %17 : vector<128x1xi32> to vector<128x32xi32>
    %20 = arith.cmpi eq, %18, %19 : vector<128x32xi32>
    %21 = arith.extui %20 : vector<128x32xi1> to vector<128x32xi32>
    %22 = arith.sitofp %21 : vector<128x32xi32> to vector<128x32xf32>
    %23 = arith.addf %16, %22 : vector<128x32xf32>
    %24 = vector.extract_strided_slice %0 {offsets = [0, 3], sizes = [128, 1], strides = [1, 1]} : vector<128x16xi32> to vector<128x1xi32>
    %25 = vector.broadcast %1 : vector<1x32xi32> to vector<128x32xi32>
    %26 = vector.broadcast %24 : vector<128x1xi32> to vector<128x32xi32>
    %27 = arith.cmpi eq, %25, %26 : vector<128x32xi32>
    %28 = arith.extui %27 : vector<128x32xi1> to vector<128x32xi32>
    %29 = arith.sitofp %28 : vector<128x32xi32> to vector<128x32xf32>
    %30 = arith.addf %23, %29 : vector<128x32xf32>
    %c0_1 = arith.constant 0 : index
    %c0_2 = arith.constant 0 : index
    %c0_3 = arith.constant 0 : index
    %31 = vector.load %arg2[%c0_1, %c0_2, %c0_3] : memref<4x32x32xf32, #tpu.memory_space<vmem>>, vector<1x32x32xf32>
    %32 = vector.shape_cast %31 : vector<1x32x32xf32> to vector<32x32xf32>
    %cst_4 = arith.constant dense<0.000000e+00> : vector<128x32xf32>
    %33 = tpu.matmul %30, %32, %cst_4 {dimension_numbers = #tpu.dot_dimension_numbers<[1], [0], [0], [1], [0, 0, 1, 1], [], []>, precision = #tpu.contract_precision<fp32>} : vector<128x32xf32>, vector<32x32xf32>, vector<128x32xf32> -> vector<128x32xf32>
    %cst_5 = arith.constant 0.000000e+00 : f32
    %34 = vector.broadcast %cst_5 : f32 to vector<128x32xf32>
    %35 = vector.extract_strided_slice %0 {offsets = [0, 4], sizes = [128, 1], strides = [1, 1]} : vector<128x16xi32> to vector<128x1xi32>
    %36 = vector.broadcast %1 : vector<1x32xi32> to vector<128x32xi32>
    %37 = vector.broadcast %35 : vector<128x1xi32> to vector<128x32xi32>
    %38 = arith.cmpi eq, %36, %37 : vector<128x32xi32>
    %39 = arith.extui %38 : vector<128x32xi1> to vector<128x32xi32>
    %40 = arith.sitofp %39 : vector<128x32xi32> to vector<128x32xf32>
    %41 = arith.addf %34, %40 : vector<128x32xf32>
    %42 = vector.extract_strided_slice %0 {offsets = [0, 5], sizes = [128, 1], strides = [1, 1]} : vector<128x16xi32> to vector<128x1xi32>
    %43 = vector.broadcast %1 : vector<1x32xi32> to vector<128x32xi32>
    %44 = vector.broadcast %42 : vector<128x1xi32> to vector<128x32xi32>
    %45 = arith.cmpi eq, %43, %44 : vector<128x32xi32>
    %46 = arith.extui %45 : vector<128x32xi1> to vector<128x32xi32>
    %47 = arith.sitofp %46 : vector<128x32xi32> to vector<128x32xf32>
    %48 = arith.addf %41, %47 : vector<128x32xf32>
    %49 = vector.extract_strided_slice %0 {offsets = [0, 6], sizes = [128, 1], strides = [1, 1]} : vector<128x16xi32> to vector<128x1xi32>
    %50 = vector.broadcast %1 : vector<1x32xi32> to vector<128x32xi32>
    %51 = vector.broadcast %49 : vector<128x1xi32> to vector<128x32xi32>
    %52 = arith.cmpi eq, %50, %51 : vector<128x32xi32>
    %53 = arith.extui %52 : vector<128x32xi1> to vector<128x32xi32>
    %54 = arith.sitofp %53 : vector<128x32xi32> to vector<128x32xf32>
    %55 = arith.addf %48, %54 : vector<128x32xf32>
    %56 = vector.extract_strided_slice %0 {offsets = [0, 7], sizes = [128, 1], strides = [1, 1]} : vector<128x16xi32> to vector<128x1xi32>
    %57 = vector.broadcast %1 : vector<1x32xi32> to vector<128x32xi32>
    %58 = vector.broadcast %56 : vector<128x1xi32> to vector<128x32xi32>
    %59 = arith.cmpi eq, %57, %58 : vector<128x32xi32>
    %60 = arith.extui %59 : vector<128x32xi1> to vector<128x32xi32>
    %61 = arith.sitofp %60 : vector<128x32xi32> to vector<128x32xf32>
    %62 = arith.addf %55, %61 : vector<128x32xf32>
    %c1 = arith.constant 1 : index
    %c0_6 = arith.constant 0 : index
    %c0_7 = arith.constant 0 : index
    %63 = vector.load %arg2[%c1, %c0_6, %c0_7] : memref<4x32x32xf32, #tpu.memory_space<vmem>>, vector<1x32x32xf32>
    %64 = vector.shape_cast %63 : vector<1x32x32xf32> to vector<32x32xf32>
    %cst_8 = arith.constant dense<0.000000e+00> : vector<128x32xf32>
    %65 = tpu.matmul %62, %64, %cst_8 {dimension_numbers = #tpu.dot_dimension_numbers<[1], [0], [0], [1], [0, 0, 1, 1], [], []>, precision = #tpu.contract_precision<fp32>} : vector<128x32xf32>, vector<32x32xf32>, vector<128x32xf32> -> vector<128x32xf32>
    %cst_9 = arith.constant 0.000000e+00 : f32
    %66 = vector.broadcast %cst_9 : f32 to vector<128x32xf32>
    %67 = vector.extract_strided_slice %0 {offsets = [0, 8], sizes = [128, 1], strides = [1, 1]} : vector<128x16xi32> to vector<128x1xi32>
    %68 = vector.broadcast %1 : vector<1x32xi32> to vector<128x32xi32>
    %69 = vector.broadcast %67 : vector<128x1xi32> to vector<128x32xi32>
    %70 = arith.cmpi eq, %68, %69 : vector<128x32xi32>
    %71 = arith.extui %70 : vector<128x32xi1> to vector<128x32xi32>
    %72 = arith.sitofp %71 : vector<128x32xi32> to vector<128x32xf32>
    %73 = arith.addf %66, %72 : vector<128x32xf32>
    %74 = vector.extract_strided_slice %0 {offsets = [0, 9], sizes = [128, 1], strides = [1, 1]} : vector<128x16xi32> to vector<128x1xi32>
    %75 = vector.broadcast %1 : vector<1x32xi32> to vector<128x32xi32>
    %76 = vector.broadcast %74 : vector<128x1xi32> to vector<128x32xi32>
    %77 = arith.cmpi eq, %75, %76 : vector<128x32xi32>
    %78 = arith.extui %77 : vector<128x32xi1> to vector<128x32xi32>
    %79 = arith.sitofp %78 : vector<128x32xi32> to vector<128x32xf32>
    %80 = arith.addf %73, %79 : vector<128x32xf32>
    %81 = vector.extract_strided_slice %0 {offsets = [0, 10], sizes = [128, 1], strides = [1, 1]} : vector<128x16xi32> to vector<128x1xi32>
    %82 = vector.broadcast %1 : vector<1x32xi32> to vector<128x32xi32>
    %83 = vector.broadcast %81 : vector<128x1xi32> to vector<128x32xi32>
    %84 = arith.cmpi eq, %82, %83 : vector<128x32xi32>
    %85 = arith.extui %84 : vector<128x32xi1> to vector<128x32xi32>
    %86 = arith.sitofp %85 : vector<128x32xi32> to vector<128x32xf32>
    %87 = arith.addf %80, %86 : vector<128x32xf32>
    %88 = vector.extract_strided_slice %0 {offsets = [0, 11], sizes = [128, 1], strides = [1, 1]} : vector<128x16xi32> to vector<128x1xi32>
    %89 = vector.broadcast %1 : vector<1x32xi32> to vector<128x32xi32>
    %90 = vector.broadcast %88 : vector<128x1xi32> to vector<128x32xi32>
    %91 = arith.cmpi eq, %89, %90 : vector<128x32xi32>
    %92 = arith.extui %91 : vector<128x32xi1> to vector<128x32xi32>
    %93 = arith.sitofp %92 : vector<128x32xi32> to vector<128x32xf32>
    %94 = arith.addf %87, %93 : vector<128x32xf32>
    %c2 = arith.constant 2 : index
    %c0_10 = arith.constant 0 : index
    %c0_11 = arith.constant 0 : index
    %95 = vector.load %arg2[%c2, %c0_10, %c0_11] : memref<4x32x32xf32, #tpu.memory_space<vmem>>, vector<1x32x32xf32>
    %96 = vector.shape_cast %95 : vector<1x32x32xf32> to vector<32x32xf32>
    %cst_12 = arith.constant dense<0.000000e+00> : vector<128x32xf32>
    %97 = tpu.matmul %94, %96, %cst_12 {dimension_numbers = #tpu.dot_dimension_numbers<[1], [0], [0], [1], [0, 0, 1, 1], [], []>, precision = #tpu.contract_precision<fp32>} : vector<128x32xf32>, vector<32x32xf32>, vector<128x32xf32> -> vector<128x32xf32>
    %cst_13 = arith.constant 0.000000e+00 : f32
    %98 = vector.broadcast %cst_13 : f32 to vector<128x32xf32>
    %99 = vector.extract_strided_slice %0 {offsets = [0, 12], sizes = [128, 1], strides = [1, 1]} : vector<128x16xi32> to vector<128x1xi32>
    %100 = vector.broadcast %1 : vector<1x32xi32> to vector<128x32xi32>
    %101 = vector.broadcast %99 : vector<128x1xi32> to vector<128x32xi32>
    %102 = arith.cmpi eq, %100, %101 : vector<128x32xi32>
    %103 = arith.extui %102 : vector<128x32xi1> to vector<128x32xi32>
    %104 = arith.sitofp %103 : vector<128x32xi32> to vector<128x32xf32>
    %105 = arith.addf %98, %104 : vector<128x32xf32>
    %106 = vector.extract_strided_slice %0 {offsets = [0, 13], sizes = [128, 1], strides = [1, 1]} : vector<128x16xi32> to vector<128x1xi32>
    %107 = vector.broadcast %1 : vector<1x32xi32> to vector<128x32xi32>
    %108 = vector.broadcast %106 : vector<128x1xi32> to vector<128x32xi32>
    %109 = arith.cmpi eq, %107, %108 : vector<128x32xi32>
    %110 = arith.extui %109 : vector<128x32xi1> to vector<128x32xi32>
    %111 = arith.sitofp %110 : vector<128x32xi32> to vector<128x32xf32>
    %112 = arith.addf %105, %111 : vector<128x32xf32>
    %113 = vector.extract_strided_slice %0 {offsets = [0, 14], sizes = [128, 1], strides = [1, 1]} : vector<128x16xi32> to vector<128x1xi32>
    %114 = vector.broadcast %1 : vector<1x32xi32> to vector<128x32xi32>
    %115 = vector.broadcast %113 : vector<128x1xi32> to vector<128x32xi32>
    %116 = arith.cmpi eq, %114, %115 : vector<128x32xi32>
    %117 = arith.extui %116 : vector<128x32xi1> to vector<128x32xi32>
    %118 = arith.sitofp %117 : vector<128x32xi32> to vector<128x32xf32>
    %119 = arith.addf %112, %118 : vector<128x32xf32>
    %120 = vector.extract_strided_slice %0 {offsets = [0, 15], sizes = [128, 1], strides = [1, 1]} : vector<128x16xi32> to vector<128x1xi32>
    %121 = vector.broadcast %1 : vector<1x32xi32> to vector<128x32xi32>
    %122 = vector.broadcast %120 : vector<128x1xi32> to vector<128x32xi32>
    %123 = arith.cmpi eq, %121, %122 : vector<128x32xi32>
    %124 = arith.extui %123 : vector<128x32xi1> to vector<128x32xi32>
    %125 = arith.sitofp %124 : vector<128x32xi32> to vector<128x32xf32>
    %126 = arith.addf %119, %125 : vector<128x32xf32>
    %c3 = arith.constant 3 : index
    %c0_14 = arith.constant 0 : index
    %c0_15 = arith.constant 0 : index
    %127 = vector.load %arg2[%c3, %c0_14, %c0_15] : memref<4x32x32xf32, #tpu.memory_space<vmem>>, vector<1x32x32xf32>
    %128 = vector.shape_cast %127 : vector<1x32x32xf32> to vector<32x32xf32>
    %cst_16 = arith.constant dense<0.000000e+00> : vector<128x32xf32>
    %129 = tpu.matmul %126, %128, %cst_16 {dimension_numbers = #tpu.dot_dimension_numbers<[1], [0], [0], [1], [0, 0, 1, 1], [], []>, precision = #tpu.contract_precision<fp32>} : vector<128x32xf32>, vector<32x32xf32>, vector<128x32xf32> -> vector<128x32xf32>
    %130 = tpu.concatenate %33, %65, %97, %129 in 1 : vector<128x32xf32>, vector<128x32xf32>, vector<128x32xf32>, vector<128x32xf32> -> vector<128x128xf32>
    %c0_17 = arith.constant 0 : index
    %c0_18 = arith.constant 0 : index
    %131 = vector.load %arg3[%c0_17, %c0_18] : memref<128x128xf32, #tpu.memory_space<vmem>>, vector<128x128xf32>
    tpu.vector_store %arg3[%c0_17, %c0_18], %130 {strides = array<i32>} : memref<128x128xf32, #tpu.memory_space<vmem>>, vector<128x128xf32>,
    return
  }
  func.func @transform_0(%arg0: i32) -> (i32, i32) {
    %c0_i32 = arith.constant 0 : i32
    %c0_i32_0 = arith.constant 0 : i32
    return %arg0, %c0_i32 : i32, i32
  }
  func.func @transform_1(%arg0: i32) -> (i32, i32, i32) {
    %c0_i32 = arith.constant 0 : i32
    %c0_i32_0 = arith.constant 0 : i32
    %c0_i32_1 = arith.constant 0 : i32
    %c0_i32_2 = arith.constant 0 : i32
    return %c0_i32, %c0_i32_0, %c0_i32_1 : i32, i32, i32
  }
  func.func @transform_2(%arg0: i32) -> (i32, i32) {
    %c0_i32 = arith.constant 0 : i32
    %c0_i32_0 = arith.constant 0 : i32
    return %arg0, %c0_i32 : i32, i32
  }
}

</mosaic_0001>

<bundles_post_ra>
// kernel: tpu_custom_call.1
= control target key start
LH: loop header
LB: loop body
LE: loop exit
PB: predicated region body
PF: predicated region fallthrough
CT: control target
= control target key end

     0   :  { %7 = vsyncpa [#allocation3], 0  ;;  %s13182_s0 = inlined_call_operand.vmem [shape: s32[512,16], index: 0, kind: input, shape index: {}]   ;;  %s13183_s1 = inlined_call_operand.vmem [shape: f32[4,32,32], index: 1, kind: input, shape index: {}]   ;;  %s13184_s2 = inlined_call_operand.hbm [shape: f32[512,128], index: 2, kind: output, shape index: {}]  }
   0x1   :  { %9 = vsyncpa [#allocation3 + $0x1], 0  ;;  %s8831_s9 = smov 0   ;;  %s8833_s10 = smov 0  }
   0x2   :  { %s8835_s11 = smov 0   ;;  %s8837_s12 = smov 0  }
   0x3 LB: > { %s8852_s13 = sadd.s32 4294967295, %s8791_s12   ;;  %s7021_s14 = sadd.s32 4294967294, %s8791_s12   ;;  %s8791_s12 = sphi %s8837_s12, %s13824_s12   ;;  %s8787_s11 = sphi %s8835_s11, %s13823_s11   ;;  %s8783_s10 = sphi %s8833_s10, %s13822_s10   ;;  %s8779_s9 = sphi %s8831_s9, %s13821_s9  }
   0x4   : > { %s8856_s15 = sadd.s32 1, %s8791_s12   ;;  %s69_s16 = sadd.s32 1, %s8787_s11 }
   0x5   : > { %s66_s17 = ssub.s32 %s8791_s12, %s8856_s15  ;;  %p79_p0 = scmp.ne.s32.totalorder %s8787_s11, %s8783_s10 }
   0x6   : > { %p67_p1 = scmp.eq.s32.totalorder %s66_s17, 0  ;;  %p80_p2 = scmp.eq.s32.totalorder %s8852_s13, 3 }
   0x7   : > { %p85_p3 = scmp.ne.s32.totalorder %s8783_s10, %s8779_s9  ;;  %p86_p4 = scmp.eq.s32.totalorder %s7021_s14, 3 }
   0x8   : > { %s8867_s18 = scalar_select %p67_p1, %s8787_s11, %s69_s16  }
   0x9   : > { %p8869_p5 = por %p80_p2, %p79_p0  ;;  %p8873_p6 = por %p86_p4, %p85_p3 }
   0xa   : > { %p7024_p7 = scmp.ge.s32.totalorder %s8791_s12, 1  ;;  %p116_p8 = scmp.lt.s32.totalorder %s8791_s12, 5 }
   0xc   : > { %p117_p9 = pnand %p7024_p7, %p116_p8 }
   0xe   : > { %120 = sbr.rel (%p117_p9) target bundleno = 1208 (0x4b8), region = 28 }
  0x13   : > { %s7026_s21 = sshll.u32 %s8852_s13, 4  ;;  %v8793_v0 = vmov 0   ;;  %v8794_v17 = vmov 1   ;;  %v8795_v18 = vmov 2   ;;  %v614_v19 = vld [vmem:[%s13183_s1 + $0x18] sm:$0xff]  ;;  %v613_v21 = vld [vmem:[%s13183_s1 + $0x10] sm:$0xff] }
  0x14   : > { %8612 = vset.pattern.permute.xlu1 %v8793_v0  ;;  %8611 = vset.pattern.permute.xlu0 %v8793_v0  ;;  %p139_p10 = scmp.lt.s32.totalorder %s7026_s21, 63  ;;  %v8980_v20 = vand.u32 4294901760, %v614_v19  ;;  %v8990_v23 = vand.u32 4294901760, %v613_v21  ;;  %v612_v24 = vld [vmem:[%s13183_s1 + $0x8] sm:$0xff]  ;;  %v611_v28 = vld [vmem:[%s13183_s1] sm:$0xff]  ;;  %v8796_v29 = vmov 3  }
  0x15   : > { %v9002_v27 = vand.u32 4294901760, %v612_v24  ;;  %v9018_v33 = vand.u32 4294901760, %v611_v28  ;;  %v8797_v47 = vmov 4   ;;  %v8798_v62 = vmov 5   ;;  %s135_s23 = sand.u32 1, %s8783_s10   ;;  %s7301_s27 = sshll.u32 %s8852_s13, 11 }
  0x16   : > { %s13826_s21 = smov (!%p139_p10, %s7026_s21), 63  ;;  %v8988_v22 = vsub.f32 %v614_v19, %v8980_v20  ;;  %7782 = vmatprep.subr.mxu0 %v8980_v20  ;;  %v9000_v26 = vsub.f32 %v613_v21, %v8990_v23  ;;  %s7025_s24 = sshll.u32 %s135_s23, 7 }
  0x17   : > { %s7027_s22 = sshll.u32 %s13826_s21, 3  ;;  %7783 = vmatpush3.msra.mxu0 %v8980_v20  ;;  %v9016_v32 = vsub.f32 %v612_v24, %v9002_v27  ;;  %13355 = vst [vmem:[#allocation12_spill] sm:$0xff] %v9018_v33  ;;  %v9028_v37 = vsub.f32 %v611_v28, %v9018_v33  ;;  %s8811_s21 = smov 64  }
  0x18   : > { %s8883_s25 = scalar_lea.vmem %s13182_s0, %s7027_s22  ;;  %13350 = vst [vmem:[#allocation7_spill] sm:$0xff] %v8988_v22  ;;  %v8997_v25 = vand.u32 4294901760, %v8988_v22  ;;  %13352 = vst [vmem:[#allocation9_spill] sm:$0xff] %v9000_v26  ;;  %7784 = vmatprep.subr.mxu0 %v8990_v23  ;;  %v9013_v31 = vand.u32 4294901760, %v9000_v26  ;;  %s8812_s22 = smov 96  }
  0x19   : > { %v8886_v1 = vld [vmem:[%s8883_s25 + $0x10] sm:$0xff]  ;;  %v8889_v2 = vld [vmem:[%s8883_s25] sm:$0xff]  ;;  %v8894_v3 = vld [vmem:[%s8883_s25 + $0x18] sm:$0xff]  ;;  %13354 = vst [vmem:[#allocation11_spill] sm:$0xff] %v9016_v32  ;;  %7785 = vmatpush3.msra.mxu0 %v8990_v23  ;;  %v9025_v36 = vand.u32 4294901760, %v9016_v32  ;;  %v9036_v40 = vand.u32 4294901760, %v9028_v37  ;;  %s13131_s30 = scalar_lea.hbm %s13184_s2, %s7301_s27 }
  0x1a   : > { %170 = vperm.xlu1 %8612, %v8886_v1   ;;  %164 = vperm.xlu0 %8611, %v8889_v2   ;;  %v8897_v4 = vld [vmem:[%s8883_s25 + $0x8] sm:$0xff]  ;;  %v8905_v6 = vld [vmem:[%s8883_s25 + $0x20] sm:$0xff]  ;;  %v8910_v7 = vld [vmem:[%s8883_s25 + $0x38] sm:$0xff]  ;;  %13351 = vst [vmem:[#allocation8_spill] sm:$0xff] %v8997_v25  ;;  %v921_v30 = vsub.f32 %v8988_v22, %v8997_v25  ;;  %v928_v35 = vsub.f32 %v9000_v26, %v9013_v31  ;;  %s13010_s26 = scalar_lea.vmem [#allocation2], %s7025_s24  ;;  %s13142_s3 = scalar_lea.sflag [#allocation3], %s135_s23 }
  0x1b   : > { %13348 = vst [vmem:[#allocation5_spill] sm:$0xff] %v8897_v4  ;;  %v8902_v5 = vld [vmem:[%s8883_s25 + $0x28] sm:$0xff]  ;;  %13349 = vst [vmem:[#allocation6_spill] sm:$0xff] %v8905_v6  ;;  %v8913_v8 = vld [vmem:[%s8883_s25 + $0x30] sm:$0xff]  ;;  %7786 = vmatprep.subr.mxu0 %v9002_v27  ;;  %v935_v39 = vsub.f32 %v9016_v32, %v9025_v36  ;;  %v942_v42 = vsub.f32 %v9028_v37, %v9036_v40  ;;  %s6959_s28 = sshll.u32 %s13010_s26, 4  ;;  %s8813_s5 = smov [#allocation2]   ;;  %s13133_s28 = int_to_ptr.vmem [resolvable:$true] %s6959_s28 }
  0x1c   : > { %v8918_v9 = vld [vmem:[%s8883_s25 + $0x48] sm:$0xff]  ;;  %v8921_v10 = vld [vmem:[%s8883_s25 + $0x40] sm:$0xff]  ;;  %v8926_v11 = vld [vmem:[%s8883_s25 + $0x58] sm:$0xff]  ;;  %13353 = vst [vmem:[#allocation10_spill] sm:$0xff] %v9013_v31  ;;  %v922_v34 = vand.u32 4294901760, %v921_v30  ;;  %7787 = vmatpush3.msra.mxu0 %v9002_v27  ;;  %v929_v38 = vand.u32 4294901760, %v928_v35 }
  0x1d   : > { %v8929_v12 = vld [vmem:[%s8883_s25 + $0x50] sm:$0xff]  ;;  %v8934_v13 = vld [vmem:[%s8883_s25 + $0x68] sm:$0xff]  ;;  %v8937_v14 = vld [vmem:[%s8883_s25 + $0x60] sm:$0xff]  ;;  %13356 = vst [vmem:[#allocation13_spill] sm:$0xff] %v9025_v36  ;;  %v936_v41 = vand.u32 4294901760, %v935_v39  ;;  %7788 = vmatprep.subr.mxu0 %v9018_v33  ;;  %v943_v43 = vand.u32 4294901760, %v942_v42  ;;  %v161_v42 = vlaneseq }
  0x1e   : > { %173 = vperm.xlu1 %8612, %v8894_v3   ;;  %167 = vperm.xlu0 %8611, %v8897_v4   ;;  %v8942_v15 = vld [vmem:[%s8883_s25 + $0x78] sm:$0xff]  ;;  %v8945_v16 = vld [vmem:[%s8883_s25 + $0x70] sm:$0xff]  ;;  %13357 = vst [vmem:[#allocation14_spill] sm:$0xff] %v9028_v37  ;;  %13358 = vst [vmem:[#allocation15_spill] sm:$0xff] %v9036_v40  ;;  %s8731_s4 = scalar_lea.vmem %s13133_s28, 2048  ;;  %s8735_s6 = sshll.u32 %s8813_s5, 4  ;;  %s8736_s6 = int_to_ptr.vmem [resolvable:$false] %s8735_s6 }
  0x1f   : > { %7814 = vmatprep.subr.mxu1 %v922_v34  ;;  %7789 = vmatpush3.msra.mxu0 %v9018_v33  ;;  %v9156_v40 = vand.u32 127, %v161_v42  ;;  %v13204_v42 = vmov 0.0   ;;  %p8732_p11 = scmp.ne.s32.totalorder %s13133_s28, %s8731_s4  ;;  %s8737_s7 = scalar_lea.vmem %s8736_s6, 4096 }
  0x20   : > { %7815 = vmatpush3.msra.mxu1 %v922_v34  ;;  %7846 = vmatprep.subr.mxu0 %v8988_v22  ;;  %p8738_p0 = scmp.lt.s32.totalorder %s13133_s28, %s8736_s6  ;;  %p8739_p1 = scmp.lt.s32.totalorder %s8737_s7, %s8731_s4 }
  0x21   : > { %7816 = vmatprep.subr.mxu1 %v929_v38  ;;  %p8733_p12 = pnand %p8732_p11, %p8869_p5 }
  0x22   : > { %179 = vperm.xlu1 %8612, %v8902_v5   ;;  %176 = vperm.xlu0 %8611, %v8905_v6   ;;  %p8740_p2 = por %p8739_p1, %p8738_p0 }
  0x23   : > { %7817 = vmatpush3.msra.mxu1 %v929_v38  ;;  %p8734_p13 = pneg %p8733_p12 }
  0x24   : > { %7818 = vmatprep.subr.mxu1 %v936_v41 }
  0x25   : > { %7819 = vmatpush3.msra.mxu1 %v936_v41  ;;  %p8741_p3 = pnand %p8740_p2, %p8734_p13 }
  0x26   : > { %185 = vperm.xlu1 %8612, %v8910_v7   ;;  %182 = vperm.xlu0 %8611, %v8913_v8  }
  0x27   : > { %7820 = vmatprep.subr.mxu1 %v943_v43 }
  0x28   : > { %7821 = vmatpush3.msra.mxu1 %v943_v43 }
  0x29   : > { %7878 = vmatprep.subr.mxu1 %v8980_v20 }
  0x2a   : > { %191 = vperm.xlu1 %8612, %v8918_v9   ;;  %188 = vperm.xlu0 %8611, %v8921_v10  }
  0x2e   : > { %197 = vperm.xlu1 %8612, %v8926_v11   ;;  %194 = vperm.xlu0 %8611, %v8929_v12  }
  0x32   : > { %203 = vperm.xlu1 %8612, %v8934_v13   ;;  %200 = vperm.xlu0 %8611, %v8937_v14  }
  0x36   : > { %209 = vperm.xlu1 %8612, %v8942_v15   ;;  %206 = vperm.xlu0 %8611, %v8945_v16  }
  0x3a   : > { %8614 = vset.pattern.permute.xlu1 %v8794_v17  ;;  %8613 = vset.pattern.permute.xlu0 %v8794_v17 }
  0x3b   : > { %279 = vperm.xlu1 %8614, %v8897_v4   ;;  %276 = vperm.xlu0 %8613, %v8889_v2  }
  0x3f   : > { %282 = vperm.xlu1 %8614, %v8886_v1   ;;  %285 = vperm.xlu0 %8613, %v8894_v3  }
  0x43   : > { %288 = vperm.xlu1 %8614, %v8905_v6   ;;  %291 = vperm.xlu0 %8613, %v8902_v5  }
  0x47   : > { %294 = vperm.xlu1 %8614, %v8913_v8   ;;  %297 = vperm.xlu0 %8613, %v8910_v7  }
  0x4b   : > { %300 = vperm.xlu1 %8614, %v8921_v10   ;;  %303 = vperm.xlu0 %8613, %v8918_v9  }
  0x4f   : > { %306 = vperm.xlu1 %8614, %v8929_v12   ;;  %309 = vperm.xlu0 %8613, %v8926_v11  }
  0x53   : > { %312 = vperm.xlu1 %8614, %v8937_v14   ;;  %315 = vperm.xlu0 %8613, %v8934_v13  }
  0x57   : > { %318 = vperm.xlu1 %8614, %v8945_v16   ;;  %321 = vperm.xlu0 %8613, %v8942_v15  }
  0x5b   : > { %8615 = vset.pattern.permute.xlu1 %v8795_v18  ;;  %8616 = vset.pattern.permute.xlu0 %v8795_v18 }
  0x5c   : > { %388 = vperm.xlu1 %8615, %v8889_v2   ;;  %391 = vperm.xlu0 %8616, %v8897_v4  }
  0x60   : > { %394 = vperm.xlu1 %8615, %v8886_v1   ;;  %400 = vperm.xlu0 %8616, %v8905_v6  }
  0x64   : > { %397 = vperm.xlu1 %8615, %v8894_v3   ;;  %406 = vperm.xlu0 %8616, %v8913_v8  }
  0x68   : > { %403 = vperm.xlu1 %8615, %v8902_v5   ;;  %412 = vperm.xlu0 %8616, %v8921_v10  }
  0x6c   : > { %409 = vperm.xlu1 %8615, %v8910_v7   ;;  %418 = vperm.xlu0 %8616, %v8929_v12  }
  0x70   : > { %415 = vperm.xlu1 %8615, %v8918_v9   ;;  %424 = vperm.xlu0 %8616, %v8937_v14  }
  0x74   : > { %421 = vperm.xlu1 %8615, %v8926_v11   ;;  %430 = vperm.xlu0 %8616, %v8945_v16  }
  0x78   : > { %427 = vperm.xlu1 %8615, %v8934_v13   ;;  %8617 = vset.pattern.permute.xlu0 %v8796_v29 }
  0x79   : > { %500 = vperm.xlu0 %8617, %v8889_v2  }
  0x7c   : > { %433 = vperm.xlu1 %8615, %v8942_v15  }
  0x7d   : > { %509 = vperm.xlu0 %8617, %v8894_v3  }
  0x80   : > { %8618 = vset.pattern.permute.xlu1 %v8796_v29 }
  0x81   : > { %503 = vperm.xlu1 %8618, %v8897_v4   ;;  %515 = vperm.xlu0 %8617, %v8902_v5  }
  0x85   : > { %506 = vperm.xlu1 %8618, %v8886_v1   ;;  %521 = vperm.xlu0 %8617, %v8910_v7  }
  0x89   : > { %512 = vperm.xlu1 %8618, %v8905_v6   ;;  %527 = vperm.xlu0 %8617, %v8918_v9  }
  0x8d   : > { %518 = vperm.xlu1 %8618, %v8913_v8   ;;  %533 = vperm.xlu0 %8617, %v8926_v11  }
  0x91   : > { %524 = vperm.xlu1 %8618, %v8921_v10   ;;  %539 = vperm.xlu0 %8617, %v8934_v13  }
  0x95   : > { %v9055_v44 = vpop.permute.xlu1 %170  ;;  %530 = vperm.xlu1 %8618, %v8929_v12   ;;  %545 = vperm.xlu0 %8617, %v8942_v15   ;;  %v9059_v45 = vpop.permute.xlu0 %164 }
  0x96   : > { %vm213_vm0 = vcmp.eq.s32.totalorder %v9156_v40, %v9055_v44  ;;  %vm211_vm1 = vcmp.eq.s32.totalorder %v9156_v40, %v9059_v45 }
  0x97   : > { %v7030_v25 = vsel %vm213_vm0, 1.0, %v13204_v42  ;;  %v7028_v37 = vsel %vm211_vm1, 1.0, %v13204_v42 }
  0x99   : > { %v9061_v46 = vpop.permute.xlu1 %173  ;;  %536 = vperm.xlu1 %8618, %v8937_v14   ;;  %8620 = vset.pattern.permute.xlu0 %v8797_v47  ;;  %v9064_v48 = vpop.permute.xlu0 %167 }
  0x9a   : > { %1798 = vperm.xlu0 %8620, %v8897_v4   ;;  %vm214_vm2 = vcmp.eq.s32.totalorder %v9156_v40, %v9061_v46  ;;  %vm212_vm3 = vcmp.eq.s32.totalorder %v9156_v40, %v9064_v48 }
  0x9b   : > { %v7031_v46 = vsel %vm214_vm2, 1.0, %v13204_v42  ;;  %v7029_v48 = vsel %vm212_vm3, 1.0, %v13204_v42 }
  0x9d   : > { %v9067_v49 = vpop.permute.xlu1 %179  ;;  %542 = vperm.xlu1 %8618, %v8945_v16   ;;  %v9070_v50 = vpop.permute.xlu0 %176 }
  0x9e   : > { %1807 = vperm.xlu0 %8620, %v8905_v6   ;;  %vm216_vm4 = vcmp.eq.s32.totalorder %v9156_v40, %v9067_v49  ;;  %vm215_vm5 = vcmp.eq.s32.totalorder %v9156_v40, %v9070_v50 }
  0x9f   : > { %v7033_v49 = vsel %vm216_vm4, 1.0, %v13204_v42  ;;  %v7032_v50 = vsel %vm215_vm5, 1.0, %v13204_v42 }
  0xa1   : > { %v9073_v51 = vpop.permute.xlu1 %185  ;;  %8619 = vset.pattern.permute.xlu1 %v8797_v47  ;;  %v9075_v52 = vpop.permute.xlu0 %182  ;;  %v8799_v47 = vmov 6  }
  0xa2   : > { %1795 = vperm.xlu1 %8619, %v8889_v2   ;;  %1813 = vperm.xlu0 %8620, %v8913_v8   ;;  %vm218_vm6 = vcmp.eq.s32.totalorder %v9156_v40, %v9073_v51  ;;  %vm217_vm7 = vcmp.eq.s32.totalorder %v9156_v40, %v9075_v52 }
  0xa5   : > { %v9079_v53 = vpop.permute.xlu1 %191  ;;  %v9081_v54 = vpop.permute.xlu0 %188 }
  0xa6   : > { %1801 = vperm.xlu1 %8619, %v8886_v1   ;;  %1819 = vperm.xlu0 %8620, %v8921_v10   ;;  %vm220_vm8 = vcmp.eq.s32.totalorder %v9156_v40, %v9079_v53  ;;  %vm219_vm9 = vcmp.eq.s32.totalorder %v9156_v40, %v9081_v54  ;;  %v7034_v53 = vsel %vm217_vm7, 1.0, %v13204_v42 }
  0xa7   : > { %v9217_v54 = vsel %vm220_vm8, 1.0, %v13204_v42 }
  0xa9   : > { %v9085_v55 = vpop.permute.xlu1 %197  ;;  %v9087_v56 = vpop.permute.xlu0 %194 }
  0xaa   : > { %1804 = vperm.xlu1 %8619, %v8894_v3   ;;  %1825 = vperm.xlu0 %8620, %v8929_v12   ;;  %vm222_vm10 = vcmp.eq.s32.totalorder %v9156_v40, %v9085_v55  ;;  %vm221_vm11 = vcmp.eq.s32.totalorder %v9156_v40, %v9087_v56  ;;  %v7036_v55 = vsel %vm219_vm9, 1.0, %v13204_v42 }
  0xab   : > { %v9224_v56 = vsel %vm222_vm10, 1.0, %v13204_v42 }
  0xad   : > { %v9091_v57 = vpop.permute.xlu1 %203  ;;  %v9093_v58 = vpop.permute.xlu0 %200 }
  0xae   : > { %1810 = vperm.xlu1 %8619, %v8902_v5   ;;  %1831 = vperm.xlu0 %8620, %v8937_v14   ;;  %vm224_vm12 = vcmp.eq.s32.totalorder %v9156_v40, %v9091_v57  ;;  %v9227_v57 = vsel %vm221_vm11, 1.0, %v13204_v42  ;;  %vm223_vm1 = vcmp.eq.s32.totalorder %v9156_v40, %v9093_v58 }
  0xaf   : > { %v9230_v32 = vsel %vm224_vm12, 1.0, %v13204_v42 }
  0xb1   : > { %v9097_v59 = vpop.permute.xlu1 %209  ;;  %v9099_v60 = vpop.permute.xlu0 %206 }
  0xb2   : > { %1816 = vperm.xlu1 %8619, %v8910_v7   ;;  %1837 = vperm.xlu0 %8620, %v8945_v16   ;;  %vm226_vm2 = vcmp.eq.s32.totalorder %v9156_v40, %v9097_v59 }
  0xb6   : > { %v9103_v61 = vpop.permute.xlu1 %279  ;;  %1822 = vperm.xlu1 %8619, %v8918_v9   ;;  %8621 = vset.pattern.permute.xlu0 %v8798_v62  ;;  %v9106_v63 = vpop.permute.xlu0 %276 }
  0xb7   : > { %1907 = vperm.xlu0 %8621, %v8889_v2   ;;  %vm324_vm13 = vcmp.eq.s32.totalorder %v9156_v40, %v9103_v61  ;;  %vm323_vm14 = vcmp.eq.s32.totalorder %v9156_v40, %v9106_v63 }
  0xba   : > { %v9109_v0 = vpop.permute.xlu1 %282  ;;  %1828 = vperm.xlu1 %8619, %v8926_v11   ;;  %v9112_v17 = vpop.permute.xlu0 %285 }
  0xbb   : > { %1916 = vperm.xlu0 %8621, %v8894_v3   ;;  %vm325_vm15 = vcmp.eq.s32.totalorder %v9156_v40, %v9109_v0  ;;  %vm326_vm0 = vcmp.eq.s32.totalorder %v9156_v40, %v9112_v17  ;;  %v7044_v17 = vsel %vm323_vm14, 1.0, %v13204_v42  ;;  %v9272_v0 = vsel %vm226_vm2, 1.0, %v13204_v42 }
  0xbc   : > { %v7046_v26 = vsel %vm325_vm15, 1.0, %v13204_v42  ;;  %v7047_v58 = vsel %vm326_vm0, 1.0, %v13204_v42  ;;  %v371_v22 = vadd.f32 %v7044_v17, %v7028_v37  ;;  %vm615_vm0 = vcmask 261120  }
  0xbd   : > { %v9276_v33 = vadd.f32 %v7046_v26, %v7030_v25 }
  0xbe   : > { %v9115_v18 = vpop.permute.xlu1 %288  ;;  %1834 = vperm.xlu1 %8619, %v8934_v13   ;;  %v9118_v19 = vpop.permute.xlu0 %291 }
  0xbf   : > { %1922 = vperm.xlu0 %8621, %v8902_v5   ;;  %vm327_vm3 = vcmp.eq.s32.totalorder %v9156_v40, %v9115_v18  ;;  %vm328_vm4 = vcmp.eq.s32.totalorder %v9156_v40, %v9118_v19 }
  0xc2   : > { %v9121_v21 = vpop.permute.xlu1 %294  ;;  %1840 = vperm.xlu1 %8619, %v8942_v15   ;;  %v9124_v24 = vpop.permute.xlu0 %297 }
  0xc3   : > { %1928 = vperm.xlu0 %8621, %v8910_v7   ;;  %vm329_vm5 = vcmp.eq.s32.totalorder %v9156_v40, %v9121_v21  ;;  %vm330_vm7 = vcmp.eq.s32.totalorder %v9156_v40, %v9124_v24  ;;  %v7048_v24 = vsel %vm327_vm3, 1.0, %v13204_v42 }
  0xc4   : > { %v7050_v59 = vsel %vm329_vm5, 1.0, %v13204_v42  ;;  %v7051_v25 = vsel %vm330_vm7, 1.0, %v13204_v42  ;;  %v375_v21 = vadd.f32 %v7048_v24, %v7032_v50 }
  0xc6   : > { %v9127_v28 = vpop.permute.xlu1 %300  ;;  %8622 = vset.pattern.permute.xlu1 %v8798_v62  ;;  %v9129_v29 = vpop.permute.xlu0 %303 }
  0xc7   : > { %1910 = vperm.xlu1 %8622, %v8897_v4   ;;  %1934 = vperm.xlu0 %8621, %v8918_v9   ;;  %vm331_vm8 = vcmp.eq.s32.totalorder %v9156_v40, %v9127_v28  ;;  %vm332_vm9 = vcmp.eq.s32.totalorder %v9156_v40, %v9129_v29 }
  0xc8   : > { %v7052_v26 = vsel %vm331_vm8, 1.0, %v13204_v42 }
  0xca   : > { %v9133_v30 = vpop.permute.xlu1 %306  ;;  %v9135_v34 = vpop.permute.xlu0 %309 }
  0xcb   : > { %1913 = vperm.xlu1 %8622, %v8886_v1   ;;  %1940 = vperm.xlu0 %8621, %v8926_v11   ;;  %vm333_vm10 = vcmp.eq.s32.totalorder %v9156_v40, %v9133_v30  ;;  %vm334_vm11 = vcmp.eq.s32.totalorder %v9156_v40, %v9135_v34 }
  0xce   : > { %v9139_v35 = vpop.permute.xlu1 %312  ;;  %v9141_v38 = vpop.permute.xlu0 %315 }
  0xcf   : > { %1919 = vperm.xlu1 %8622, %v8905_v6   ;;  %1946 = vperm.xlu0 %8621, %v8934_v13   ;;  %vm335_vm12 = vcmp.eq.s32.totalorder %v9156_v40, %v9139_v35  ;;  %v9324_v35 = vadd.f32 %v7052_v26, %v7036_v55 }
  0xd2   : > { %v9145_v39 = vpop.permute.xlu1 %318  ;;  %v9147_v41 = vpop.permute.xlu0 %321 }
  0xd3   : > { %1925 = vperm.xlu1 %8622, %v8913_v8   ;;  %1952 = vperm.xlu0 %8621, %v8942_v15   ;;  %vm337_vm14 = vcmp.eq.s32.totalorder %v9156_v40, %v9145_v39  ;;  %v7055_v39 = vsel %vm334_vm11, 1.0, %v13204_v42 }
  0xd4   : > { %v7058_v50 = vsel %vm337_vm14, 1.0, %v13204_v42 }
  0xd7   : > { %1931 = vperm.xlu1 %8622, %v8921_v10   ;;  %v9152_v43 = vpop.permute.xlu1 %388  ;;  %8624 = vset.pattern.permute.xlu0 %v8799_v47  ;;  %v9154_v62 = vpop.permute.xlu0 %391 }
  0xd8   : > { %2022 = vperm.xlu0 %8624, %v8897_v4   ;;  %v9278_v4 = vadd.f32 %v7047_v58, %v7031_v46  ;;  %vm435_vm15 = vcmp.eq.s32.totalorder %v9156_v40, %v9152_v43  ;;  %v7056_v43 = vsel %vm335_vm12, 1.0, %v13204_v42  ;;  %vm436_vm2 = vcmp.eq.s32.totalorder %v9156_v40, %v9154_v62 }
  0xd9   : > { %v7060_v29 = vsel %vm435_vm15, 1.0, %v13204_v42  ;;  %v9360_v62 = vadd.f32 %v7055_v39, %v9224_v56 }
  0xdb   : > { %1937 = vperm.xlu1 %8622, %v8929_v12   ;;  %v9160_v36 = vpop.permute.xlu1 %394  ;;  %v9162_v31 = vpop.permute.xlu0 %400 }
  0xdc   : > { %2031 = vperm.xlu0 %8624, %v8905_v6   ;;  %v7040_v6 = vsel %vm223_vm1, 1.0, %v13204_v42  ;;  %vm338_vm1 = vcmp.eq.s32.totalorder %v9156_v40, %v9147_v41  ;;  %vm437_vm3 = vcmp.eq.s32.totalorder %v9156_v40, %v9160_v36 }
  0xdd   : > { %v7059_v36 = vsel %vm338_vm1, 1.0, %v13204_v42 }
  0xdf   : > { %1943 = vperm.xlu1 %8622, %v8937_v14   ;;  %v9180_v44 = vpop.permute.xlu1 %397  ;;  %v9182_v45 = vpop.permute.xlu0 %406 }
  0xe0   : > { %2037 = vperm.xlu0 %8624, %v8913_v8   ;;  %v7035_v8 = vsel %vm218_vm6, 1.0, %v13204_v42  ;;  %vm225_vm6 = vcmp.eq.s32.totalorder %v9156_v40, %v9099_v60  ;;  %v9320_v60 = vadd.f32 %v7050_v59, %v7034_v53  ;;  %vm438_vm5 = vcmp.eq.s32.totalorder %v9156_v40, %v9180_v44 }
  0xe1   : > { %v7042_v19 = vsel %vm225_vm6, 1.0, %v13204_v42  ;;  %v9322_v34 = vadd.f32 %v7051_v25, %v7035_v8  ;;  %v9362_v8 = vadd.f32 %v7056_v43, %v7040_v6  ;;  %v7062_v44 = vsel %vm437_vm3, 1.0, %v13204_v42 }
  0xe2   : > { %v9367_v53 = vadd.f32 %v7058_v50, %v7042_v19  ;;  %v7063_v56 = vsel %vm438_vm5, 1.0, %v13204_v42  ;;  %vm441_vm6 = vcmp.eq.s32.totalorder %v9156_v40, %v9182_v45  ;;  %v8801_v6 = vmov 7  }
  0xe3   : > { %1949 = vperm.xlu1 %8622, %v8945_v16   ;;  %v9211_v51 = vpop.permute.xlu1 %403  ;;  %v9213_v52 = vpop.permute.xlu0 %412  ;;  %v485_v17 = vadd.f32 %v7062_v44, %v9276_v33  ;;  %v7066_v58 = vsel %vm441_vm6, 1.0, %v13204_v42 }
  0xe4   : > { %2043 = vperm.xlu0 %8624, %v8921_v10   ;;  %v7045_v10 = vsel %vm324_vm13, 1.0, %v13204_v42  ;;  %vm336_vm13 = vcmp.eq.s32.totalorder %v9156_v40, %v9141_v38  ;;  %v7054_v38 = vsel %vm333_vm10, 1.0, %v13204_v42  ;;  %vm440_vm7 = vcmp.eq.s32.totalorder %v9156_v40, %v9211_v51 }
  0xe5   : > { %v7057_v46 = vsel %vm336_vm13, 1.0, %v13204_v42  ;;  %v381_v41 = vadd.f32 %v7054_v38, %v9227_v57  ;;  %vm443_vm8 = vcmp.eq.s32.totalorder %v9156_v40, %v9213_v52 }
  0xe7   : > { %8623 = vset.pattern.permute.xlu1 %v8799_v47  ;;  %v9255_v61 = vpop.permute.xlu1 %409  ;;  %v9257_v63 = vpop.permute.xlu0 %418  ;;  %v9274_v47 = vadd.f32 %v7045_v10, %v7029_v48 }
  0xe8   : > { %2019 = vperm.xlu1 %8623, %v8889_v2   ;;  %2049 = vperm.xlu0 %8624, %v8929_v12   ;;  %v7049_v12 = vsel %vm328_vm4, 1.0, %v13204_v42  ;;  %vm439_vm4 = vcmp.eq.s32.totalorder %v9156_v40, %v9162_v31  ;;  %v7061_v31 = vsel %vm436_vm2, 1.0, %v13204_v42  ;;  %vm445_vm11 = vcmp.eq.s32.totalorder %v9156_v40, %v9257_v63 }
  0xe9   : > { %v9314_v28 = vadd.f32 %v7049_v12, %v7033_v49  ;;  %v7064_v57 = vsel %vm439_vm4, 1.0, %v13204_v42  ;;  %v484_v10 = vadd.f32 %v7061_v31, %v9274_v47  ;;  %v7065_v47 = vsel %vm440_vm7, 1.0, %v13204_v42 }
  0xea   : > { %v9396_v52 = vadd.f32 %v7064_v57, %v375_v21  ;;  %v7068_v63 = vsel %vm443_vm8, 1.0, %v13204_v42  ;;  %v7070_v12 = vsel %vm445_vm11, 1.0, %v13204_v42 }
  0xeb   : > { %v9298_v37 = vpop.permute.xlu1 %415  ;;  %v9300_v18 = vpop.permute.xlu0 %424  ;;  %v488_v26 = vadd.f32 %v7065_v47, %v9314_v28 }
  0xec   : > { %2025 = vperm.xlu1 %8623, %v8886_v1   ;;  %2055 = vperm.xlu0 %8624, %v8937_v14   ;;  %v7053_v14 = vsel %vm332_vm9, 1.0, %v13204_v42  ;;  %vm442_vm9 = vcmp.eq.s32.totalorder %v9156_v40, %v9255_v61  ;;  %vm444_vm12 = vcmp.eq.s32.totalorder %v9156_v40, %v9298_v37  ;;  %vm447_vm14 = vcmp.eq.s32.totalorder %v9156_v40, %v9300_v18 }
  0xed   : > { %v9350_v30 = vadd.f32 %v7053_v14, %v9217_v54  ;;  %v483_v54 = vadd.f32 %v7060_v29, %v371_v22  ;;  %v9389_v22 = vadd.f32 %v7059_v36, %v9272_v0  ;;  %v486_v0 = vadd.f32 %v7063_v56, %v9278_v4 }
  0xee   : > { %v7067_v24 = vsel %vm442_vm9, 1.0, %v13204_v42  ;;  %v9416_v4 = vadd.f32 %v7066_v58, %v9320_v60  ;;  %v9425_v37 = vadd.f32 %v7068_v63, %v9324_v35  ;;  %v9428_v14 = vadd.f32 %v7070_v12, %v381_v41 }
  0xef   : > { %v9337_v48 = vpop.permute.xlu1 %421  ;;  %v9339_v49 = vpop.permute.xlu0 %430  ;;  %v490_v19 = vadd.f32 %v7067_v24, %v9322_v34  ;;  %v7072_v35 = vsel %vm447_vm14, 1.0, %v13204_v42 }
  0xf0   : > { %2028 = vperm.xlu1 %8623, %v8894_v3   ;;  %2061 = vperm.xlu0 %8624, %v8945_v16   ;;  %v9365_v16 = vadd.f32 %v7057_v46, %v9230_v32  ;;  %vm446_vm15 = vcmp.eq.s32.totalorder %v9156_v40, %v9337_v48  ;;  %vm449_vm9 = vcmp.eq.s32.totalorder %v9156_v40, %v9339_v49 }
  0xf1   : > { %v7071_v29 = vsel %vm446_vm15, 1.0, %v13204_v42 }
  0xf3   : > { %v9371_v55 = vpop.permute.xlu1 %427 }
  0xf4   : > { %2034 = vperm.xlu1 %8623, %v8902_v5   ;;  %8625 = vset.pattern.permute.xlu0 %v8801_v6  ;;  %v501_v32 = vpop.permute.xlu0 %500  ;;  %vm448_vm3 = vcmp.eq.s32.totalorder %v9156_v40, %v9371_v55 }
  0xf5   : > { %vm547_vm10 = vcmp.eq.s32.totalorder %v9156_v40, %v501_v32  ;;  %2131 = vperm.xlu0 %8625, %v8889_v2  }
  0xf6   : > { %v7076_v51 = vsel %vm547_vm10, 1.0, %v13204_v42 }
  0xf7   : > { %v595_v2 = vadd.f32 %v7076_v51, %v483_v54  ;;  %v9402_v61 = vpop.permute.xlu1 %433  ;;  %v9454_v54 = vadd.f32 %v7072_v35, %v9362_v8  ;;  %v494_v8 = vadd.f32 %v7071_v29, %v9360_v62 }
  0xf8   : > { %2040 = vperm.xlu1 %8623, %v8910_v7   ;;  %v510_v33 = vpop.permute.xlu0 %509  ;;  %vm450_vm6 = vcmp.eq.s32.totalorder %v9156_v40, %v9402_v61 }
  0xf9   : > { %v617_v45 = vsel %vm615_vm0, %v595_v2, 0  ;;  %vm550_vm13 = vcmp.eq.s32.totalorder %v9156_v40, %v510_v33  ;;  %2140 = vperm.xlu0 %8625, %v8894_v3   ;;  %v7069_v3 = vsel %vm444_vm12, 1.0, %v13204_v42 }
  0xfa   : > { %v9420_v59 = vand.u32 4294901760, %v617_v45  ;;  %v7079_v25 = vsel %vm550_vm13, 1.0, %v13204_v42  ;;  %v492_v50 = vadd.f32 %v7069_v3, %v9350_v30 }
  0xfb   : > { %v598_v21 = vadd.f32 %v7079_v25, %v486_v0 }
  0xfc   : > { %2046 = vperm.xlu1 %8623, %v8918_v9   ;;  %v504_v18 = vpop.permute.xlu1 %503  ;;  %7822 = vmatprep.mubr.f32.mxu1 %v9420_v59  ;;  %v516_v60 = vpop.permute.xlu0 %515  ;;  %v9436_v28 = vsub.f32 %v617_v45, %v9420_v59 }
  0xfd   : > { %v626_v34 = vsel %vm615_vm0, %v598_v21, 0  ;;  %vm548_vm1 = vcmp.eq.s32.totalorder %v9156_v40, %v504_v18  ;;  %vm552_vm2 = vcmp.eq.s32.totalorder %v9156_v40, %v516_v60  ;;  %2146 = vperm.xlu0 %8625, %v8902_v5  }
  0xfe   : > { %v9443_v38 = vand.u32 4294901760, %v626_v34  ;;  %v7077_v39 = vsel %vm548_vm1, 1.0, %v13204_v42  ;;  %v7081_v43 = vsel %vm552_vm2, 1.0, %v13204_v42  ;;  %v735_v46 = vand.u32 4294901760, %v9436_v28 }
  0xff   : > { %v596_v41 = vadd.f32 %v7077_v39, %v484_v10  ;;  %v600_v36 = vadd.f32 %v7081_v43, %v488_v26  ;;  %v7073_v10 = vsel %vm448_vm3, 1.0, %v13204_v42  ;;  %v7075_v26 = vsel %vm450_vm6, 1.0, %v13204_v42 }
 0x100   : > { %v9459_v5 = vsub.f32 %v626_v34, %v9443_v38  ;;  %2052 = vperm.xlu1 %8623, %v8926_v11   ;;  %v507_v31 = vpop.permute.xlu1 %506  ;;  %v522_v30 = vpop.permute.xlu0 %521  ;;  %v736_v48 = vsub.f32 %v9436_v28, %v735_v46  ;;  %v496_v33 = vadd.f32 %v7073_v10, %v9365_v16 }
 0x101   : > { %v620_v44 = vsel %vm615_vm0, %v596_v41, 0  ;;  %v632_v57 = vsel %vm615_vm0, %v600_v36, 0  ;;  %vm549_vm4 = vcmp.eq.s32.totalorder %v9156_v40, %v507_v31  ;;  %vm554_vm5 = vcmp.eq.s32.totalorder %v9156_v40, %v522_v30  ;;  %2152 = vperm.xlu0 %8625, %v8910_v7  }
 0x102   : > { %v9471_v55 = vand.u32 4294901760, %v620_v44  ;;  %v7078_v56 = vsel %vm549_vm4, 1.0, %v13204_v42  ;;  %v7083_v32 = vsel %vm554_vm5, 1.0, %v13204_v42  ;;  %v737_v2 = vand.u32 4294901760, %v736_v48 }
 0x103   : > { %v597_v51 = vadd.f32 %v7078_v56, %v485_v17  ;;  %v602_v58 = vadd.f32 %v7083_v32, %v490_v19  ;;  %v9481_v7 = vand.u32 4294901760, %v632_v57  ;;  %v765_v63 = vand.u32 4294901760, %v9459_v5 }
 0x104   : > { %v9479_v0 = vsub.f32 %v620_v44, %v9471_v55  ;;  %2058 = vperm.xlu1 %8623, %v8934_v13   ;;  %v513_v62 = vpop.permute.xlu1 %512  ;;  %7823 = vmatmul.mubr.f32.vlgmr.msra.gmra.mxu1 %v9471_v55  ;;  %v528_v47 = vpop.permute.xlu0 %527  ;;  %v498_v41 = vadd.f32 %v7075_v26, %v9389_v22 }
 0x105   : > { %v623_v17 = vsel %vm615_vm0, %v597_v51, 0  ;;  %v638_v24 = vsel %vm615_vm0, %v602_v58, 0  ;;  %vm551_vm7 = vcmp.eq.s32.totalorder %v9156_v40, %v513_v62  ;;  %7790 = vmatprep.mubr.f32.mxu0 %v737_v2  ;;  %vm556_vm8 = vcmp.eq.s32.totalorder %v9156_v40, %v528_v47  ;;  %2158 = vperm.xlu0 %8625, %v8918_v9   ;;  %v13359_v51 = vld [vmem:[#allocation5_spill] sm:$0xff] }
 0x106   : > { %v9492_v12 = vand.u32 4294901760, %v623_v17  ;;  %v7080_v45 = vsel %vm551_vm7, 1.0, %v13204_v42  ;;  %v7085_v25 = vsel %vm556_vm8, 1.0, %v13204_v42  ;;  %7879 = vmatpush3.msra.mxu1 %v8980_v20  ;;  %v745_v9 = vand.u32 4294901760, %v9479_v0 }
 0x107   : > { %v599_v19 = vadd.f32 %v7080_v45, %v9396_v52  ;;  %v604_v21 = vadd.f32 %v7085_v25, %v492_v50  ;;  %7880 = vmatprep.subr.mxu1 %v8990_v23  ;;  %v9507_v16 = vsub.f32 %v632_v57, %v9481_v7  ;;  %v9512_v18 = vand.u32 4294901760, %v638_v24 }
 0x108   : > { %v9510_v3 = vsub.f32 %v623_v17, %v9492_v12  ;;  %2064 = vperm.xlu1 %8623, %v8942_v15   ;;  %v519_v61 = vpop.permute.xlu1 %518  ;;  %7825 = vmatprep.mubr.f32.mxu1 %v9492_v12  ;;  %v534_v52 = vpop.permute.xlu0 %533  ;;  %v9519_v60 = vsub.f32 %v9459_v5, %v765_v63 }
 0x109   : > { %v629_v35 = vsel %vm615_vm0, %v599_v19, 0  ;;  %v644_v34 = vsel %vm615_vm0, %v604_v21, 0  ;;  %vm553_vm10 = vcmp.eq.s32.totalorder %v9156_v40, %v519_v61  ;;  %vm558_vm11 = vcmp.eq.s32.totalorder %v9156_v40, %v534_v52  ;;  %2164 = vperm.xlu0 %8625, %v8926_v11   ;;  %7826 = vmatmul.mubr.f32.gmra.mxu1 %v9443_v38  ;;  %v13360_v19 = vld [vmem:[#allocation12_spill] sm:$0xff] }
 0x10a   : > { %v9527_v39 = vand.u32 4294901760, %v629_v35  ;;  %v9529_v43 = vand.u32 4294901760, %v644_v34  ;;  %v7082_v50 = vsel %vm553_vm10, 1.0, %v13204_v42  ;;  %v7087_v29 = vsel %vm558_vm11, 1.0, %v13204_v42  ;;  %7881 = vmatpush3.msra.mxu1 %v8990_v23 }
 0x10b   : > { %v601_v36 = vadd.f32 %v7082_v50, %v9416_v4  ;;  %v746_v11 = vsub.f32 %v9479_v0, %v745_v9  ;;  %v755_v31 = vand.u32 4294901760, %v9510_v3  ;;  %7882 = vmatprep.subr.mxu1 %v9002_v27  ;;  %v9542_v30 = vsub.f32 %v638_v24, %v9512_v18 }
 0x10c   : > { %v9545_v48 = vsub.f32 %v629_v35, %v9527_v39  ;;  %v606_v44 = vadd.f32 %v7087_v29, %v494_v8  ;;  %8626 = vset.pattern.permute.xlu1 %v8801_v6  ;;  %v525_v22 = vpop.permute.xlu1 %524  ;;  %7828 = vmatprep.mubr.f32.mxu1 %v9527_v39  ;;  %v540_v4 = vpop.permute.xlu0 %539  ;;  %v13212_v57 = vand.u32 4294901760, %v9507_v16  ;;  %v9551_v56 = vsub.f32 %v644_v34, %v9529_v43  ;;  %v13361_v34 = vld [vmem:[#allocation7_spill] sm:$0xff] }
 0x10d   : > { %v635_v32 = vsel %vm615_vm0, %v601_v36, 0  ;;  %vm555_vm12 = vcmp.eq.s32.totalorder %v9156_v40, %v525_v22  ;;  %v747_v10 = vand.u32 4294901760, %v746_v11  ;;  %2134 = vperm.xlu1 %8626, %v13359_v51   ;;  %2170 = vperm.xlu0 %8625, %v8934_v13   ;;  %vm560_vm13 = vcmp.eq.s32.totalorder %v9156_v40, %v540_v4  ;;  %v13362_v4 = vld [vmem:[#allocation6_spill] sm:$0xff] }
 0x10e   : > { %v9557_v8 = vand.u32 4294901760, %v635_v32  ;;  %v7084_v6 = vsel %vm555_vm12, 1.0, %v13204_v42  ;;  %7829 = vmatmul.mubr.f32.gmra.mxu1 %v9481_v7  ;;  %v767_v58 = vand.u32 4294901760, %v9519_v60  ;;  %v7089_v62 = vsel %vm560_vm13, 1.0, %v13204_v42 }
 0x10f   : > { %v603_v2 = vadd.f32 %v7084_v6, %v9425_v37  ;;  %7791 = vmatmul.mubr.f32.vlgmr.msra.gmra.mxu0 %v747_v10  ;;  %v756_v47 = vsub.f32 %v9510_v3, %v755_v31  ;;  %v775_v13 = vand.u32 4294901760, %v9545_v48  ;;  %7883 = vmatpush3.msra.mxu1 %v9002_v27  ;;  %v650_v24 = vsel %vm615_vm0, %v606_v44, 0 }
 0x110   : > { %v9571_v17 = vsub.f32 %v635_v32, %v9557_v8  ;;  %v608_v45 = vadd.f32 %v7089_v62, %v496_v33  ;;  %v531_v25 = vpop.permute.xlu1 %530  ;;  %7831 = vmatprep.mubr.f32.mxu1 %v9557_v8  ;;  %v546_v37 = vpop.permute.xlu0 %545  ;;  %v786_v26 = vsub.f32 %v9507_v16, %v13212_v57  ;;  %7884 = vmatprep.subr.mxu1 %v13360_v19  ;;  %v7074_v50 = vsel %vm449_vm9, 1.0, %v13204_v42  ;;  %v9621_v62 = vld [vmem:[%s8883_s25 + $0x8] sm:$0xff] }
 0x111   : > { %v641_v21 = vsel %vm615_vm0, %v603_v2, 0  ;;  %vm557_vm14 = vcmp.eq.s32.totalorder %v9156_v40, %v531_v25  ;;  %v757_v61 = vand.u32 4294901760, %v756_v47  ;;  %vm562_vm15 = vcmp.eq.s32.totalorder %v9156_v40, %v546_v37  ;;  %2137 = vperm.xlu1 %8626, %v8886_v1   ;;  %2176 = vperm.xlu0 %8625, %v8942_v15  }
 0x112   : > { %v9584_v33 = vand.u32 4294901760, %v641_v21  ;;  %v656_v52 = vsel %vm615_vm0, %v608_v45, 0  ;;  %v7086_v60 = vsel %vm557_vm14, 1.0, %v13204_v42  ;;  %v7091_v35 = vsel %vm562_vm15, 1.0, %v13204_v42  ;;  %7832 = vmatmul.mubr.f32.gmra.mxu1 %v9512_v18  ;;  %7847 = vmatpush3.msra.mxu0 %v13361_v34 }
 0x113   : > { %v605_v1 = vadd.f32 %v7086_v60, %v9428_v14  ;;  %7793 = vmatprep.mubr.f32.mxu0 %v757_v61  ;;  %v610_v15 = vadd.f32 %v7091_v35, %v498_v41  ;;  %v776_v29 = vsub.f32 %v9545_v48, %v775_v13  ;;  %7885 = vmatpush3.msra.mxu1 %v13360_v19  ;;  %v9600_v36 = vand.u32 4294901760, %v650_v24 }
 0x114   : > { %v9603_v11 = vsub.f32 %v641_v21, %v9584_v33  ;;  %7794 = vmatmul.mubr.f32.gmra.mxu0 %v767_v58  ;;  %v537_v44 = vpop.permute.xlu1 %536  ;;  %7834 = vmatprep.mubr.f32.mxu1 %v9584_v33  ;;  %v13211_v49 = vand.u32 4294901760, %v9571_v17  ;;  %v13208_v14 = vand.u32 4294901760, %v9542_v30  ;;  %v9608_v41 = vand.u32 4294901760, %v656_v52  ;;  %v13363_v21 = vld [vmem:[#allocation9_spill] sm:$0xff] }
 0x115   : > { %v647_v22 = vsel %vm615_vm0, %v605_v1, 0  ;;  %vm559_vm1 = vcmp.eq.s32.totalorder %v9156_v40, %v537_v44  ;;  %2143 = vperm.xlu1 %8626, %v13362_v4   ;;  %v13213_v32 = vmov 8   ;;  %v787_v10 = vand.u32 4294901760, %v786_v26  ;;  %v9614_v51 = vpop.permute.xlu0 %1798  ;;  %7848 = vmatprep.subr.mxu0 %v13363_v21 }
 0x116   : > { %8628 = vset.pattern.permute.xlu0 %v13213_v32  ;;  %v9616_v6 = vand.u32 4294901760, %v647_v22  ;;  %v7088_v58 = vsel %vm559_vm1, 1.0, %v13204_v42  ;;  %v777_v2 = vand.u32 4294901760, %v776_v29  ;;  %7835 = vmatmul.mubr.f32.gmra.mxu1 %v9529_v43  ;;  %v13207_v47 = vand.u32 4294901760, %v9551_v56 }
 0x117   : > { %3429 = vperm.xlu0 %8628, %v9621_v62   ;;  %v662_v45 = vsel %vm615_vm0, %v610_v15, 0  ;;  %v607_v25 = vadd.f32 %v7088_v58, %v9454_v54  ;;  %v796_v37 = vsub.f32 %v9571_v17, %v13211_v49  ;;  %v806_v26 = vsub.f32 %v9542_v30, %v13208_v14  ;;  %7849 = vmatpush3.msra.mxu0 %v13363_v21 }
 0x118   : > { %v497_v61 = vadd.f32 %v7074_v50, %v9367_v53  ;;  %v9636_v60 = vsub.f32 %v650_v24, %v9600_v36  ;;  %v9639_v35 = vsub.f32 %v647_v22, %v9616_v6  ;;  %7796 = vmatprep.mubr.f32.mxu0 %v777_v2  ;;  %v543_v54 = vpop.permute.xlu1 %542  ;;  %7837 = vmatprep.mubr.f32.mxu1 %v9616_v6  ;;  %v13206_v34 = vand.u32 4294901760, %v9603_v11  ;;  %v9649_v24 = vld [vmem:[%s8883_s25 + $0x30] sm:$0xff] }
 0x119   : > { %v9644_v1 = vsub.f32 %v656_v52, %v9608_v41  ;;  %v653_v15 = vsel %vm615_vm0, %v607_v25, 0  ;;  %7797 = vmatmul.mubr.f32.gmra.mxu0 %v787_v10  ;;  %vm561_vm2 = vcmp.eq.s32.totalorder %v9156_v40, %v543_v54  ;;  %v797_v53 = vand.u32 4294901760, %v796_v37  ;;  %2149 = vperm.xlu1 %8626, %v9649_v24   ;;  %v9652_v50 = vpop.permute.xlu0 %1807  ;;  %v9661_v52 = vld [vmem:[%s8883_s25 + $0x20] sm:$0xff] }
 0x11a   : > { %v9654_v29 = vand.u32 4294901760, %v662_v45  ;;  %v9656_v44 = vand.u32 4294901760, %v653_v15  ;;  %v7090_v22 = vsel %vm561_vm2, 1.0, %v13204_v42  ;;  %7838 = vmatmul.mubr.f32.gmra.mxu1 %v9600_v36  ;;  %13364 = vst [vmem:[#allocation5_spill] sm:$0xff] %v9661_v52  ;;  %v816_v4 = vsub.f32 %v9603_v11, %v13206_v34  ;;  %v13365_v34 = vld [vmem:[#allocation11_spill] sm:$0xff]  ;;  %7942 = vmatprep.subr.mxu1 %v8980_v20 }
 0x11b   : > { %3438 = vperm.xlu0 %8628, %v9661_v52   ;;  %v609_v10 = vadd.f32 %v7090_v22, %v497_v61  ;;  %7799 = vmatprep.mubr.f32.mxu0 %v797_v53  ;;  %v807_v58 = vand.u32 4294901760, %v806_v26  ;;  %v826_v2 = vsub.f32 %v9551_v56, %v13207_v47  ;;  %v13209_v25 = vand.u32 4294901760, %v9639_v35  ;;  %v9680_v61 = vld [vmem:[%s8883_s25 + $0x40] sm:$0xff] }
 0x11c   : > { %v9673_v37 = vsub.f32 %v653_v15, %v9656_v44  ;;  %v817_v54 = vand.u32 4294901760, %v816_v4  ;;  %7840 = vmatprep.mubr.f32.mxu1 %v9656_v44  ;;  %v13210_v42 = vand.u32 4294901760, %v9636_v60  ;;  %7850 = vmatprep.subr.mxu0 %v13365_v34  ;;  %v9691_v22 = vsub.f32 %v662_v45, %v9654_v29 }
 0x11d   : > { %v659_v26 = vsel %vm615_vm0, %v609_v10, 0  ;;  %7800 = vmatmul.mubr.f32.gmra.mxu0 %v807_v58  ;;  %2155 = vperm.xlu1 %8626, %v9680_v61   ;;  %v9683_v53 = vpop.permute.xlu1 %1795  ;;  %v9685_v21 = vpop.permute.xlu0 %1813  ;;  %v836_v15 = vsub.f32 %v9639_v35, %v13209_v25  ;;  %v13214_v10 = vand.u32 4294901760, %v9644_v1  ;;  %v827_v58 = vand.u32 4294901760, %v826_v2  ;;  %v9709_v2 = vld [vmem:[%s8883_s25 + $0x50] sm:$0xff] }
 0x11e   : > { %v9693_v4 = vand.u32 4294901760, %v659_v26  ;;  %7802 = vmatprep.mubr.f32.mxu0 %v817_v54  ;;  %7841 = vmatmul.mubr.f32.gmra.mxu1 %v9608_v41  ;;  %v846_v14 = vsub.f32 %v9636_v60, %v13210_v42  ;;  %v13219_v25 = vand.u32 4294901760, %v9673_v37  ;;  %v13366_v54 = vld [vmem:[#allocation14_spill] sm:$0xff]  ;;  %v13216_v32 = vand.u32 4294901760, %v9691_v22 }
 0x11f   : > { %3444 = vperm.xlu0 %8628, %v9649_v24   ;;  %v837_v47 = vand.u32 4294901760, %v836_v15  ;;  %7851 = vmatpush3.msra.mxu0 %v13365_v34  ;;  %v866_v57 = vsub.f32 %v9644_v1, %v13214_v10  ;;  %vm1843_vm3 = vcmp.eq.s32.totalorder %v9156_v40, %v9614_v51  ;;  %vm1846_vm4 = vcmp.eq.s32.totalorder %v9156_v40, %v9652_v50 }
 0x120   : > { %v9704_v45 = vsub.f32 %v659_v26, %v9693_v4  ;;  %7843 = vmatprep.mubr.f32.mxu1 %v9693_v4  ;;  %7852 = vmatprep.subr.mxu0 %v13366_v54  ;;  %v856_v34 = vsub.f32 %v9673_v37, %v13219_v25  ;;  %v847_v49 = vand.u32 4294901760, %v846_v14  ;;  %v9734_v14 = vld [vmem:[%s8883_s25 + $0x60] sm:$0xff]  ;;  %v13377_v25 = vand.u32 4294901760, %v9639_v35 }
 0x121   : > { %7803 = vmatmul.mubr.f32.gmra.mxu0 %v827_v58  ;;  %2161 = vperm.xlu1 %8626, %v9709_v2   ;;  %v9712_v15 = vpop.permute.xlu1 %1801  ;;  %v9714_v42 = vpop.permute.xlu0 %1819  ;;  %vm1842_vm5 = vcmp.eq.s32.totalorder %v9156_v40, %v9683_v53  ;;  %vm1848_vm6 = vcmp.eq.s32.totalorder %v9156_v40, %v9685_v21 }
 0x122   : > { %7805 = vmatprep.mubr.f32.mxu0 %v837_v47  ;;  %7844 = vmatmul.mubr.f32.gmra.mxu1 %v9654_v29  ;;  %v13215_v26 = vand.u32 4294901760, %v9704_v45  ;;  %v857_v58 = vand.u32 4294901760, %v856_v34  ;;  %vm1844_vm7 = vcmp.eq.s32.totalorder %v9156_v40, %v9712_v15  ;;  %vm1850_vm9 = vcmp.eq.s32.totalorder %v9156_v40, %v9714_v42 }
 0x123   : > { %3450 = vperm.xlu0 %8628, %v9680_v61   ;;  %7886 = vmatprep.mubr.f32.mxu1 %v735_v46 }
 0x124   : > { %v876_v47 = vsub.f32 %v9704_v45, %v13215_v26  ;;  %7853 = vmatpush3.msra.mxu0 %v13366_v54  ;;  %v867_v26 = vand.u32 4294901760, %v866_v57  ;;  %v13367_v54 = vld [vmem:[#allocation8_spill] sm:$0xff] }
 0x125   : > { %7806 = vmatmul.mubr.f32.gmra.mxu0 %v847_v49  ;;  %2167 = vperm.xlu1 %8626, %v9734_v14   ;;  %v9737_v46 = vpop.permute.xlu1 %1804  ;;  %v9739_v34 = vpop.permute.xlu0 %1825  ;;  %v886_v49 = vsub.f32 %v9691_v22, %v13216_v32 }
 0x126   : > { %7808 = vmatprep.mubr.f32.mxu0 %v857_v58  ;;  %7887 = vmatmul.mubr.f32.vlgmr.msra.gmra.mxu1 %v745_v9  ;;  %v877_v10 = vand.u32 4294901760, %v876_v47  ;;  %v9752_v58 = vld [vmem:[%s8883_s25 + $0x70] sm:$0xff]  ;;  %v13368_v47 = vmov 8   ;;  %vm1845_vm10 = vcmp.eq.s32.totalorder %v9156_v40, %v9737_v46  ;;  %vm1852_vm11 = vcmp.eq.s32.totalorder %v9156_v40, %v9739_v34 }
 0x127   : > { %3456 = vperm.xlu0 %8628, %v9709_v2   ;;  %7889 = vmatprep.mubr.f32.mxu1 %v755_v31  ;;  %v7159_v31 = vld [vmem:[%s13183_s1 + $0x38] sm:$0xff] }
 0x128   : > { %7943 = vmatpush3.msra.mxu1 %v8980_v20  ;;  %7910 = vmatprep.subr.mxu0 %v13367_v54  ;;  %v887_v20 = vand.u32 4294901760, %v886_v49  ;;  %v9779_v49 = vld [vmem:[%s8883_s25] sm:$0xff] }
 0x129   : > { %7809 = vmatmul.mubr.f32.gmra.mxu0 %v867_v26  ;;  %2173 = vperm.xlu1 %8626, %v9752_v58   ;;  %v9755_v9 = vpop.permute.xlu1 %1810  ;;  %v9757_v57 = vpop.permute.xlu0 %1831  ;;  %v9768_v26 = vand.u32 4294901760, %v7159_v31 }
 0x12a   : > { %7811 = vmatprep.mubr.f32.mxu0 %v877_v10  ;;  %7890 = vmatmul.mubr.f32.gmra.mxu1 %v765_v63  ;;  %v13369_v63 = vand.u32 4294901760, %v9507_v16  ;;  %vm1847_vm12 = vcmp.eq.s32.totalorder %v9156_v40, %v9755_v9  ;;  %vm1854_vm14 = vcmp.eq.s32.totalorder %v9156_v40, %v9757_v57 }
 0x12b   : > { %3462 = vperm.xlu0 %8628, %v9734_v14   ;;  %7892 = vmatprep.mubr.f32.mxu1 %v775_v13  ;;  %v13370_v13 = vand.u32 4294901760, %v9571_v17 }
 0x12c   : > { %7944 = vmatprep.subr.mxu1 %v8990_v23 }
 0x12d   : > { %7812 = vmatmul.mubr.f32.gmra.mxu0 %v887_v20  ;;  %8627 = vset.pattern.permute.xlu1 %v13368_v47  ;;  %v9771_v32 = vpop.permute.xlu1 %1816  ;;  %v9773_v10 = vpop.permute.xlu0 %1837  ;;  %v9787_v20 = vsub.f32 %v7159_v31, %v9768_v26  ;;  %v13372_v47 = vand.u32 4294901760, %v9542_v30 }
 0x12e   : > { %7854 = vmatprep.mubr.f32.mxu0 %v9436_v28  ;;  %7893 = vmatmul.mubr.f32.gmra.mxu1 %v13369_v63  ;;  %vm1849_vm15 = vcmp.eq.s32.totalorder %v9156_v40, %v9771_v32  ;;  %vm1856_vm1 = vcmp.eq.s32.totalorder %v9156_v40, %v9773_v10 }
 0x12f   : > { %3426 = vperm.xlu1 %8627, %v9779_v49   ;;  %3468 = vperm.xlu0 %8628, %v9752_v58   ;;  %13371 = vst [vmem:[#allocation12_spill] sm:$0xff] %v9787_v20 }
 0x130   : > { %7895 = vmatprep.mubr.f32.mxu1 %v13370_v13  ;;  %7945 = vmatpush3.msra.mxu1 %v8990_v23  ;;  %v9799_v13 = vld [vmem:[%s8883_s25 + $0x10] sm:$0xff]  ;;  %v13217_v23 = vmov 10  }
 0x131   : > { %7855 = vmatmul.mubr.f32.vlgmr.msra.gmra.mxu0 %v9479_v0  ;;  %v9790_v28 = vpop.permute.xlu1 %1822  ;;  %7946 = vmatprep.subr.mxu1 %v9002_v27  ;;  %v13373_v0 = vand.u32 4294901760, %v9603_v11 }
 0x132   : > { %7857 = vmatprep.mubr.f32.mxu0 %v9510_v3  ;;  %7896 = vmatmul.mubr.f32.gmra.mxu1 %v13372_v47  ;;  %v9796_v63 = vpop.permute.xlu0 %1907  ;;  %v9807_v3 = vand.u32 4294901760, %v9787_v20  ;;  %v13376_v47 = vand.u32 4294901760, %v9551_v56  ;;  %vm1851_vm2 = vcmp.eq.s32.totalorder %v9156_v40, %v9790_v28 }
 0x133   : > { %3432 = vperm.xlu1 %8627, %v9799_v13   ;;  %8631 = vset.pattern.permute.xlu0 %v13217_v23  ;;  %vm1954_vm8 = vcmp.eq.s32.totalorder %v9156_v40, %v9796_v63 }
 0x134   : > { %7898 = vmatprep.mubr.f32.mxu1 %v13373_v0  ;;  %3653 = vperm.xlu0 %8631, %v9621_v62   ;;  %13374 = vst [vmem:[#allocation7_spill] sm:$0xff] %v9807_v3  ;;  %v9819_v0 = vld [vmem:[%s8883_s25 + $0x18] sm:$0xff] }
 0x135   : > { %7858 = vmatmul.mubr.f32.gmra.mxu0 %v9459_v5  ;;  %v9810_v31 = vpop.permute.xlu1 %1828  ;;  %7947 = vmatpush3.msra.mxu1 %v9002_v27  ;;  %v2552_v27 = vsub.f32 %v9787_v20, %v9807_v3  ;;  %v9887_v20 = vld [vmem:[%s8883_s25 + $0x48] sm:$0xff] }
 0x136   : > { %13375 = vst [vmem:[#allocation6_spill] sm:$0xff] %v9810_v31  ;;  %7860 = vmatprep.mubr.f32.mxu0 %v9545_v48  ;;  %7899 = vmatmul.mubr.f32.gmra.mxu1 %v13376_v47  ;;  %v9816_v23 = vpop.permute.xlu0 %1916  ;;  %v7158_v48 = vld [vmem:[%s13183_s1 + $0x30] sm:$0xff]  ;;  %v9841_v31 = vld [vmem:[%s8883_s25 + $0x28] sm:$0xff]  ;;  %13390 = vst [vmem:[#allocation17_spill] sm:$0xff] %v9887_v20 }
 0x137   : > { %3435 = vperm.xlu1 %8627, %v9819_v0   ;;  %7901 = vmatprep.mubr.f32.mxu1 %v13377_v25  ;;  %v13379_v25 = vand.u32 4294901760, %v9636_v60  ;;  %v2553_v3 = vand.u32 4294901760, %v2552_v27  ;;  %v9863_v27 = vld [vmem:[%s8883_s25 + $0x38] sm:$0xff] }
 0x138   : > { %3656 = vperm.xlu0 %8631, %v9799_v13   ;;  %7948 = vmatprep.subr.mxu1 %v13360_v19 }
 0x139   : > { %7861 = vmatmul.mubr.f32.gmra.mxu0 %v9507_v16  ;;  %v9829_v5 = vpop.permute.xlu1 %1834  ;;  %7949 = vmatpush3.msra.mxu1 %v13360_v19  ;;  %v13380_v16 = vand.u32 4294901760, %v9673_v37  ;;  %v13222_v19 = vmov 9  }
 0x13a   : > { %13378 = vst [vmem:[#allocation9_spill] sm:$0xff] %v9829_v5  ;;  %7863 = vmatprep.mubr.f32.mxu0 %v9571_v17  ;;  %7902 = vmatmul.mubr.f32.gmra.mxu1 %v13379_v25  ;;  %v9838_v47 = vpop.permute.xlu0 %1922  ;;  %v9848_v17 = vand.u32 4294901760, %v7158_v48  ;;  %v13382_v5 = vand.u32 4294901760, %v9644_v1 }
 0x13b   : > { %3441 = vperm.xlu1 %8627, %v9841_v31   ;;  %7904 = vmatprep.mubr.f32.mxu1 %v13380_v16 }
 0x13c   : > { %8633 = vset.pattern.permute.xlu0 %v13222_v19  ;;  %7911 = vmatpush3.msra.mxu0 %v13367_v54  ;;  %v7157_v54 = vld [vmem:[%s13183_s1 + $0x28] sm:$0xff] }
 0x13d   : > { %7864 = vmatmul.mubr.f32.gmra.mxu0 %v9542_v30  ;;  %3538 = vperm.xlu0 %8633, %v9779_v49   ;;  %v9852_v25 = vpop.permute.xlu1 %1840  ;;  %v13384_v30 = vand.u32 4294901760, %v9704_v45  ;;  %v13385_v19 = vld [vmem:[#allocation10_spill] sm:$0xff]  ;;  %v13404_v9 = vld [vmem:[#allocation17_spill] sm:$0xff] }
 0x13e   : > { %13381 = vst [vmem:[#allocation11_spill] sm:$0xff] %v9852_v25  ;;  %7866 = vmatprep.mubr.f32.mxu0 %v9603_v11  ;;  %7905 = vmatmul.mubr.f32.gmra.mxu1 %v13382_v5  ;;  %v9857_v16 = vpop.permute.xlu0 %1928  ;;  %v9870_v11 = vsub.f32 %v7158_v48, %v9848_v17  ;;  %v9874_v5 = vand.u32 4294901760, %v7157_v54  ;;  %v13387_v25 = vand.u32 4294901760, %v9691_v22  ;;  %v7156_v48 = vld [vmem:[%s13183_s1 + $0x20] sm:$0xff] }
 0x13f   : > { %13383 = vst [vmem:[#allocation14_spill] sm:$0xff] %v9857_v16  ;;  %3447 = vperm.xlu1 %8627, %v9863_v27   ;;  %7907 = vmatprep.mubr.f32.mxu1 %v13384_v30 }
 0x140   : > { %7912 = vmatprep.subr.mxu0 %v13385_v19  ;;  %8006 = vmatprep.subr.mxu1 %v2553_v3  ;;  %13386 = vst [vmem:[#allocation8_spill] sm:$0xff] %v9870_v11 }
 0x141   : > { %7867 = vmatmul.mubr.f32.gmra.mxu0 %v9551_v56  ;;  %3547 = vperm.xlu0 %8633, %v9819_v0   ;;  %v9893_v56 = vand.u32 4294901760, %v9870_v11  ;;  %v13407_v10 = vld [vmem:[#allocation9_spill] sm:$0xff] }
 0x142   : > { %7869 = vmatprep.mubr.f32.mxu0 %v9639_v35  ;;  %7908 = vmatmul.mubr.f32.gmra.mxu1 %v13387_v25  ;;  %v9879_v16 = vpop.permute.xlu1 %1910  ;;  %v9881_v30 = vpop.permute.xlu0 %1934  ;;  %v13392_v35 = vld [vmem:[#allocation13_spill] sm:$0xff]  ;;  %v9898_v25 = vsub.f32 %v7157_v54, %v9874_v5 }
 0x143   : > { %13388 = vst [vmem:[#allocation10_spill] sm:$0xff] %v9879_v16  ;;  %13389 = vst [vmem:[#allocation16_spill] sm:$0xff] %v9881_v30  ;;  %3453 = vperm.xlu1 %8627, %v9887_v20   ;;  %7950 = vmatprep.mubr.f32.mxu1 %v9420_v59  ;;  %v9900_v30 = vand.u32 4294901760, %v7156_v48  ;;  %v9909_v20 = vld [vmem:[%s8883_s25 + $0x58] sm:$0xff] }
 0x144   : > { %7913 = vmatpush3.msra.mxu0 %v13385_v19  ;;  %13391 = vst [vmem:[#allocation18_spill] sm:$0xff] %v9893_v56  ;;  %13393 = vst [vmem:[#allocation13_spill] sm:$0xff] %v9898_v25  ;;  %v9920_v54 = vand.u32 4294901760, %v9898_v25 }
 0x145   : > { %7870 = vmatmul.mubr.f32.gmra.mxu0 %v9636_v60  ;;  %7914 = vmatprep.subr.mxu0 %v13392_v35  ;;  %13395 = vst [vmem:[#allocation20_spill] sm:$0xff] %v9909_v20  ;;  %v2559_v60 = vsub.f32 %v9870_v11, %v9893_v56  ;;  %v9932_v56 = vld [vmem:[%s8883_s25 + $0x68] sm:$0xff] }
 0x146   : > { %7872 = vmatprep.mubr.f32.mxu0 %v9673_v37  ;;  %7951 = vmatmul.mubr.f32.vlgmr.msra.gmra.mxu1 %v9471_v55  ;;  %v9904_v16 = vpop.permute.xlu1 %1913  ;;  %v9906_v19 = vpop.permute.xlu0 %1940  ;;  %v13396_v37 = vld [vmem:[#allocation15_spill] sm:$0xff] }
 0x147   : > { %13394 = vst [vmem:[#allocation19_spill] sm:$0xff] %v9906_v19  ;;  %3459 = vperm.xlu1 %8627, %v9909_v20   ;;  %7953 = vmatprep.mubr.f32.mxu1 %v9492_v12  ;;  %13397 = vst [vmem:[#allocation15_spill] sm:$0xff] %v9920_v54  ;;  %v9923_v19 = vsub.f32 %v7156_v48, %v9900_v30 }
 0x148   : > { %7915 = vmatpush3.msra.mxu0 %v13392_v35  ;;  %3550 = vperm.xlu0 %8633, %v9661_v52  }
 0x149   : > { %7873 = vmatmul.mubr.f32.gmra.mxu0 %v9644_v1  ;;  %7916 = vmatprep.subr.mxu0 %v13396_v37  ;;  %13398 = vst [vmem:[#allocation21_spill] sm:$0xff] %v9923_v19  ;;  %v2560_v1 = vand.u32 4294901760, %v2559_v60  ;;  %v9942_v48 = vand.u32 4294901760, %v9923_v19  ;;  %v13401_v60 = vmov 9  }
 0x14a   : > { %7875 = vmatprep.mubr.f32.mxu0 %v9704_v45  ;;  %7954 = vmatmul.mubr.f32.gmra.mxu1 %v9443_v38  ;;  %v9927_v35 = vpop.permute.xlu1 %1919  ;;  %v9929_v52 = vpop.permute.xlu0 %1946  ;;  %v2566_v45 = vsub.f32 %v9898_v25, %v9920_v54 }
 0x14b   : > { %13399 = vst [vmem:[#allocation22_spill] sm:$0xff] %v9929_v52  ;;  %3465 = vperm.xlu1 %8627, %v9932_v56   ;;  %7956 = vmatprep.mubr.f32.mxu1 %v9527_v39  ;;  %13400 = vst [vmem:[#allocation23_spill] sm:$0xff] %v9942_v48 }
 0x14c   : > { %7917 = vmatpush3.msra.mxu0 %v13396_v37  ;;  %3556 = vperm.xlu0 %8633, %v9649_v24   ;;  %v8705_v37 = vld [vmem:[%s8883_s25 + $0x78] sm:$0xff] }
 0x14d   : > { %7876 = vmatmul.mubr.f32.gmra.mxu0 %v9691_v22  ;;  %8007 = vmatpush3.msra.mxu1 %v2553_v3  ;;  %v2567_v22 = vand.u32 4294901760, %v2566_v45 }
 0x14e   : > { %7918 = vmatprep.mubr.f32.mxu0 %v9420_v59  ;;  %7957 = vmatmul.mubr.f32.gmra.mxu1 %v9481_v7  ;;  %v9946_v11 = vpop.permute.xlu1 %1925  ;;  %v9948_v52 = vpop.permute.xlu0 %1952  ;;  %v2573_v59 = vsub.f32 %v9923_v19, %v9942_v48  ;;  %v13410_v19 = vld [vmem:[#allocation16_spill] sm:$0xff] }
 0x14f   : > { %3471 = vperm.xlu1 %8627, %v8705_v37   ;;  %7959 = vmatprep.mubr.f32.mxu1 %v9557_v8 }
 0x150   : > { %3562 = vperm.xlu0 %8633, %v9680_v61   ;;  %8008 = vmatprep.subr.mxu1 %v2560_v1 }
 0x151   : > { %7919 = vmatmul.mubr.f32.vlgmr.msra.gmra.mxu0 %v9471_v55  ;;  %8009 = vmatpush3.msra.mxu1 %v2560_v1  ;;  %v2574_v55 = vand.u32 4294901760, %v2573_v59 }
 0x152   : > { %7921 = vmatprep.mubr.f32.mxu0 %v9492_v12  ;;  %7960 = vmatmul.mubr.f32.gmra.mxu1 %v9512_v18  ;;  %v9958_v3 = vpop.permute.xlu1 %1931 }
 0x153   : > { %8629 = vset.pattern.permute.xlu1 %v13401_v60  ;;  %7962 = vmatprep.mubr.f32.mxu1 %v9584_v33  ;;  %v9962_v37 = vpop.permute.xlu0 %2022 }
 0x154   : > { %3541 = vperm.xlu1 %8629, %v9621_v62   ;;  %3568 = vperm.xlu0 %8633, %v9709_v2   ;;  %v13402_v2 = vmov 10  }
 0x155   : > { %7922 = vmatmul.mubr.f32.gmra.mxu0 %v9443_v38  ;;  %8010 = vmatprep.subr.mxu1 %v2567_v22 }
 0x156   : > { %7924 = vmatprep.mubr.f32.mxu0 %v9527_v39  ;;  %7963 = vmatmul.mubr.f32.gmra.mxu1 %v9529_v43  ;;  %v9969_v12 = vpop.permute.xlu1 %1937 }
 0x157   : > { %7965 = vmatprep.mubr.f32.mxu1 %v9616_v6  ;;  %v9972_v61 = vpop.permute.xlu0 %2031  ;;  %8011 = vmatpush3.msra.mxu1 %v2567_v22 }
 0x158   : > { %3544 = vperm.xlu1 %8629, %v9799_v13   ;;  %3574 = vperm.xlu0 %8633, %v9734_v14   ;;  %v13235_v14 = vmov 11  }
 0x159   : > { %7925 = vmatmul.mubr.f32.gmra.mxu0 %v9481_v7  ;;  %8012 = vmatprep.subr.mxu1 %v2574_v55 }
 0x15a   : > { %7927 = vmatprep.mubr.f32.mxu0 %v9557_v8  ;;  %7966 = vmatmul.mubr.f32.gmra.mxu1 %v9600_v36  ;;  %v9979_v38 = vpop.permute.xlu1 %1943 }
 0x15b   : > { %7968 = vmatprep.mubr.f32.mxu1 %v9656_v44  ;;  %v9982_v39 = vpop.permute.xlu0 %2037  ;;  %8013 = vmatpush3.msra.mxu1 %v2574_v55  ;;  %v13405_v55 = vld [vmem:[#allocation6_spill] sm:$0xff] }
 0x15c   : > { %8630 = vset.pattern.permute.xlu1 %v13402_v2  ;;  %3580 = vperm.xlu0 %8633, %v9752_v58  }
 0x15d   : > { %7928 = vmatmul.mubr.f32.gmra.mxu0 %v9512_v18  ;;  %3650 = vperm.xlu1 %8630, %v9779_v49  }
 0x15e   : > { %7930 = vmatprep.mubr.f32.mxu0 %v9584_v33  ;;  %7969 = vmatmul.mubr.f32.gmra.mxu1 %v9608_v41  ;;  %v9990_v7 = vpop.permute.xlu1 %1949 }
 0x15f   : > { %7971 = vmatprep.mubr.f32.mxu1 %v9693_v4  ;;  %v9993_v8 = vpop.permute.xlu0 %2043  ;;  %7974 = vmatprep.subr.mxu0 %v9768_v26 }
 0x160   : > { %8650 = vset.pattern.permute.xlu0 %v13235_v14  ;;  %7975 = vmatpush3.msra.mxu0 %v9768_v26 }
 0x161   : > { %7931 = vmatmul.mubr.f32.gmra.mxu0 %v9529_v43  ;;  %8632 = vset.pattern.permute.xlu1 %v13235_v14 }
 0x162   : > { %7933 = vmatprep.mubr.f32.mxu0 %v9616_v6  ;;  %3762 = vperm.xlu1 %8632, %v9779_v49  }
 0x163   : > { %7972 = vmatmul.mubr.f32.gmra.mxu1 %v9654_v29  ;;  %v2020_v18 = vpop.permute.xlu1 %2019  ;;  %v10003_v33 = vpop.permute.xlu0 %2049  ;;  %3771 = vperm.xlu0 %8650, %v9819_v0  }
 0x164   : > { %7976 = vmatprep.subr.mxu0 %v9848_v17  ;;  %8070 = vmatprep.subr.mxu1 %v9768_v26  ;;  %vm2066_vm13 = vcmp.eq.s32.totalorder %v9156_v40, %v2020_v18 }
 0x165   : > { %7934 = vmatmul.mubr.f32.gmra.mxu0 %v9600_v36  ;;  %v13403_v36 = vmov 0.0  }
 0x166   : > { %7936 = vmatprep.mubr.f32.mxu0 %v9656_v44  ;;  %3765 = vperm.xlu1 %8632, %v9621_v62   ;;  %v10027_v51 = vsel %vm1843_vm3, 1.0, %v13403_v36  ;;  %v10035_v50 = vsel %vm1846_vm4, 1.0, %v13403_v36  ;;  %v7092_v44 = vsel %vm1842_vm5, 1.0, %v13403_v36  ;;  %v10045_v53 = vsel %vm1848_vm6, 1.0, %v13403_v36 }
 0x167   : > { %v10017_v43 = vpop.permute.xlu1 %2025  ;;  %v10019_v6 = vpop.permute.xlu0 %2055  ;;  %3777 = vperm.xlu0 %8650, %v9841_v31   ;;  %7977 = vmatpush3.msra.mxu0 %v9848_v17  ;;  %v7108_v1 = vsel %vm1954_vm8, 1.0, %v13403_v36  ;;  %v10077_v15 = vsel %vm1850_vm9, 1.0, %v13403_v36  ;;  %vm1957_vm3 = vcmp.eq.s32.totalorder %v9156_v40, %v9816_v23  ;;  %v7095_v42 = vsel %vm1845_vm10, 1.0, %v13403_v36 }
 0x168   : > { %7978 = vmatprep.subr.mxu0 %v9874_v5  ;;  %v10095_v32 = vsel %vm1852_vm11, 1.0, %v13403_v36  ;;  %v7097_v57 = vsel %vm1847_vm12, 1.0, %v13403_v36  ;;  %v10106_v46 = vsel %vm1854_vm14, 1.0, %v13403_v36  ;;  %v7099_v63 = vsel %vm1849_vm15, 1.0, %v13403_v36 }
 0x169   : > { %7937 = vmatmul.mubr.f32.gmra.mxu0 %v9608_v41  ;;  %v2002_v45 = vadd.f32 %v7108_v1, %v7092_v44  ;;  %vm1959_vm4 = vcmp.eq.s32.totalorder %v9156_v40, %v9838_v47  ;;  %v10119_v22 = vsel %vm1856_vm1, 1.0, %v13403_v36  ;;  %v7101_v59 = vsel %vm1851_vm2, 1.0, %v13403_v36  ;;  %v13406_v44 = vld [vmem:[#allocation12_spill] sm:$0xff]  ;;  %v13408_v1 = vld [vmem:[#allocation14_spill] sm:$0xff] }
 0x16a   : > { %7939 = vmatprep.mubr.f32.mxu0 %v9693_v4  ;;  %8634 = vset.pattern.permute.xlu1 %v13402_v2  ;;  %v10062_v4 = vsel %vm1844_vm7, 1.0, %v13403_v36  ;;  %vm1853_vm5 = vcmp.eq.s32.totalorder %v9156_v40, %v13405_v55  ;;  %v7111_v47 = vsel %vm1957_vm3, 1.0, %v13403_v36  ;;  %vm1855_vm6 = vcmp.eq.s32.totalorder %v9156_v40, %v13407_v10 }
 0x16b   : > { %3659 = vperm.xlu1 %8634, %v9819_v0   ;;  %v10053_v41 = vpop.permute.xlu1 %2028  ;;  %v10055_v21 = vpop.permute.xlu0 %2061  ;;  %3783 = vperm.xlu0 %8650, %v9863_v27   ;;  %vm1961_vm7 = vcmp.eq.s32.totalorder %v9156_v40, %v13408_v1  ;;  %v7113_v55 = vsel %vm1959_vm4, 1.0, %v13403_v36  ;;  %v7103_v48 = vsel %vm1853_vm5, 1.0, %v13403_v36  ;;  %v2005_v54 = vadd.f32 %v7111_v47, %v7095_v42 }
 0x16c   : > { %7979 = vmatpush3.msra.mxu0 %v9874_v5  ;;  %vm1963_vm10 = vcmp.eq.s32.totalorder %v9156_v40, %v13410_v19  ;;  %v10153_v1 = vadd.f32 %v7113_v55, %v7097_v57  ;;  %vm2069_vm12 = vcmp.eq.s32.totalorder %v9156_v40, %v10053_v41  ;;  %vm1958_vm15 = vcmp.eq.s32.totalorder %v9156_v40, %v9927_v35 }
 0x16d   : > { %7940 = vmatmul.mubr.f32.gmra.mxu0 %v9654_v29  ;;  %7980 = vmatprep.subr.mxu0 %v9900_v30  ;;  %v7124_v29 = vsel %vm2066_vm13, 1.0, %v13403_v36  ;;  %v7117_v47 = vsel %vm1963_vm10, 1.0, %v13403_v36  ;;  %vm1956_vm13 = vcmp.eq.s32.totalorder %v9156_v40, %v9904_v16  ;;  %vm1960_vm3 = vcmp.eq.s32.totalorder %v9156_v40, %v9946_v11 }
 0x16e   : > { %7981 = vmatpush3.msra.mxu0 %v9900_v30  ;;  %v2114_v28 = vadd.f32 %v7124_v29, %v2002_v45  ;;  %v7105_v29 = vsel %vm1855_vm6, 1.0, %v13403_v36  ;;  %v13411_v45 = vld [vmem:[#allocation11_spill] sm:$0xff]  ;;  %v10184_v35 = vadd.f32 %v7117_v47, %v7101_v59  ;;  %vm1969_vm4 = vcmp.eq.s32.totalorder %v9156_v40, %v9948_v52  ;;  %v13415_v59 = vld [vmem:[#allocation5_spill] sm:$0xff] }
 0x16f   : > { %8635 = vset.pattern.permute.xlu1 %v13235_v14  ;;  %v10112_v34 = vpop.permute.xlu1 %2034  ;;  %3789 = vperm.xlu0 %8650, %v13404_v9   ;;  %v13409_v14 = vld [vmem:[#allocation10_spill] sm:$0xff]  ;;  %vm1857_vm11 = vcmp.eq.s32.totalorder %v9156_v40, %v13411_v45  ;;  %vm1962_vm5 = vcmp.eq.s32.totalorder %v9156_v40, %v9958_v3  ;;  %vm2067_vm6 = vcmp.eq.s32.totalorder %v9156_v40, %v9962_v37 }
 0x170   : > { %3768 = vperm.xlu1 %8635, %v9799_v13   ;;  %v2132_v18 = vpop.permute.xlu0 %2131  ;;  %8038 = vmatprep.subr.mxu0 %v13406_v44  ;;  %vm1955_vm9 = vcmp.eq.s32.totalorder %v9156_v40, %v13409_v14  ;;  %v7115_v14 = vsel %vm1961_vm7, 1.0, %v13403_v36  ;;  %v7107_v57 = vsel %vm1857_vm11, 1.0, %v13403_v36  ;;  %v13414_v45 = vld [vmem:[#allocation22_spill] sm:$0xff]  ;;  %vm2071_vm7 = vcmp.eq.s32.totalorder %v9156_v40, %v10112_v34 }
 0x171   : > { %vm2178_vm8 = vcmp.eq.s32.totalorder %v9156_v40, %v2132_v18  ;;  %v7109_v42 = vsel %vm1955_vm9, 1.0, %v13403_v36  ;;  %v10168_v55 = vadd.f32 %v7115_v14, %v7099_v63  ;;  %vm1967_vm2 = vcmp.eq.s32.totalorder %v9156_v40, %v13414_v45 }
 0x172   : > { %v7140_v23 = vsel %vm2178_vm8, 1.0, %v13403_v36  ;;  %v7112_v14 = vsel %vm1958_vm15, 1.0, %v13403_v36  ;;  %v7114_v45 = vsel %vm1960_vm3, 1.0, %v13403_v36  ;;  %v7125_v37 = vsel %vm2067_vm6, 1.0, %v13403_v36 }
 0x173   : > { %v2226_v10 = vadd.f32 %v7140_v23, %v2114_v28  ;;  %v10145_v25 = vpop.permute.xlu1 %2040  ;;  %3795 = vperm.xlu0 %8650, %v9909_v20   ;;  %v13412_v28 = vld [vmem:[#allocation19_spill] sm:$0xff]  ;;  %v7127_v20 = vsel %vm2069_vm12, 1.0, %v13403_v36  ;;  %v2006_v44 = vadd.f32 %v7112_v14, %v10035_v50  ;;  %v2008_v50 = vadd.f32 %v7114_v45, %v10045_v53 }
 0x174   : > { %8636 = vset.pattern.permute.xlu1 %v13401_v60  ;;  %v2141_v18 = vpop.permute.xlu0 %2140  ;;  %vm1965_vm14 = vcmp.eq.s32.totalorder %v9156_v40, %v13412_v28  ;;  %v2117_v11 = vadd.f32 %v7127_v20, %v2005_v54  ;;  %v7123_v20 = vsel %vm1969_vm4, 1.0, %v13403_v36  ;;  %vm1964_vm8 = vcmp.eq.s32.totalorder %v9156_v40, %v9969_v12 }
 0x175   : > { %v2248_v19 = vsel %vm615_vm0, %v2226_v10, 0  ;;  %3553 = vperm.xlu1 %8636, %v9841_v31   ;;  %vm2181_vm1 = vcmp.eq.s32.totalorder %v9156_v40, %v2141_v18  ;;  %v2003_v10 = vadd.f32 %v7109_v42, %v10027_v51  ;;  %v7119_v51 = vsel %vm1965_vm14, 1.0, %v13403_v36 }
 0x176   : > { %v10165_v23 = vand.u32 4294901760, %v2248_v19  ;;  %v7143_v16 = vsel %vm2181_vm1, 1.0, %v13403_v36  ;;  %v10216_v28 = vadd.f32 %v7119_v51, %v7103_v48  ;;  %v7116_v48 = vsel %vm1962_vm5, 1.0, %v13403_v36 }
 0x177   : > { %v10173_v41 = vpop.permute.xlu1 %2046  ;;  %3801 = vperm.xlu0 %8650, %v9932_v56   ;;  %v7110_v56 = vsel %vm1956_vm13, 1.0, %v13403_v36  ;;  %vm2070_vm9 = vcmp.eq.s32.totalorder %v9156_v40, %v9972_v61  ;;  %vm1966_vm11 = vcmp.eq.s32.totalorder %v9156_v40, %v9979_v38  ;;  %v7129_v53 = vsel %vm2071_vm7, 1.0, %v13403_v36 }
 0x178   : > { %13413 = vst [vmem:[#allocation6_spill] sm:$0xff] %v10165_v23  ;;  %v10181_v9 = vsub.f32 %v2248_v19, %v10165_v23  ;;  %8014 = vmatprep.mubr.f32.mxu1 %v10165_v23  ;;  %v2147_v63 = vpop.permute.xlu0 %2146  ;;  %v7121_v19 = vsel %vm1967_vm2, 1.0, %v13403_v36  ;;  %v10214_v18 = vadd.f32 %v7110_v56, %v10062_v4  ;;  %vm2073_vm12 = vcmp.eq.s32.totalorder %v9156_v40, %v10145_v25 }
 0x179   : > { %8637 = vset.pattern.permute.xlu1 %v13402_v2  ;;  %v10229_v54 = vadd.f32 %v7121_v19, %v7105_v29  ;;  %vm2183_vm10 = vcmp.eq.s32.totalorder %v9156_v40, %v2147_v63  ;;  %v13249_v29 = vmov 13   ;;  %v2010_v51 = vadd.f32 %v7116_v48, %v10077_v15 }
 0x17a   : > { %3662 = vperm.xlu1 %8637, %v13415_v59   ;;  %v13416_v23 = vand.u32 4294901760, %v10181_v9  ;;  %vm2072_vm13 = vcmp.eq.s32.totalorder %v9156_v40, %v9982_v39  ;;  %v7118_v34 = vsel %vm1964_vm8, 1.0, %v13403_v36  ;;  %v7128_v14 = vsel %vm2070_vm9, 1.0, %v13403_v36 }
 0x17b   : > { %v10210_v47 = vpop.permute.xlu1 %2052  ;;  %3804 = vperm.xlu0 %8650, %v9752_v58   ;;  %v2229_v58 = vadd.f32 %v7143_v16, %v2117_v11  ;;  %v13417_v15 = vmov 11   ;;  %v7120_v39 = vsel %vm1966_vm11, 1.0, %v13403_v36  ;;  %vm1968_vm15 = vcmp.eq.s32.totalorder %v9156_v40, %v9990_v7 }
 0x17c   : > { %v2153_v42 = vpop.permute.xlu0 %2152  ;;  %v2367_v3 = vsub.f32 %v10181_v9, %v13416_v23  ;;  %v10243_v23 = vadd.f32 %v7123_v20, %v7107_v57  ;;  %v2115_v57 = vadd.f32 %v7125_v37, %v2003_v10  ;;  %v2119_v12 = vadd.f32 %v7129_v53, %v10153_v1 }
 0x17d   : > { %v2257_v38 = vsel %vm615_vm0, %v2229_v58, 0  ;;  %vm2185_vm14 = vcmp.eq.s32.totalorder %v9156_v40, %v2153_v42  ;;  %v7131_v61 = vsel %vm2073_vm12, 1.0, %v13403_v36  ;;  %v7130_v63 = vsel %vm2072_vm13, 1.0, %v13403_v36 }
 0x17e   : > { %3665 = vperm.xlu1 %8637, %v9841_v31   ;;  %v2368_v4 = vand.u32 4294901760, %v2367_v3  ;;  %vm2074_vm1 = vcmp.eq.s32.totalorder %v9156_v40, %v9993_v8  ;;  %vm2076_vm2 = vcmp.eq.s32.totalorder %v9156_v40, %v10003_v33  ;;  %v10289_v16 = vand.u32 4294901760, %v2257_v38 }
 0x17f   : > { %v10240_v52 = vpop.permute.xlu1 %2058  ;;  %8657 = vset.pattern.permute.xlu0 %v13249_v29  ;;  %v13248_v19 = vmov 12   ;;  %v2012_v25 = vadd.f32 %v7118_v34, %v10095_v32  ;;  %vm2068_vm3 = vcmp.eq.s32.totalorder %v9156_v40, %v10017_v43  ;;  %v7147_v45 = vsel %vm2185_vm14, 1.0, %v13403_v36 }
 0x180   : > { %7982 = vmatprep.mubr.f32.mxu0 %v2368_v4  ;;  %v10253_v56 = vpop.permute.xlu0 %2158  ;;  %5172 = vperm.xlu0 %8657, %v9621_v62   ;;  %v7145_v62 = vsel %vm2183_vm10, 1.0, %v13403_v36  ;;  %v10301_v3 = vadd.f32 %v7128_v14, %v2006_v44  ;;  %v2014_v20 = vadd.f32 %v7120_v39, %v10106_v46  ;;  %v7122_v58 = vsel %vm1968_vm15, 1.0, %v13403_v36 }
 0x181   : > { %v2231_v11 = vadd.f32 %v7145_v62, %v2119_v12  ;;  %v2121_v32 = vadd.f32 %v7131_v61, %v10168_v55  ;;  %v10309_v48 = vadd.f32 %v7130_v63, %v2008_v50  ;;  %v7132_v43 = vsel %vm2074_vm1, 1.0, %v13403_v36 }
 0x182   : > { %8638 = vset.pattern.permute.xlu1 %v13417_v15  ;;  %vm2078_vm4 = vcmp.eq.s32.totalorder %v9156_v40, %v10019_v6  ;;  %v7126_v7 = vsel %vm2068_vm3, 1.0, %v13403_v36  ;;  %v10324_v46 = vsub.f32 %v2257_v38, %v10289_v16  ;;  %vm2075_vm5 = vcmp.eq.s32.totalorder %v9156_v40, %v10173_v41 }
 0x183   : > { %3774 = vperm.xlu1 %8638, %v13415_v59   ;;  %v10282_v10 = vpop.permute.xlu1 %2064  ;;  %v2233_v8 = vadd.f32 %v7147_v45, %v2121_v32  ;;  %v10332_v33 = vadd.f32 %v7122_v58, %v10119_v22  ;;  %v2263_v42 = vsel %vm615_vm0, %v2231_v11, 0  ;;  %vm2077_vm6 = vcmp.eq.s32.totalorder %v9156_v40, %v10210_v47 }
 0x184   : > { %v10291_v1 = vpop.permute.xlu0 %2164  ;;  %8658 = vset.pattern.permute.xlu0 %v13248_v19  ;;  %v10339_v37 = vadd.f32 %v7132_v43, %v2010_v51  ;;  %vm2187_vm8 = vcmp.eq.s32.totalorder %v9156_v40, %v10253_v56  ;;  %v2116_v22 = vadd.f32 %v7126_v7, %v10214_v18  ;;  %v7136_v47 = vsel %vm2078_vm4, 1.0, %v13403_v36 }
 0x185   : > { %5057 = vperm.xlu0 %8658, %v9779_v49   ;;  %v7134_v49 = vsel %vm2076_vm2, 1.0, %v13403_v36  ;;  %v10355_v51 = vand.u32 4294901760, %v2263_v42  ;;  %v7135_v38 = vsel %vm2077_vm6, 1.0, %v13403_v36  ;;  %v2269_v56 = vsel %vm615_vm0, %v2233_v8, 0 }
 0x186   : > { %v10341_v4 = vadd.f32 %v7134_v49, %v2012_v25  ;;  %v2396_v34 = vand.u32 4294901760, %v10324_v46  ;;  %vm2079_vm9 = vcmp.eq.s32.totalorder %v9156_v40, %v10240_v52  ;;  %v7149_v6 = vsel %vm2187_vm8, 1.0, %v13403_v36 }
 0x187   : > { %8639 = vset.pattern.permute.xlu1 %v13401_v60  ;;  %vm2189_vm11 = vcmp.eq.s32.totalorder %v9156_v40, %v10291_v1  ;;  %v10376_v12 = vadd.f32 %v7136_v47, %v2014_v20  ;;  %v2125_v61 = vadd.f32 %v7135_v38, %v10216_v28  ;;  %v10379_v63 = vand.u32 4294901760, %v2269_v56 }
 0x188   : > { %3559 = vperm.xlu1 %8639, %v9863_v27   ;;  %v2135_v44 = vpop.permute.xlu1 %2134  ;;  %v10329_v55 = vpop.permute.xlu0 %2170  ;;  %v10382_v11 = vsub.f32 %v2263_v42, %v10355_v51  ;;  %v7151_v28 = vsel %vm2189_vm11, 1.0, %v13403_v36  ;;  %v10401_v52 = vsub.f32 %v10324_v46, %v2396_v34  ;;  %vm2081_vm13 = vcmp.eq.s32.totalorder %v9156_v40, %v10282_v10 }
 0x189   : > { %vm2179_vm7 = vcmp.eq.s32.totalorder %v9156_v40, %v2135_v44  ;;  %5063 = vperm.xlu0 %8658, %v9799_v13   ;;  %v7133_v13 = vsel %vm2075_vm5, 1.0, %v13403_v36  ;;  %v10413_v7 = vsub.f32 %v2269_v56, %v10379_v63  ;;  %vm2191_vm14 = vcmp.eq.s32.totalorder %v9156_v40, %v10329_v55 }
 0x18a   : > { %v7141_v50 = vsel %vm2179_vm7, 1.0, %v13403_v36  ;;  %v2123_v14 = vadd.f32 %v7133_v13, %v10184_v35  ;;  %vm2080_vm1 = vcmp.eq.s32.totalorder %v9156_v40, %v10055_v21  ;;  %v7153_v10 = vsel %vm2191_vm14, 1.0, %v13403_v36 }
 0x18b   : > { %v2227_v53 = vadd.f32 %v7141_v50, %v2115_v57  ;;  %v2237_v50 = vadd.f32 %v7151_v28, %v2125_v61 }
 0x18c   : > { %8640 = vset.pattern.permute.xlu1 %v13402_v2  ;;  %v2138_v18 = vpop.permute.xlu1 %2137  ;;  %v10367_v57 = vpop.permute.xlu0 %2176  ;;  %v2235_v35 = vadd.f32 %v7149_v6, %v2123_v14 }
 0x18d   : > { %v2251_v41 = vsel %vm615_vm0, %v2227_v53, 0  ;;  %3668 = vperm.xlu1 %8640, %v9649_v24   ;;  %vm2180_vm10 = vcmp.eq.s32.totalorder %v9156_v40, %v2138_v18  ;;  %5066 = vperm.xlu0 %8658, %v9819_v0   ;;  %v7137_v0 = vsel %vm2079_vm9, 1.0, %v13403_v36  ;;  %v13257_v53 = vand.u32 4294901760, %v10382_v11 }
 0x18e   : > { %v10373_v62 = vand.u32 4294901760, %v2251_v41  ;;  %v7142_v39 = vsel %vm2180_vm10, 1.0, %v13403_v36  ;;  %v2127_v8 = vadd.f32 %v7137_v0, %v10229_v54  ;;  %v2275_v42 = vsel %vm615_vm0, %v2235_v35, 0 }
 0x18f   : > { %v2228_v25 = vadd.f32 %v7142_v39, %v2116_v22  ;;  %v7139_v54 = vsel %vm2081_vm13, 1.0, %v13403_v36  ;;  %v10451_v6 = vand.u32 4294901760, %v2275_v42  ;;  %vm2193_vm2 = vcmp.eq.s32.totalorder %v9156_v40, %v10367_v57 }
 0x190   : > { %v10389_v1 = vsub.f32 %v2251_v41, %v10373_v62  ;;  %v2144_v45 = vpop.permute.xlu1 %2143  ;;  %8015 = vmatmul.mubr.f32.vlgmr.msra.gmra.mxu1 %v10373_v62  ;;  %v2129_v55 = vadd.f32 %v7139_v54, %v10243_v23  ;;  %v2281_v39 = vsel %vm615_vm0, %v2237_v50, 0  ;;  %v13418_v23 = vld [vmem:[#allocation12_spill] sm:$0xff]  ;;  %v7155_v35 = vsel %vm2193_vm2, 1.0, %v13403_v36  ;;  %v13419_v50 = vld [vmem:[#allocation17_spill] sm:$0xff] }
 0x191   : > { %v2254_v20 = vsel %vm615_vm0, %v2228_v25, 0  ;;  %3671 = vperm.xlu1 %8640, %v9863_v27   ;;  %vm2182_vm12 = vcmp.eq.s32.totalorder %v9156_v40, %v2144_v45  ;;  %8071 = vmatpush3.msra.mxu1 %v9768_v26  ;;  %v13251_v25 = vand.u32 4294901760, %v10413_v7 }
 0x192   : > { %v10396_v58 = vpop.permute.xlu0 %3429  ;;  %v2376_v32 = vand.u32 4294901760, %v10389_v1  ;;  %v10407_v43 = vand.u32 4294901760, %v2254_v20  ;;  %v7144_v49 = vsel %vm2182_vm12, 1.0, %v13403_v36  ;;  %8072 = vmatprep.subr.mxu1 %v9848_v17  ;;  %5069 = vperm.xlu0 %8658, %v13415_v59  }
 0x193   : > { %v2230_v44 = vadd.f32 %v7144_v49, %v10301_v3  ;;  %8073 = vmatpush3.msra.mxu1 %v9848_v17  ;;  %vm3474_vm8 = vcmp.eq.s32.totalorder %v9156_v40, %v10396_v58 }
 0x194   : > { %v2377_v22 = vsub.f32 %v10389_v1, %v2376_v32  ;;  %v10425_v59 = vsub.f32 %v2254_v20, %v10407_v43  ;;  %v2150_v47 = vpop.permute.xlu1 %2149  ;;  %8017 = vmatprep.mubr.f32.mxu1 %v10407_v43  ;;  %8074 = vmatprep.subr.mxu1 %v9874_v5 }
 0x195   : > { %v2260_v3 = vsel %vm615_vm0, %v2230_v44, 0  ;;  %8641 = vset.pattern.permute.xlu1 %v13417_v15  ;;  %vm2184_vm15 = vcmp.eq.s32.totalorder %v9156_v40, %v2150_v47  ;;  %8018 = vmatmul.mubr.f32.gmra.mxu1 %v10289_v16  ;;  %v10488_v44 = vand.u32 4294901760, %v2281_v39  ;;  %v13420_v47 = vld [vmem:[#allocation8_spill] sm:$0xff] }
 0x196   : > { %v10437_v13 = vpop.permute.xlu0 %3438  ;;  %v2378_v38 = vand.u32 4294901760, %v2377_v22  ;;  %v10446_v56 = vand.u32 4294901760, %v2260_v3  ;;  %v7146_v18 = vsel %vm2184_vm15, 1.0, %v13403_v36  ;;  %3780 = vperm.xlu1 %8641, %v9649_v24   ;;  %8075 = vmatpush3.msra.mxu1 %v9874_v5  ;;  %v2386_v14 = vand.u32 4294901760, %v10425_v59 }
 0x197   : > { %v2232_v41 = vadd.f32 %v7146_v18, %v10309_v48  ;;  %8076 = vmatprep.subr.mxu1 %v9900_v30  ;;  %5072 = vperm.xlu0 %8658, %v9841_v31   ;;  %v2239_v48 = vadd.f32 %v7153_v10, %v2127_v8  ;;  %v10486_v8 = vsub.f32 %v2275_v42, %v10451_v6 }
 0x198   : > { %v10462_v24 = vsub.f32 %v2260_v3, %v10446_v56  ;;  %v2156_v61 = vpop.permute.xlu1 %2155  ;;  %7983 = vmatmul.mubr.f32.vlgmr.msra.gmra.mxu0 %v2378_v38  ;;  %8020 = vmatprep.mubr.f32.mxu1 %v10446_v56  ;;  %v2387_v31 = vsub.f32 %v10425_v59, %v2386_v14  ;;  %v2398_v38 = vand.u32 4294901760, %v10401_v52  ;;  %v2241_v18 = vadd.f32 %v7155_v35, %v2129_v55 }
 0x199   : > { %v2266_v0 = vsel %vm615_vm0, %v2232_v41, 0  ;;  %vm2186_vm3 = vcmp.eq.s32.totalorder %v9156_v40, %v2156_v61  ;;  %8021 = vmatmul.mubr.f32.gmra.mxu1 %v10355_v51  ;;  %8039 = vmatpush3.msra.mxu0 %v13418_v23  ;;  %v2287_v10 = vsel %vm615_vm0, %v2239_v48, 0  ;;  %v13422_v48 = vld [vmem:[#allocation13_spill] sm:$0xff]  ;;  %v10517_v55 = vsub.f32 %v2281_v39, %v10488_v44 }
 0x19a   : > { %v10477_v45 = vand.u32 4294901760, %v2266_v0  ;;  %v7148_v28 = vsel %vm2186_vm3, 1.0, %v13403_v36  ;;  %8642 = vset.pattern.permute.xlu1 %v13401_v60  ;;  %v10481_v20 = vpop.permute.xlu0 %3444  ;;  %v13260_v49 = vand.u32 4294901760, %v10462_v24  ;;  %8077 = vmatpush3.msra.mxu1 %v9900_v30  ;;  %v2388_v22 = vand.u32 4294901760, %v2387_v31 }
 0x19b   : > { %v2234_v57 = vadd.f32 %v7148_v28, %v10339_v37  ;;  %3565 = vperm.xlu1 %8642, %v13419_v50   ;;  %8040 = vmatprep.subr.mxu0 %v13420_v47  ;;  %v2417_v37 = vsub.f32 %v10382_v11, %v13257_v53  ;;  %v2437_v28 = vsub.f32 %v10413_v7, %v13251_v25  ;;  %v13255_v25 = vand.u32 4294901760, %v10517_v55 }
 0x19c   : > { %v10494_v54 = vsub.f32 %v2266_v0, %v10477_v45  ;;  %v2162_v3 = vpop.permute.xlu1 %2161  ;;  %8023 = vmatprep.mubr.f32.mxu1 %v10477_v45  ;;  %v2407_v42 = vsub.f32 %v10462_v24, %v13260_v49  ;;  %8041 = vmatpush3.msra.mxu0 %v13420_v47 }
 0x19d   : > { %v2272_v41 = vsel %vm615_vm0, %v2234_v57, 0  ;;  %vm2188_vm4 = vcmp.eq.s32.totalorder %v9156_v40, %v2162_v3  ;;  %7985 = vmatprep.mubr.f32.mxu0 %v2388_v22  ;;  %8024 = vmatmul.mubr.f32.gmra.mxu1 %v10379_v63  ;;  %v13253_v57 = vand.u32 4294901760, %v10486_v8  ;;  %v10526_v22 = vand.u32 4294901760, %v2287_v10  ;;  %v10532_v3 = vld [vmem:[%s8883_s25 + $0x40] sm:$0xff] }
 0x19e   : > { %v10509_v52 = vand.u32 4294901760, %v2272_v41  ;;  %v7150_v61 = vsel %vm2188_vm4, 1.0, %v13403_v36  ;;  %7986 = vmatmul.mubr.f32.gmra.mxu0 %v2398_v38  ;;  %v10512_v0 = vpop.permute.xlu0 %3450  ;;  %v2408_v31 = vand.u32 4294901760, %v2407_v42  ;;  %v13252_v23 = vand.u32 4294901760, %v10494_v54  ;;  %8042 = vmatprep.subr.mxu0 %v13422_v48 }
 0x19f   : > { %13421 = vst [vmem:[#allocation9_spill] sm:$0xff] %v10512_v0  ;;  %v2236_v35 = vadd.f32 %v7150_v61, %v10341_v4  ;;  %8643 = vset.pattern.permute.xlu1 %v13402_v2  ;;  %8043 = vmatpush3.msra.mxu0 %v13422_v48  ;;  %v2418_v39 = vand.u32 4294901760, %v2417_v37  ;;  %v7138_v42 = vsel %vm2080_vm1, 1.0, %v13403_v36  ;;  %v2293_v61 = vsel %vm615_vm0, %v2241_v18, 0  ;;  %v13423_v48 = vld [vmem:[#allocation21_spill] sm:$0xff] }
 0x1a0   : > { %v10529_v47 = vsub.f32 %v2272_v41, %v10509_v52  ;;  %3674 = vperm.xlu1 %8643, %v10532_v3   ;;  %v2168_v4 = vpop.permute.xlu1 %2167  ;;  %7988 = vmatprep.mubr.f32.mxu0 %v2408_v31  ;;  %v2427_v38 = vsub.f32 %v10494_v54, %v13252_v23  ;;  %v2438_v29 = vand.u32 4294901760, %v2437_v28 }
 0x1a1   : > { %v2278_v41 = vsel %vm615_vm0, %v2236_v35, 0  ;;  %vm2190_vm5 = vcmp.eq.s32.totalorder %v9156_v40, %v2168_v4  ;;  %8026 = vmatprep.mubr.f32.mxu1 %v10509_v52  ;;  %8044 = vmatprep.subr.mxu0 %v13423_v48  ;;  %v2457_v4 = vsub.f32 %v10486_v8, %v13253_v57 }
 0x1a2   : > { %v10547_v37 = vand.u32 4294901760, %v2278_v41  ;;  %v7152_v31 = vsel %vm2190_vm5, 1.0, %v13403_v36  ;;  %7989 = vmatmul.mubr.f32.gmra.mxu0 %v2418_v39  ;;  %8027 = vmatmul.mubr.f32.gmra.mxu1 %v10451_v6  ;;  %v10551_v19 = vpop.permute.xlu0 %3456  ;;  %v2428_v21 = vand.u32 4294901760, %v2427_v38  ;;  %v13254_v18 = vand.u32 4294901760, %v10529_v47 }
 0x1a3   : > { %13424 = vst [vmem:[#allocation14_spill] sm:$0xff] %v10551_v19  ;;  %v2238_v35 = vadd.f32 %v7152_v31, %v10376_v12  ;;  %8045 = vmatpush3.msra.mxu0 %v13423_v48  ;;  %8134 = vmatprep.subr.mxu1 %v9768_v26  ;;  %v10562_v39 = vsub.f32 %v2287_v10, %v10526_v22  ;;  %v10564_v38 = vand.u32 4294901760, %v2293_v61  ;;  %v8707_v10 = vld [vmem:[%s8883_s25 + $0x30] sm:$0xff] }
 0x1a4   : > { %v10567_v23 = vsub.f32 %v2278_v41, %v10547_v37  ;;  %3677 = vperm.xlu1 %8643, %v13419_v50   ;;  %v2174_v12 = vpop.permute.xlu1 %2173  ;;  %7991 = vmatprep.mubr.f32.mxu0 %v2428_v21  ;;  %v2447_v28 = vsub.f32 %v10529_v47, %v13254_v18  ;;  %v2128_v48 = vadd.f32 %v7138_v42, %v10332_v33  ;;  %v13426_v18 = vld [vmem:[#allocation7_spill] sm:$0xff] }
 0x1a5   : > { %v2284_v31 = vsel %vm615_vm0, %v2238_v35, 0  ;;  %vm2192_vm6 = vcmp.eq.s32.totalorder %v9156_v40, %v2174_v12  ;;  %8029 = vmatprep.mubr.f32.mxu1 %v10547_v37  ;;  %5075 = vperm.xlu0 %8658, %v8707_v10   ;;  %v2458_v35 = vand.u32 4294901760, %v2457_v4  ;;  %v2477_v12 = vsub.f32 %v10517_v55, %v13255_v25 }
 0x1a6   : > { %v10578_v41 = vand.u32 4294901760, %v2284_v31  ;;  %v7154_v50 = vsel %vm2192_vm6, 1.0, %v13403_v36  ;;  %7992 = vmatmul.mubr.f32.gmra.mxu0 %v2438_v29  ;;  %8030 = vmatmul.mubr.f32.gmra.mxu1 %v10488_v44  ;;  %v10582_v21 = vpop.permute.xlu0 %3462  ;;  %v2448_v57 = vand.u32 4294901760, %v2447_v28  ;;  %v13256_v33 = vand.u32 4294901760, %v10567_v23 }
 0x1a7   : > { %13425 = vst [vmem:[#allocation10_spill] sm:$0xff] %v10582_v21  ;;  %v2240_v42 = vadd.f32 %v7154_v50, %v2128_v48  ;;  %8102 = vmatprep.subr.mxu0 %v13426_v18  ;;  %v10590_v10 = vsub.f32 %v2293_v61, %v10564_v38  ;;  %v13259_v4 = vand.u32 4294901760, %v10562_v39  ;;  %v8712_v21 = vld [vmem:[%s8883_s25 + $0x60] sm:$0xff] }
 0x1a8   : > { %v10593_v29 = vsub.f32 %v2284_v31, %v10578_v41  ;;  %8644 = vset.pattern.permute.xlu1 %v13417_v15  ;;  %7994 = vmatprep.mubr.f32.mxu0 %v2448_v57  ;;  %v2467_v28 = vsub.f32 %v10567_v23, %v13256_v33  ;;  %v2478_v33 = vand.u32 4294901760, %v2477_v12  ;;  %v13428_v12 = vld [vmem:[#allocation20_spill] sm:$0xff] }
 0x1a9   : > { %v2290_v48 = vsel %vm615_vm0, %v2240_v42, 0  ;;  %3786 = vperm.xlu1 %8644, %v10532_v3   ;;  %8032 = vmatprep.mubr.f32.mxu1 %v10578_v41  ;;  %v2497_v53 = vsub.f32 %v10562_v39, %v13259_v4  ;;  %v13429_v4 = vand.u32 4294901760, %v10181_v9 }
 0x1aa   : > { %v10603_v61 = vand.u32 4294901760, %v2290_v48  ;;  %v10605_v50 = vpop.permute.xlu1 %3426  ;;  %7995 = vmatmul.mubr.f32.gmra.mxu0 %v2458_v35  ;;  %8033 = vmatmul.mubr.f32.gmra.mxu1 %v10526_v22  ;;  %v10608_v57 = vpop.permute.xlu0 %3468  ;;  %v2468_v31 = vand.u32 4294901760, %v2467_v28  ;;  %v13258_v25 = vand.u32 4294901760, %v10593_v29  ;;  %v13261_v28 = vand.u32 4294901760, %v10590_v10 }
 0x1ab   : > { %13427 = vst [vmem:[#allocation16_spill] sm:$0xff] %v10608_v57  ;;  %5078 = vperm.xlu0 %8658, %v9863_v27   ;;  %v2498_v49 = vand.u32 4294901760, %v2497_v53  ;;  %v8708_v53 = vld [vmem:[%s8883_s25 + $0x50] sm:$0xff]  ;;  %vm3473_vm10 = vcmp.eq.s32.totalorder %v9156_v40, %v10605_v50 }
 0x1ac   : > { %v10613_v42 = vsub.f32 %v2290_v48, %v10603_v61  ;;  %7997 = vmatprep.mubr.f32.mxu0 %v2468_v31  ;;  %8035 = vmatprep.mubr.f32.mxu1 %v10603_v61  ;;  %v2487_v35 = vsub.f32 %v10593_v29, %v13258_v25 }
 0x1ad   : > { %8645 = vset.pattern.permute.xlu1 %v13401_v60 }
 0x1ae   : > { %3571 = vperm.xlu1 %8645, %v13428_v12   ;;  %v10625_v27 = vpop.permute.xlu1 %3432  ;;  %7998 = vmatmul.mubr.f32.gmra.mxu0 %v2478_v33  ;;  %v2488_v48 = vand.u32 4294901760, %v2487_v35  ;;  %v13262_v31 = vand.u32 4294901760, %v10613_v42  ;;  %v2517_v35 = vsub.f32 %v10590_v10, %v13261_v28 }
 0x1af   : > { %8036 = vmatmul.mubr.f32.gmra.mxu1 %v10564_v38  ;;  %v10629_v25 = vpop.permute.xlu0 %3653  ;;  %5081 = vperm.xlu0 %8658, %v10532_v3   ;;  %vm3475_vm3 = vcmp.eq.s32.totalorder %v9156_v40, %v10625_v27 }
 0x1b0   : > { %8078 = vmatprep.mubr.f32.mxu1 %v13429_v4  ;;  %8000 = vmatprep.mubr.f32.mxu0 %v2488_v48  ;;  %v2507_v33 = vsub.f32 %v10613_v42, %v13262_v31  ;;  %v7227_v48 = vld [vmem:[%s13183_s1 + $0x58] sm:$0xff]  ;;  %v2518_v28 = vand.u32 4294901760, %v2517_v35  ;;  %v13432_v35 = vand.u32 4294901760, %v10382_v11  ;;  %vm3698_vm12 = vcmp.eq.s32.totalorder %v9156_v40, %v10629_v25 }
 0x1b1   : > { %v10666_v31 = vld [vmem:[%s8883_s25 + $0x58] sm:$0xff] }
 0x1b2   : > { %8646 = vset.pattern.permute.xlu1 %v13402_v2  ;;  %v10641_v12 = vpop.permute.xlu1 %3435  ;;  %8001 = vmatmul.mubr.f32.gmra.mxu0 %v2498_v49  ;;  %v2508_v3 = vand.u32 4294901760, %v2507_v33  ;;  %v10655_v49 = vld [vmem:[%s8883_s25 + $0x48] sm:$0xff]  ;;  %v10661_v33 = vand.u32 4294901760, %v7227_v48 }
 0x1b3   : > { %8079 = vmatmul.mubr.f32.vlgmr.msra.gmra.mxu1 %v2376_v32  ;;  %3680 = vperm.xlu1 %8646, %v8708_v53   ;;  %v10646_v4 = vpop.permute.xlu0 %3656  ;;  %vm3476_vm2 = vcmp.eq.s32.totalorder %v9156_v40, %v10641_v12  ;;  %v7162_v12 = vsel %vm3475_vm3, 1.0, %v13403_v36 }
 0x1b4   : > { %8081 = vmatprep.mubr.f32.mxu1 %v2386_v14  ;;  %8003 = vmatprep.mubr.f32.mxu0 %v2508_v3  ;;  %vm3699_vm5 = vcmp.eq.s32.totalorder %v9156_v40, %v10646_v4 }
 0x1b5   : > { %8135 = vmatpush3.msra.mxu1 %v9768_v26  ;;  %5084 = vperm.xlu0 %8658, %v10655_v49   ;;  %v13430_v26 = vand.u32 4294901760, %v10462_v24 }
 0x1b6   : > { %v10658_v32 = vpop.permute.xlu1 %3441  ;;  %8004 = vmatmul.mubr.f32.gmra.mxu0 %v2518_v28  ;;  %8136 = vmatprep.subr.mxu1 %v9848_v17 }
 0x1b7   : > { %8082 = vmatmul.mubr.f32.gmra.mxu1 %v2396_v34  ;;  %3683 = vperm.xlu1 %8646, %v10666_v31   ;;  %v10680_v34 = vsub.f32 %v7227_v48, %v10661_v33 }
 0x1b8   : > { %8046 = vmatprep.mubr.f32.mxu0 %v10181_v9  ;;  %8084 = vmatprep.mubr.f32.mxu1 %v13430_v26  ;;  %v10672_v14 = vpop.permute.xlu0 %3538  ;;  %v13433_v9 = vand.u32 4294901760, %v10494_v54 }
 0x1b9   : > { %8137 = vmatpush3.msra.mxu1 %v9848_v17  ;;  %5087 = vperm.xlu0 %8658, %v8708_v53   ;;  %vm3585_vm7 = vcmp.eq.s32.totalorder %v9156_v40, %v10672_v14 }
 0x1ba   : > { %v10675_v28 = vpop.permute.xlu1 %3447  ;;  %8047 = vmatmul.mubr.f32.vlgmr.msra.gmra.mxu0 %v10389_v1  ;;  %8138 = vmatprep.subr.mxu1 %v9874_v5  ;;  %v10694_v1 = vand.u32 4294901760, %v10680_v34 }
 0x1bb   : > { %13431 = vst [vmem:[#allocation11_spill] sm:$0xff] %v10675_v28  ;;  %8085 = vmatmul.mubr.f32.gmra.mxu1 %v13432_v35  ;;  %8647 = vset.pattern.permute.xlu1 %v13417_v15  ;;  %v13439_v35 = vand.u32 4294901760, %v10486_v8 }
 0x1bc   : > { %8049 = vmatprep.mubr.f32.mxu0 %v10425_v59  ;;  %8087 = vmatprep.mubr.f32.mxu1 %v13433_v9  ;;  %13435 = vst [vmem:[#allocation22_spill] sm:$0xff] %v10694_v1  ;;  %v10696_v3 = vpop.permute.xlu0 %3547  ;;  %v13436_v59 = vand.u32 4294901760, %v10413_v7  ;;  %v13440_v9 = vand.u32 4294901760, %v10567_v23 }
 0x1bd   : > { %3792 = vperm.xlu1 %8647, %v8708_v53   ;;  %8139 = vmatpush3.msra.mxu1 %v9874_v5  ;;  %v7226_v5 = vld [vmem:[%s13183_s1 + $0x50] sm:$0xff]  ;;  %v13437_v53 = vand.u32 4294901760, %v10529_v47  ;;  %vm3588_vm14 = vcmp.eq.s32.totalorder %v9156_v40, %v10696_v3  ;;  %v10936_v3 = vld [vmem:[%s8883_s25 + $0x8] sm:$0xff] }
 0x1be   : > { %v10689_v17 = vpop.permute.xlu1 %3453  ;;  %8050 = vmatmul.mubr.f32.gmra.mxu0 %v10324_v46  ;;  %8140 = vmatprep.subr.mxu1 %v9900_v30  ;;  %v10710_v46 = vld [vmem:[%s8883_s25 + $0x68] sm:$0xff]  ;;  %v10718_v26 = vand.u32 4294901760, %v7226_v5 }
 0x1bf   : > { %13434 = vst [vmem:[#allocation19_spill] sm:$0xff] %v10689_v17  ;;  %8088 = vmatmul.mubr.f32.gmra.mxu1 %v13436_v59  ;;  %8052 = vmatprep.mubr.f32.mxu0 %v10462_v24  ;;  %v4183_v24 = vsub.f32 %v10680_v34, %v10694_v1  ;;  %v13441_v59 = vld [vmem:[#allocation18_spill] sm:$0xff] }
 0x1c0   : > { %8090 = vmatprep.mubr.f32.mxu1 %v13437_v53  ;;  %8141 = vmatpush3.msra.mxu1 %v9900_v30  ;;  %v7225_v30 = vld [vmem:[%s13183_s1 + $0x48] sm:$0xff] }
 0x1c1   : > { %8648 = vset.pattern.permute.xlu1 %v13401_v60  ;;  %8103 = vmatpush3.msra.mxu0 %v13426_v18  ;;  %v10733_v53 = vand.u32 4294901760, %v7225_v30  ;;  %v4184_v57 = vand.u32 4294901760, %v4183_v24 }
 0x1c2   : > { %3577 = vperm.xlu1 %8648, %v10710_v46   ;;  %v10713_v48 = vpop.permute.xlu1 %3459  ;;  %8053 = vmatmul.mubr.f32.gmra.mxu0 %v10382_v11 }
 0x1c3   : > { %13438 = vst [vmem:[#allocation5_spill] sm:$0xff] %v10713_v48  ;;  %8091 = vmatmul.mubr.f32.gmra.mxu1 %v13439_v35  ;;  %8055 = vmatprep.mubr.f32.mxu0 %v10494_v54  ;;  %v10726_v18 = vpop.permute.xlu0 %3550  ;;  %v13444_v48 = vand.u32 4294901760, %v10517_v55 }
 0x1c4   : > { %8093 = vmatprep.mubr.f32.mxu1 %v13440_v9  ;;  %v7824_v11 = vpop.f32.mrf.mxu1  ;;  %8104 = vmatprep.subr.mxu0 %v13441_v59  ;;  %v10742_v9 = vsub.f32 %v7226_v5, %v10718_v26  ;;  %v10757_v5 = vsub.f32 %v7225_v30, %v10733_v53  ;;  %v13453_v30 = vand.u32 4294901760, %v10613_v42 }
 0x1c5   : > { %8105 = vmatpush3.msra.mxu0 %v13441_v59  ;;  %5090 = vperm.xlu0 %8658, %v10666_v31   ;;  %v7224_v59 = vld [vmem:[%s13183_s1 + $0x40] sm:$0xff] }
 0x1c6   : > { %8649 = vset.pattern.permute.xlu1 %v13402_v2  ;;  %v10736_v35 = vpop.permute.xlu1 %3465  ;;  %8056 = vmatmul.mubr.f32.gmra.mxu0 %v10413_v7  ;;  %v10739_v54 = vpop.f32.mrf.mxu1  ;;  %v13446_v7 = vand.u32 4294901760, %v10593_v29 }
 0x1c7   : > { %13442 = vst [vmem:[#allocation12_spill] sm:$0xff] %v10736_v35  ;;  %13443 = vst [vmem:[#allocation17_spill] sm:$0xff] %v10739_v54  ;;  %3686 = vperm.xlu1 %8649, %v8712_v21   ;;  %8094 = vmatmul.mubr.f32.gmra.mxu1 %v13444_v48  ;;  %v10750_v19 = vpop.permute.xlu0 %3556  ;;  %v13447_v54 = vld [vmem:[#allocation15_spill] sm:$0xff]  ;;  %v10759_v35 = vand.u32 4294901760, %v7224_v59  ;;  %v10765_v48 = vand.u32 4294901760, %v10742_v9 }
 0x1c8   : > { %13445 = vst [vmem:[#allocation8_spill] sm:$0xff] %v10750_v19  ;;  %8058 = vmatprep.mubr.f32.mxu0 %v10529_v47  ;;  %8096 = vmatprep.mubr.f32.mxu1 %v13446_v7  ;;  %v13450_v47 = vand.u32 4294901760, %v10562_v39 }
 0x1c9   : > { %v7827_v24 = vpop.f32.mrf.mxu1  ;;  %8106 = vmatprep.subr.mxu0 %v13447_v54  ;;  %5093 = vperm.xlu0 %8658, %v8712_v21   ;;  %13449 = vst [vmem:[#allocation21_spill] sm:$0xff] %v10765_v48 }
 0x1ca   : > { %v10761_v17 = vpop.permute.xlu1 %3471  ;;  %8059 = vmatmul.mubr.f32.gmra.mxu0 %v10486_v8  ;;  %8198 = vmatprep.subr.mxu1 %v4184_v57  ;;  %v10780_v8 = vand.u32 4294901760, %v10757_v5 }
 0x1cb   : > { %13448 = vst [vmem:[#allocation13_spill] sm:$0xff] %v10761_v17  ;;  %3689 = vperm.xlu1 %8649, %v10710_v46   ;;  %8097 = vmatmul.mubr.f32.gmra.mxu1 %v13450_v47  ;;  %v10770_v7 = vpop.f32.mrf.mxu1  ;;  %v10772_v0 = vpop.permute.xlu0 %3562  ;;  %v10783_v17 = vsub.f32 %v7224_v59, %v10759_v35 }
 0x1cc   : > { %13451 = vst [vmem:[#allocation7_spill] sm:$0xff] %v10770_v7  ;;  %13452 = vst [vmem:[#allocation20_spill] sm:$0xff] %v10772_v0  ;;  %8061 = vmatprep.mubr.f32.mxu0 %v10567_v23  ;;  %8099 = vmatprep.mubr.f32.mxu1 %v13453_v30  ;;  %v13455_v7 = vld [vmem:[#allocation23_spill] sm:$0xff]  ;;  %v4190_v23 = vsub.f32 %v10742_v9, %v10765_v48  ;;  %v13460_v48 = vld [vmem:[#allocation6_spill] sm:$0xff] }
 0x1cd   : > { %8107 = vmatpush3.msra.mxu0 %v13447_v54  ;;  %5096 = vperm.xlu0 %8658, %v10710_v46   ;;  %13454 = vst [vmem:[#allocation18_spill] sm:$0xff] %v10780_v8  ;;  %v13456_v54 = vand.u32 4294901760, %v10590_v10 }
 0x1ce   : > { %v7830_v47 = vpop.f32.mrf.mxu1  ;;  %8062 = vmatmul.mubr.f32.gmra.mxu0 %v10517_v55  ;;  %8108 = vmatprep.subr.mxu0 %v13455_v7 }
 0x1cf   : > { %v7792_v0 = vpop.f32.mrf.mxu0  ;;  %8651 = vset.pattern.permute.xlu1 %v13417_v15  ;;  %8100 = vmatmul.mubr.f32.gmra.mxu1 %v13456_v54  ;;  %v3542_v30 = vpop.permute.xlu1 %3541  ;;  %v4197_v54 = vsub.f32 %v10757_v5, %v10780_v8 }
 0x1d0   : > { %v10792_v28 = vadd.f32 %v7824_v11, %v7792_v0  ;;  %3798 = vperm.xlu1 %8651, %v8712_v21   ;;  %8064 = vmatprep.mubr.f32.mxu0 %v10593_v29  ;;  %v10795_v59 = vpop.f32.mrf.mxu1  ;;  %v10797_v55 = vpop.permute.xlu0 %3568  ;;  %v10806_v0 = vand.u32 4294901760, %v10783_v17  ;;  %v4191_v29 = vand.u32 4294901760, %v4190_v23  ;;  %v10810_v11 = vld [vmem:[%s8883_s25 + $0x70] sm:$0xff]  ;;  %vm3586_vm9 = vcmp.eq.s32.totalorder %v9156_v40, %v3542_v30 }
 0x1d1   : > { %13457 = vst [vmem:[#allocation15_spill] sm:$0xff] %v10795_v59  ;;  %13458 = vst [vmem:[#allocation23_spill] sm:$0xff] %v10797_v55  ;;  %v10799_v1 = vpop.f32.mrf.mxu0  ;;  %8142 = vmatprep.mubr.f32.mxu1 %v13460_v48  ;;  %8109 = vmatpush3.msra.mxu0 %v13455_v7  ;;  %v4198_v55 = vand.u32 4294901760, %v4197_v54  ;;  %v7177_v30 = vsel %vm3586_vm9, 1.0, %v13403_v36  ;;  %vm3589_vm9 = vcmp.eq.s32.totalorder %v9156_v40, %v10726_v18 }
 0x1d2   : > { %13459 = vst [vmem:[#allocation24_spill] sm:$0xff] %v10799_v1  ;;  %v7833_v21 = vpop.f32.mrf.mxu1  ;;  %8065 = vmatmul.mubr.f32.gmra.mxu0 %v10562_v39  ;;  %5099 = vperm.xlu0 %8658, %v10810_v11   ;;  %v10824_v39 = vld [vmem:[%s8883_s25 + $0x78] sm:$0xff] }
 0x1d3   : > { %8143 = vmatmul.mubr.f32.vlgmr.msra.gmra.mxu1 %v10373_v62  ;;  %v10814_v59 = vpop.permute.xlu1 %3544  ;;  %8067 = vmatprep.mubr.f32.mxu0 %v10613_v42  ;;  %v4204_v42 = vsub.f32 %v10783_v17, %v10806_v0 }
 0x1d4   : > { %v7795_v7 = vpop.f32.mrf.mxu0  ;;  %8652 = vset.pattern.permute.xlu1 %v13401_v60  ;;  %8145 = vmatprep.mubr.f32.mxu1 %v10407_v43  ;;  %v10819_v1 = vpop.f32.mrf.mxu1  ;;  %vm3587_vm15 = vcmp.eq.s32.totalorder %v9156_v40, %v10814_v59 }
 0x1d5   : > { %13461 = vst [vmem:[#allocation6_spill] sm:$0xff] %v10819_v1  ;;  %v10821_v8 = vadd.f32 %v7827_v24, %v7795_v7  ;;  %3583 = vperm.xlu1 %8652, %v10824_v39   ;;  %v10827_v23 = vpop.permute.xlu0 %3574  ;;  %8199 = vmatpush3.msra.mxu1 %v4184_v57  ;;  %v4205_v58 = vand.u32 4294901760, %v4204_v42 }
 0x1d6   : > { %v10833_v60 = vpop.f32.mrf.mxu0  ;;  %v10835_v19 = vpop.f32.mrf.mxu1  ;;  %8068 = vmatmul.mubr.f32.gmra.mxu0 %v10590_v10  ;;  %8200 = vmatprep.subr.mxu1 %v4191_v29  ;;  %v7176_v10 = vsel %vm3585_vm7, 1.0, %v13403_v36 }
 0x1d7   : > { %13462 = vst [vmem:[#allocation25_spill] sm:$0xff] %v10833_v60  ;;  %8146 = vmatmul.mubr.f32.gmra.mxu1 %v10289_v16  ;;  %8110 = vmatprep.mubr.f32.mxu0 %v13460_v48  ;;  %v7161_v48 = vsel %vm3474_vm8, 1.0, %v13403_v36  ;;  %vm3477_vm8 = vcmp.eq.s32.totalorder %v9156_v40, %v10437_v13 }
 0x1d8   : > { %8148 = vmatprep.mubr.f32.mxu1 %v10446_v56  ;;  %v3651_v57 = vpop.permute.xlu1 %3650  ;;  %v10846_v14 = vpop.f32.mrf.mxu1  ;;  %8201 = vmatpush3.msra.mxu1 %v4191_v29  ;;  %v3634_v50 = vadd.f32 %v7177_v30, %v7161_v48  ;;  %v13270_v30 = vmov 15  }
 0x1d9   : > { %13463 = vst [vmem:[#allocation26_spill] sm:$0xff] %v10846_v14  ;;  %v7798_v24 = vpop.f32.mrf.mxu0  ;;  %8653 = vset.pattern.permute.xlu1 %v13402_v2  ;;  %vm3697_vm11 = vcmp.eq.s32.totalorder %v9156_v40, %v3651_v57  ;;  %8202 = vmatprep.subr.mxu1 %v4198_v55  ;;  %v7160_v2 = vsel %vm3473_vm10, 1.0, %v13403_v36  ;;  %v10873_v57 = vpop.permute.xlu0 %3580 }
 0x1da   : > { %v10853_v54 = vadd.f32 %v7830_v47, %v7798_v24  ;;  %3692 = vperm.xlu1 %8653, %v10810_v11   ;;  %v10856_v7 = vpop.f32.mrf.mxu1  ;;  %8111 = vmatmul.mubr.f32.vlgmr.msra.gmra.mxu0 %v10373_v62  ;;  %v7192_v29 = vsel %vm3697_vm11, 1.0, %v13403_v36  ;;  %v3633_v47 = vadd.f32 %v7176_v10, %v7160_v2  ;;  %vm3478_vm11 = vcmp.eq.s32.totalorder %v9156_v40, %v10658_v32 }
 0x1db   : > { %v10864_v42 = vpop.f32.mrf.mxu0  ;;  %8149 = vmatmul.mubr.f32.gmra.mxu1 %v10355_v51  ;;  %8113 = vmatprep.mubr.f32.mxu0 %v10407_v43 }
 0x1dc   : > { %13464 = vst [vmem:[#allocation27_spill] sm:$0xff] %v10864_v42  ;;  %8151 = vmatprep.mubr.f32.mxu1 %v10477_v45  ;;  %v10871_v62 = vpop.f32.mrf.mxu1  ;;  %8203 = vmatpush3.msra.mxu1 %v4198_v55  ;;  %v3745_v1 = vadd.f32 %v7192_v29, %v3633_v47  ;;  %v7193_v55 = vsel %vm3698_vm12, 1.0, %v13403_v36 }
 0x1dd   : > { %13465 = vst [vmem:[#allocation28_spill] sm:$0xff] %v10871_v62  ;;  %v7801_v24 = vpop.f32.mrf.mxu0  ;;  %v3763_v14 = vpop.permute.xlu1 %3762  ;;  %8204 = vmatprep.subr.mxu1 %v4205_v58  ;;  %5102 = vperm.xlu0 %8658, %v10824_v39  }
 0x1de   : > { %v10876_v42 = vadd.f32 %v7833_v21, %v7801_v24  ;;  %3695 = vperm.xlu1 %8653, %v10824_v39   ;;  %vm3809_vm13 = vcmp.eq.s32.totalorder %v9156_v40, %v3763_v14  ;;  %v10880_v43 = vpop.f32.mrf.mxu1  ;;  %8114 = vmatmul.mubr.f32.gmra.mxu0 %v10289_v16  ;;  %v3772_v29 = vpop.permute.xlu0 %3771 }
 0x1df   : > { %v10887_v10 = vpop.f32.mrf.mxu0  ;;  %v7208_v48 = vsel %vm3809_vm13, 1.0, %v13403_v36  ;;  %8152 = vmatmul.mubr.f32.gmra.mxu1 %v10379_v63  ;;  %8116 = vmatprep.mubr.f32.mxu0 %v10446_v56  ;;  %vm3812_vm4 = vcmp.eq.s32.totalorder %v9156_v40, %v3772_v29 }
 0x1e0   : > { %13466 = vst [vmem:[#allocation29_spill] sm:$0xff] %v10887_v10  ;;  %v3857_v21 = vadd.f32 %v7208_v48, %v3745_v1  ;;  %8154 = vmatprep.mubr.f32.mxu1 %v10509_v52  ;;  %v10893_v14 = vpop.f32.mrf.mxu1  ;;  %8205 = vmatpush3.msra.mxu1 %v4205_v58  ;;  %v3746_v58 = vadd.f32 %v7193_v55, %v3634_v50 }
 0x1e1   : > { %13467 = vst [vmem:[#allocation30_spill] sm:$0xff] %v10893_v14  ;;  %v7804_v16 = vpop.f32.mrf.mxu0  ;;  %v3766_v25 = vpop.permute.xlu1 %3765  ;;  %8166 = vmatprep.subr.mxu0 %v10661_v33  ;;  %8686 = vset.pattern.permute.xlu0 %v13270_v30 }
 0x1e2   : > { %v3879_v56 = vsel %vm615_vm0, %v3857_v21, 0  ;;  %v10903_v1 = vadd.f32 %v10835_v19, %v7804_v16  ;;  %8654 = vset.pattern.permute.xlu1 %v13417_v15  ;;  %vm3810_vm1 = vcmp.eq.s32.totalorder %v9156_v40, %v3766_v25  ;;  %v10907_v2 = vpop.f32.mrf.mxu1  ;;  %8117 = vmatmul.mubr.f32.gmra.mxu0 %v10355_v51  ;;  %v7179_v15 = vsel %vm3588_vm14, 1.0, %v13403_v36  ;;  %v3778_v14 = vpop.permute.xlu0 %3777 }
 0x1e3   : > { %v10912_v47 = vpop.f32.mrf.mxu0  ;;  %v7209_v24 = vsel %vm3810_vm1, 1.0, %v13403_v36  ;;  %3807 = vperm.xlu1 %8654, %v10824_v39   ;;  %8155 = vmatmul.mubr.f32.gmra.mxu1 %v10451_v6  ;;  %v7178_v39 = vsel %vm3587_vm15, 1.0, %v13403_v36  ;;  %v10931_v50 = vand.u32 4294901760, %v3879_v56  ;;  %vm3814_vm12 = vcmp.eq.s32.totalorder %v9156_v40, %v3778_v14 }
 0x1e4   : > { %13468 = vst [vmem:[#allocation31_spill] sm:$0xff] %v10912_v47  ;;  %v3858_v19 = vadd.f32 %v7209_v24, %v3746_v58  ;;  %8119 = vmatprep.mubr.f32.mxu0 %v10477_v45  ;;  %8157 = vmatprep.mubr.f32.mxu1 %v10547_v37  ;;  %v10925_v51 = vpop.f32.mrf.mxu1  ;;  %v7163_v45 = vsel %vm3476_vm2, 1.0, %v13403_v36  ;;  %v13471_v24 = vmov 13   ;;  %vm3479_vm2 = vcmp.eq.s32.totalorder %v9156_v40, %v10481_v20 }
 0x1e5   : > { %13469 = vst [vmem:[#allocation32_spill] sm:$0xff] %v10925_v51  ;;  %v7807_v55 = vpop.f32.mrf.mxu0  ;;  %8167 = vmatpush3.msra.mxu0 %v10661_v33  ;;  %5396 = vperm.xlu0 %8686, %v10936_v3   ;;  %v3636_v25 = vadd.f32 %v7179_v15, %v7163_v45  ;;  %v7211_v15 = vsel %vm3812_vm4, 1.0, %v13403_v36  ;;  %v10980_v45 = vsub.f32 %v3879_v56, %v10931_v50  ;;  %v13272_v51 = vmov 14  }
 0x1e6   : > { %v3882_v59 = vsel %vm615_vm0, %v3858_v19, 0  ;;  %v10947_v48 = vadd.f32 %v10856_v7, %v7807_v55  ;;  %v3660_v21 = vpop.permute.xlu1 %3659  ;;  %v10949_v16 = vpop.f32.mrf.mxu1  ;;  %8120 = vmatmul.mubr.f32.gmra.mxu0 %v10379_v63  ;;  %8168 = vmatprep.subr.mxu0 %v10718_v26  ;;  %v3635_v7 = vadd.f32 %v7178_v39, %v7162_v12  ;;  %v10966_v55 = vld [vmem:[%s8883_s25] sm:$0xff]  ;;  %v7194_v39 = vsel %vm3699_vm5, 1.0, %v13403_v36 }
 0x1e7   : > { %v10957_v58 = vpop.f32.mrf.mxu0  ;;  %8655 = vset.pattern.permute.xlu1 %v13471_v24  ;;  %vm3700_vm6 = vcmp.eq.s32.totalorder %v9156_v40, %v3660_v21  ;;  %8158 = vmatmul.mubr.f32.gmra.mxu1 %v10488_v44  ;;  %v10962_v19 = vand.u32 4294901760, %v3882_v59 }
 0x1e8   : > { %13470 = vst [vmem:[#allocation33_spill] sm:$0xff] %v10957_v58  ;;  %v7195_v63 = vsel %vm3700_vm6, 1.0, %v13403_v36  ;;  %5169 = vperm.xlu1 %8655, %v10966_v55   ;;  %8122 = vmatprep.mubr.f32.mxu0 %v10509_v52  ;;  %v10970_v27 = vpop.f32.mrf.mxu1 }
 0x1e9   : > { %13472 = vst [vmem:[#allocation34_spill] sm:$0xff] %v10970_v27  ;;  %v3748_v21 = vadd.f32 %v7195_v63, %v3636_v25  ;;  %v7810_v12 = vpop.f32.mrf.mxu0  ;;  %8160 = vmatprep.mubr.f32.mxu1 %v10578_v41  ;;  %8169 = vmatpush3.msra.mxu0 %v10718_v26  ;;  %v10996_v25 = vsub.f32 %v3882_v59, %v10962_v19  ;;  %v13474_v63 = vmov 12  }
 0x1ea   : > { %v10985_v52 = vadd.f32 %v10880_v43, %v7810_v12  ;;  %v10987_v30 = vpop.f32.mrf.mxu1  ;;  %8123 = vmatmul.mubr.f32.gmra.mxu0 %v10451_v6  ;;  %8170 = vmatprep.subr.mxu0 %v10733_v53  ;;  %v3747_v43 = vadd.f32 %v7194_v39, %v3635_v7 }
 0x1eb   : > { %v10991_v4 = vpop.f32.mrf.mxu0  ;;  %v3860_v29 = vadd.f32 %v7211_v15, %v3748_v21  ;;  %8161 = vmatmul.mubr.f32.gmra.mxu1 %v10526_v22  ;;  %v3769_v56 = vpop.permute.xlu1 %3768  ;;  %8125 = vmatprep.mubr.f32.mxu0 %v10547_v37 }
 0x1ec   : > { %13473 = vst [vmem:[#allocation35_spill] sm:$0xff] %v10991_v4  ;;  %8656 = vset.pattern.permute.xlu1 %v13474_v63  ;;  %vm3811_vm7 = vcmp.eq.s32.totalorder %v9156_v40, %v3769_v56  ;;  %8163 = vmatprep.mubr.f32.mxu1 %v10603_v61  ;;  %v11001_v6 = vpop.f32.mrf.mxu1  ;;  %v11037_v63 = vld [vmem:[%s8883_s25 + $0x18] sm:$0xff] }
 0x1ed   : > { %13475 = vst [vmem:[#allocation36_spill] sm:$0xff] %v11001_v6  ;;  %v3888_v12 = vsel %vm615_vm0, %v3860_v29, 0  ;;  %v7813_v15 = vpop.f32.mrf.mxu0  ;;  %v7210_v21 = vsel %vm3811_vm7, 1.0, %v13403_v36  ;;  %5060 = vperm.xlu1 %8656, %v10936_v3   ;;  %8171 = vmatpush3.msra.mxu0 %v10733_v53  ;;  %v11128_v6 = vld [vmem:[%s8883_s25 + $0x10] sm:$0xff] }
 0x1ee   : > { %v11008_v59 = vand.u32 4294901760, %v3888_v12  ;;  %v11011_v7 = vadd.f32 %v10907_v2, %v7813_v15  ;;  %v3859_v39 = vadd.f32 %v7210_v21, %v3747_v43  ;;  %v11013_v56 = vpop.f32.mrf.mxu1  ;;  %8126 = vmatmul.mubr.f32.gmra.mxu0 %v10488_v44  ;;  %8172 = vmatprep.subr.mxu0 %v10759_v35 }
 0x1ef   : > { %v11017_v29 = vpop.f32.mrf.mxu0  ;;  %8164 = vmatmul.mubr.f32.gmra.mxu1 %v10564_v38  ;;  %8128 = vmatprep.mubr.f32.mxu0 %v10578_v41  ;;  %v13478_v41 = vand.u32 4294901760, %v10980_v45 }
 0x1f0   : > { %13476 = vst [vmem:[#allocation37_spill] sm:$0xff] %v11017_v29  ;;  %v11023_v37 = vsub.f32 %v3888_v12, %v11008_v59  ;;  %v3885_v2 = vsel %vm615_vm0, %v3859_v39, 0  ;;  %8206 = vmatprep.mubr.f32.mxu1 %v10931_v50  ;;  %v3554_v43 = vpop.permute.xlu1 %3553  ;;  %v11027_v44 = vpop.f32.mrf.mxu1  ;;  %8173 = vmatpush3.msra.mxu0 %v10759_v35 }
 0x1f1   : > { %13477 = vst [vmem:[#allocation38_spill] sm:$0xff] %v11027_v44  ;;  %v11030_v15 = vand.u32 4294901760, %v3885_v2  ;;  %v7856_v21 = vpop.f32.mrf.mxu0  ;;  %8659 = vset.pattern.permute.xlu1 %v13272_v51  ;;  %v3998_v12 = vsub.f32 %v10980_v45, %v13478_v41  ;;  %5402 = vperm.xlu0 %8686, %v11037_v63   ;;  %vm3590_vm10 = vcmp.eq.s32.totalorder %v9156_v40, %v3554_v43  ;;  %v11115_v44 = vld [vmem:[%s8883_s25 + $0x38] sm:$0xff] }
 0x1f2   : > { %v1158_v39 = vadd.f32 %v7856_v21, %v10792_v28  ;;  %5281 = vperm.xlu1 %8659, %v10966_v55   ;;  %v11042_v29 = vpop.f32.mrf.mxu1  ;;  %8129 = vmatmul.mubr.f32.gmra.mxu0 %v10526_v22  ;;  %v13480_v28 = vand.u32 4294901760, %v10996_v25  ;;  %v13484_v18 = vand.u32 4294901760, %v11023_v37 }
 0x1f3   : > { %v11050_v41 = vsub.f32 %v3885_v2, %v11030_v15  ;;  %v11052_v51 = vpop.f32.mrf.mxu0  ;;  %8207 = vmatmul.mubr.f32.vlgmr.msra.gmra.mxu1 %v10962_v19  ;;  %8131 = vmatprep.mubr.f32.mxu0 %v10603_v61  ;;  %v3999_v58 = vand.u32 4294901760, %v3998_v12  ;;  %v7164_v12 = vsel %vm3477_vm8, 1.0, %v13403_v36 }
 0x1f4   : > { %13479 = vst [vmem:[#allocation39_spill] sm:$0xff] %v11052_v51  ;;  %v4008_v22 = vsub.f32 %v10996_v25, %v13480_v28  ;;  %8209 = vmatprep.mubr.f32.mxu1 %v11030_v15  ;;  %v11061_v21 = vpop.f32.mrf.mxu1  ;;  %v11065_v4 = vadd.f32 %v10949_v16, %v1158_v39  ;;  %8262 = vmatprep.subr.mxu1 %v10661_v33  ;;  %v11070_v28 = vld [vmem:[%s8883_s25 + $0x28] sm:$0xff]  ;;  %v7180_v39 = vsel %vm3589_vm9, 1.0, %v13403_v36 }
 0x1f5   : > { %13481 = vst [vmem:[#allocation40_spill] sm:$0xff] %v11061_v21  ;;  %v7859_v62 = vpop.f32.mrf.mxu0  ;;  %v3663_v61 = vpop.permute.xlu1 %3662  ;;  %v13274_v47 = vand.u32 4294901760, %v11050_v41  ;;  %5408 = vperm.xlu0 %8686, %v11070_v28   ;;  %8263 = vmatpush3.msra.mxu1 %v10661_v33  ;;  %v4028_v43 = vsub.f32 %v11023_v37, %v13484_v18  ;;  %v3637_v18 = vadd.f32 %v7180_v39, %v7164_v12 }
 0x1f6   : > { %v1172_v2 = vadd.f32 %v7859_v62, %v10821_v8  ;;  %5284 = vperm.xlu1 %8659, %v10936_v3   ;;  %v11078_v16 = vpop.f32.mrf.mxu1  ;;  %8132 = vmatmul.mubr.f32.gmra.mxu0 %v10564_v38  ;;  %v7181_v8 = vsel %vm3590_vm10, 1.0, %v13403_v36  ;;  %v4009_v38 = vand.u32 4294901760, %v4008_v22  ;;  %vm3701_vm13 = vcmp.eq.s32.totalorder %v9156_v40, %v3663_v61 }
 0x1f7   : > { %v11092_v62 = vpop.f32.mrf.mxu0  ;;  %8210 = vmatmul.mubr.f32.gmra.mxu1 %v11008_v59  ;;  %8174 = vmatprep.mubr.f32.mxu0 %v3999_v58  ;;  %v4018_v13 = vsub.f32 %v11050_v41, %v13274_v47  ;;  %v7165_v58 = vsel %vm3478_vm11, 1.0, %v13403_v36  ;;  %v4029_v12 = vand.u32 4294901760, %v4028_v43 }
 0x1f8   : > { %13482 = vst [vmem:[#allocation41_spill] sm:$0xff] %v11092_v62  ;;  %v11098_v3 = vpop.f32.mrf.mxu1  ;;  %v11105_v21 = vadd.f32 %v10987_v30, %v1172_v2  ;;  %8264 = vmatprep.subr.mxu1 %v10718_v26  ;;  %8230 = vmatprep.subr.mxu0 %v10680_v34  ;;  %v3638_v30 = vadd.f32 %v7181_v8, %v7165_v58 }
 0x1f9   : > { %13483 = vst [vmem:[#allocation42_spill] sm:$0xff] %v11098_v3  ;;  %v7862_v22 = vpop.f32.mrf.mxu0  ;;  %v3666_v47 = vpop.permute.xlu1 %3665  ;;  %v4019_v3 = vand.u32 4294901760, %v4018_v13  ;;  %5414 = vperm.xlu0 %8686, %v11115_v44   ;;  %8265 = vmatpush3.msra.mxu1 %v10718_v26 }
 0x1fa   : > { %v1186_v2 = vadd.f32 %v7862_v22, %v10853_v54  ;;  %8660 = vset.pattern.permute.xlu1 %v13471_v24  ;;  %vm3702_vm14 = vcmp.eq.s32.totalorder %v9156_v40, %v3666_v47  ;;  %v11122_v32 = vpop.f32.mrf.mxu1  ;;  %8175 = vmatmul.mubr.f32.vlgmr.msra.gmra.mxu0 %v4009_v38  ;;  %v7213_v54 = vsel %vm3814_vm12, 1.0, %v13403_v36  ;;  %v7196_v47 = vsel %vm3701_vm13, 1.0, %v13403_v36 }
 0x1fb   : > { %v11124_v10 = vpop.f32.mrf.mxu0  ;;  %v7197_v13 = vsel %vm3702_vm14, 1.0, %v13403_v36  ;;  %5175 = vperm.xlu1 %8660, %v11128_v6   ;;  %8177 = vmatprep.mubr.f32.mxu0 %v4019_v3 }
 0x1fc   : > { %13485 = vst [vmem:[#allocation43_spill] sm:$0xff] %v11124_v10  ;;  %v3750_v8 = vadd.f32 %v7197_v13, %v3638_v30  ;;  %v11137_v38 = vpop.f32.mrf.mxu1  ;;  %v11140_v39 = vadd.f32 %v11013_v56, %v1186_v2  ;;  %8266 = vmatprep.subr.mxu1 %v10733_v53  ;;  %8231 = vmatpush3.msra.mxu0 %v10680_v34  ;;  %v13488_v30 = vmov 15  }
 0x1fd   : > { %13486 = vst [vmem:[#allocation44_spill] sm:$0xff] %v11137_v38  ;;  %v7865_v3 = vpop.f32.mrf.mxu0  ;;  %5420 = vperm.xlu0 %8686, %v10655_v49   ;;  %8267 = vmatpush3.msra.mxu1 %v10733_v53  ;;  %v3749_v56 = vadd.f32 %v7196_v47, %v3637_v18  ;;  %v7166_v38 = vsel %vm3479_vm2, 1.0, %v13403_v36 }
 0x1fe   : > { %v1200_v14 = vadd.f32 %v7865_v3, %v10876_v42  ;;  %v3862_v61 = vadd.f32 %v7213_v54, %v3750_v8  ;;  %v3775_v58 = vpop.permute.xlu1 %3774  ;;  %v11147_v22 = vpop.f32.mrf.mxu1  ;;  %8178 = vmatmul.mubr.f32.gmra.mxu0 %v4029_v12  ;;  %8268 = vmatprep.subr.mxu1 %v10759_v35 }
 0x1ff   : > { %v11150_v43 = vpop.f32.mrf.mxu0  ;;  %8661 = vset.pattern.permute.xlu1 %v13488_v30  ;;  %vm3813_vm15 = vcmp.eq.s32.totalorder %v9156_v40, %v3775_v58  ;;  %8269 = vmatpush3.msra.mxu1 %v10759_v35 }
 0x200   : > { %13487 = vst [vmem:[#allocation45_spill] sm:$0xff] %v11150_v43  ;;  %v3894_v49 = vsel %vm615_vm0, %v3862_v61, 0  ;;  %v7212_v34 = vsel %vm3813_vm15, 1.0, %v13403_v36  ;;  %5393 = vperm.xlu1 %8661, %v10966_v55   ;;  %v11158_v42 = vpop.f32.mrf.mxu1  ;;  %v11161_v2 = vadd.f32 %v11042_v29, %v1200_v14  ;;  %8232 = vmatprep.subr.mxu0 %v10742_v9 }
 0x201   : > { %13489 = vst [vmem:[#allocation46_spill] sm:$0xff] %v11158_v42  ;;  %v11164_v18 = vand.u32 4294901760, %v3894_v49  ;;  %v3861_v13 = vadd.f32 %v7212_v34, %v3749_v56  ;;  %v7868_v54 = vpop.f32.mrf.mxu0  ;;  %8233 = vmatpush3.msra.mxu0 %v10742_v9  ;;  %5426 = vperm.xlu0 %8686, %v10666_v31  }
 0x202   : > { %v1214_v47 = vadd.f32 %v7868_v54, %v10903_v1  ;;  %v11169_v8 = vpop.f32.mrf.mxu1  ;;  %8234 = vmatprep.subr.mxu0 %v10757_v5  ;;  %8326 = vmatprep.subr.mxu1 %v10661_v33 }
 0x203   : > { %v11174_v55 = vsub.f32 %v3894_v49, %v11164_v18  ;;  %v3891_v29 = vsel %vm615_vm0, %v3861_v13, 0  ;;  %v11177_v12 = vpop.f32.mrf.mxu0  ;;  %v3560_v3 = vpop.permute.xlu1 %3559  ;;  %8235 = vmatpush3.msra.mxu0 %v10757_v5 }
 0x204   : > { %13490 = vst [vmem:[#allocation47_spill] sm:$0xff] %v11177_v12  ;;  %v11180_v9 = vand.u32 4294901760, %v3891_v29  ;;  %8662 = vset.pattern.permute.xlu1 %v13471_v24  ;;  %v11183_v31 = vpop.f32.mrf.mxu1  ;;  %v11186_v1 = vadd.f32 %v11078_v16, %v1214_v47  ;;  %8236 = vmatprep.subr.mxu0 %v10783_v17  ;;  %vm3592_vm1 = vcmp.eq.s32.totalorder %v9156_v40, %v3560_v3  ;;  %v3784_v49 = vpop.permute.xlu0 %3783  ;;  %v13495_v47 = vld [vmem:[#allocation22_spill] sm:$0xff] }
 0x205   : > { %13491 = vst [vmem:[#allocation48_spill] sm:$0xff] %v11183_v31  ;;  %v7871_v14 = vpop.f32.mrf.mxu0  ;;  %5178 = vperm.xlu1 %8662, %v11037_v63   ;;  %v13275_v61 = vand.u32 4294901760, %v11174_v55  ;;  %8237 = vmatpush3.msra.mxu0 %v10783_v17  ;;  %v13493_v17 = vld [vmem:[#allocation8_spill] sm:$0xff]  ;;  %v7183_v42 = vsel %vm3592_vm1, 1.0, %v13403_v36  ;;  %vm3816_vm5 = vcmp.eq.s32.totalorder %v9156_v40, %v3784_v49 }
 0x206   : > { %v11193_v5 = vsub.f32 %v3891_v29, %v11180_v9  ;;  %v1228_v58 = vadd.f32 %v7871_v14, %v10947_v48  ;;  %v11196_v56 = vpop.f32.mrf.mxu1  ;;  %8212 = vmatprep.mubr.f32.mxu1 %v11180_v9  ;;  %5432 = vperm.xlu0 %8686, %v10710_v46   ;;  %vm3591_vm3 = vcmp.eq.s32.totalorder %v9156_v40, %v13493_v17  ;;  %v13496_v29 = vld [vmem:[#allocation11_spill] sm:$0xff]  ;;  %v13497_v14 = vmov 14  }
 0x207   : > { %v11200_v16 = vpop.f32.mrf.mxu0  ;;  %8213 = vmatmul.mubr.f32.gmra.mxu1 %v11164_v18  ;;  %8294 = vmatprep.subr.mxu0 %v13495_v47  ;;  %vm3480_vm4 = vcmp.eq.s32.totalorder %v9156_v40, %v13496_v29  ;;  %v4048_v31 = vsub.f32 %v11174_v55, %v13275_v61  ;;  %v7182_v3 = vsel %vm3591_vm3, 1.0, %v13403_v36 }
 0x208   : > { %13492 = vst [vmem:[#allocation49_spill] sm:$0xff] %v11200_v16  ;;  %v3669_v48 = vpop.permute.xlu1 %3668  ;;  %v11208_v34 = vpop.f32.mrf.mxu1  ;;  %v11212_v54 = vadd.f32 %v11122_v32, %v1228_v58  ;;  %v13498_v58 = vand.u32 4294901760, %v11193_v5  ;;  %v3639_v43 = vadd.f32 %v7182_v3, %v7166_v38 }
 0x209   : > { %13494 = vst [vmem:[#allocation8_spill] sm:$0xff] %v11208_v34  ;;  %v7874_v46 = vpop.f32.mrf.mxu0  ;;  %8663 = vset.pattern.permute.xlu1 %v13497_v14  ;;  %vm3703_vm6 = vcmp.eq.s32.totalorder %v9156_v40, %v3669_v48 }
 0x20a   : > { %v1242_v13 = vadd.f32 %v7874_v46, %v10985_v52  ;;  %5287 = vperm.xlu1 %8663, %v11128_v6   ;;  %v7955_v32 = vpop.f32.mrf.mxu1  ;;  %v4038_v29 = vsub.f32 %v11193_v5, %v13498_v58  ;;  %5435 = vperm.xlu0 %8686, %v10810_v11   ;;  %v7167_v52 = vsel %vm3480_vm4, 1.0, %v13403_v36 }
 0x20b   : > { %v11237_v61 = vpop.f32.mrf.mxu0  ;;  %v3640_v12 = vadd.f32 %v7183_v42, %v7167_v52 }
 0x20c   : > { %13499 = vst [vmem:[#allocation22_spill] sm:$0xff] %v11237_v61  ;;  %v3672_v46 = vpop.permute.xlu1 %3671  ;;  %v11243_v58 = vpop.f32.mrf.mxu1  ;;  %v4039_v20 = vand.u32 4294901760, %v4038_v29  ;;  %v11246_v16 = vadd.f32 %v11147_v22, %v1242_v13  ;;  %v4049_v61 = vand.u32 4294901760, %v4048_v31  ;;  %v7215_v29 = vsel %vm3816_vm5, 1.0, %v13403_v36 }
 0x20d   : > { %13500 = vst [vmem:[#allocation11_spill] sm:$0xff] %v11243_v58  ;;  %v7877_v17 = vpop.f32.mrf.mxu0  ;;  %vm3704_vm7 = vcmp.eq.s32.totalorder %v9156_v40, %v3672_v46  ;;  %v7198_v22 = vsel %vm3703_vm6, 1.0, %v13403_v36 }
 0x20e   : > { %v1256_v34 = vadd.f32 %v7877_v17, %v11011_v7  ;;  %v7199_v11 = vsel %vm3704_vm7, 1.0, %v13403_v36  ;;  %5290 = vperm.xlu1 %8663, %v11037_v63   ;;  %v7958_v10 = vpop.f32.mrf.mxu1  ;;  %8180 = vmatprep.mubr.f32.mxu0 %v4039_v20  ;;  %v11260_v7 = vpop.permute.xlu0 %3789  ;;  %v3751_v52 = vadd.f32 %v7198_v22, %v3639_v43  ;;  %v11275_v17 = vld [vmem:[%s8883_s25 + $0x20] sm:$0xff] }
 0x20f   : > { %v3752_v42 = vadd.f32 %v7199_v11, %v3640_v12  ;;  %v11258_v13 = vpop.f32.mrf.mxu0  ;;  %8181 = vmatmul.mubr.f32.gmra.mxu0 %v4049_v61  ;;  %vm3818_vm13 = vcmp.eq.s32.totalorder %v9156_v40, %v11260_v7 }
 0x210   : > { %13501 = vst [vmem:[#allocation50_spill] sm:$0xff] %v11258_v13  ;;  %v11262_v38 = vpop.f32.mrf.mxu1  ;;  %v11265_v63 = vadd.f32 %v11169_v8, %v1256_v34  ;;  %v7217_v7 = vsel %vm3818_vm13, 1.0, %v13403_v36 }
 0x211   : > { %13502 = vst [vmem:[#allocation51_spill] sm:$0xff] %v11262_v38  ;;  %v7920_v31 = vpop.f32.mrf.mxu0  ;;  %v3864_v3 = vadd.f32 %v7215_v29, %v3752_v42  ;;  %v3781_v49 = vpop.permute.xlu1 %3780 }
 0x212   : > { %v1542_v46 = vadd.f32 %v7920_v31, %v11065_v4  ;;  %8664 = vset.pattern.permute.xlu1 %v13471_v24  ;;  %vm3815_vm8 = vcmp.eq.s32.totalorder %v9156_v40, %v3781_v49  ;;  %v7961_v12 = vpop.f32.mrf.mxu1  ;;  %v11285_v29 = vpop.permute.xlu0 %3795 }
 0x213   : > { %v3900_v61 = vsel %vm615_vm0, %v3864_v3, 0  ;;  %v11271_v48 = vpop.f32.mrf.mxu0  ;;  %v7214_v20 = vsel %vm3815_vm8, 1.0, %v13403_v36  ;;  %5181 = vperm.xlu1 %8664, %v11275_v17   ;;  %vm3820_vm6 = vcmp.eq.s32.totalorder %v9156_v40, %v11285_v29 }
 0x214   : > { %13503 = vst [vmem:[#allocation52_spill] sm:$0xff] %v11271_v48  ;;  %v11279_v8 = vadd.f32 %v11196_v56, %v1542_v46  ;;  %v11281_v43 = vand.u32 4294901760, %v3900_v61  ;;  %v3863_v4 = vadd.f32 %v7214_v20, %v3751_v52  ;;  %v11283_v34 = vpop.f32.mrf.mxu1  ;;  %v13512_v46 = vld [vmem:[#allocation19_spill] sm:$0xff] }
 0x215   : > { %13505 = vst [vmem:[#allocation54_spill] sm:$0xff] %v11283_v34  ;;  %v7923_v11 = vpop.f32.mrf.mxu0  ;;  %vm3482_vm12 = vcmp.eq.s32.totalorder %v9156_v40, %v13512_v46 }
 0x216   : > { %13504 = vst [vmem:[#allocation53_spill] sm:$0xff] %v11279_v8  ;;  %v11288_v22 = vsub.f32 %v3900_v61, %v11281_v43  ;;  %v3897_v42 = vsel %vm615_vm0, %v3863_v4, 0  ;;  %v1554_v31 = vadd.f32 %v7923_v11, %v11105_v21  ;;  %v3566_v3 = vpop.permute.xlu1 %3565  ;;  %v7964_v49 = vpop.f32.mrf.mxu1 }
 0x217   : > { %v11292_v13 = vand.u32 4294901760, %v3897_v42  ;;  %v11294_v56 = vpop.f32.mrf.mxu0  ;;  %8665 = vset.pattern.permute.xlu1 %v13488_v30  ;;  %vm3594_vm9 = vcmp.eq.s32.totalorder %v9156_v40, %v3566_v3 }
 0x218   : > { %13506 = vst [vmem:[#allocation55_spill] sm:$0xff] %v11294_v56  ;;  %v11297_v52 = vadd.f32 %v7955_v32, %v1554_v31  ;;  %5399 = vperm.xlu1 %8665, %v11128_v6   ;;  %v11307_v4 = vpop.f32.mrf.mxu1  ;;  %v13509_v32 = vld [vmem:[#allocation9_spill] sm:$0xff]  ;;  %v13510_v6 = vld [vmem:[#allocation20_spill] sm:$0xff] }
 0x219   : > { %v11302_v61 = vsub.f32 %v3897_v42, %v11292_v13  ;;  %v7926_v20 = vpop.f32.mrf.mxu0  ;;  %8215 = vmatprep.mubr.f32.mxu1 %v11292_v13  ;;  %13508 = vst [vmem:[#allocation57_spill] sm:$0xff] %v11307_v4  ;;  %vm3481_vm10 = vcmp.eq.s32.totalorder %v9156_v40, %v13509_v32  ;;  %vm3593_vm11 = vcmp.eq.s32.totalorder %v9156_v40, %v13510_v6  ;;  %v11325_v32 = vpop.permute.xlu0 %3801  ;;  %v7185_v6 = vsel %vm3594_vm9, 1.0, %v13403_v36 }
 0x21a   : > { %13507 = vst [vmem:[#allocation56_spill] sm:$0xff] %v11297_v52  ;;  %v1566_v21 = vadd.f32 %v7926_v20, %v11140_v39  ;;  %8216 = vmatmul.mubr.f32.gmra.mxu1 %v11281_v43  ;;  %v13514_v39 = vand.u32 4294901760, %v11288_v22  ;;  %v7184_v46 = vsel %vm3593_vm11, 1.0, %v13403_v36 }
 0x21b   : > { %v11314_v11 = vpop.f32.mrf.mxu0  ;;  %v3675_v42 = vpop.permute.xlu1 %3674  ;;  %v13276_v31 = vand.u32 4294901760, %v11302_v61 }
 0x21c   : > { %13511 = vst [vmem:[#allocation9_spill] sm:$0xff] %v11314_v11  ;;  %v11319_v3 = vadd.f32 %v7958_v10, %v1566_v21  ;;  %8666 = vset.pattern.permute.xlu1 %v13471_v24  ;;  %v4068_v20 = vsub.f32 %v11288_v22, %v13514_v39  ;;  %v7168_v10 = vsel %vm3481_vm10, 1.0, %v13403_v36  ;;  %v7169_v39 = vsel %vm3482_vm12, 1.0, %v13403_v36 }
 0x21d   : > { %v7929_v4 = vpop.f32.mrf.mxu0  ;;  %5184 = vperm.xlu1 %8666, %v11070_v28   ;;  %v4058_v34 = vsub.f32 %v11302_v61, %v13276_v31  ;;  %vm3705_vm14 = vcmp.eq.s32.totalorder %v9156_v40, %v3675_v42  ;;  %v3642_v58 = vadd.f32 %v7185_v6, %v7169_v39  ;;  %v3641_v56 = vadd.f32 %v7184_v46, %v7168_v10 }
 0x21e   : > { %13513 = vst [vmem:[#allocation20_spill] sm:$0xff] %v11319_v3  ;;  %v1578_v21 = vadd.f32 %v7929_v4, %v11161_v2  ;;  %v7967_v3 = vpop.f32.mrf.mxu1  ;;  %v4069_v8 = vand.u32 4294901760, %v4068_v20  ;;  %v7200_v42 = vsel %vm3705_vm14, 1.0, %v13403_v36  ;;  %vm3597_vm12 = vcmp.eq.s32.totalorder %v9156_v40, %v10827_v23 }
 0x21f   : > { %v11339_v38 = vpop.f32.mrf.mxu0  ;;  %v3678_v52 = vpop.permute.xlu1 %3677  ;;  %v4059_v11 = vand.u32 4294901760, %v4058_v34  ;;  %v3753_v46 = vadd.f32 %v7200_v42, %v3641_v56  ;;  %vm3822_vm14 = vcmp.eq.s32.totalorder %v9156_v40, %v11325_v32 }
 0x220   : > { %13515 = vst [vmem:[#allocation19_spill] sm:$0xff] %v11339_v38  ;;  %v11341_v31 = vadd.f32 %v7961_v12, %v1578_v21  ;;  %vm3706_vm15 = vcmp.eq.s32.totalorder %v9156_v40, %v3678_v52  ;;  %v11350_v12 = vpop.permute.xlu0 %3804  ;;  %v11352_v52 = vpop.f32.mrf.mxu1 }
 0x221   : > { %v7932_v2 = vpop.f32.mrf.mxu0  ;;  %v7201_v4 = vsel %vm3706_vm15, 1.0, %v13403_v36  ;;  %8667 = vset.pattern.permute.xlu1 %v13497_v14  ;;  %8183 = vmatprep.mubr.f32.mxu0 %v4059_v11  ;;  %13517 = vst [vmem:[#allocation59_spill] sm:$0xff] %v11352_v52 }
 0x222   : > { %13516 = vst [vmem:[#allocation58_spill] sm:$0xff] %v11341_v31  ;;  %v1590_v38 = vadd.f32 %v7932_v2, %v11186_v1  ;;  %v3754_v34 = vadd.f32 %v7201_v4, %v3642_v58  ;;  %5293 = vperm.xlu1 %8667, %v11275_v17   ;;  %8184 = vmatmul.mubr.f32.gmra.mxu0 %v4069_v8  ;;  %v7970_v39 = vpop.f32.mrf.mxu1 }
 0x223   : > { %v11354_v20 = vpop.f32.mrf.mxu0 }
 0x224   : > { %13518 = vst [vmem:[#allocation60_spill] sm:$0xff] %v11354_v20  ;;  %v11356_v6 = vadd.f32 %v7964_v49, %v1590_v38  ;;  %v3866_v10 = vadd.f32 %v7217_v7, %v3754_v34  ;;  %v3787_v11 = vpop.permute.xlu1 %3786  ;;  %v11369_v56 = vpop.permute.xlu0 %5172  ;;  %v7221_v20 = vsel %vm3822_vm14, 1.0, %v13403_v36 }
 0x225   : > { %v7935_v21 = vpop.f32.mrf.mxu0  ;;  %vm3817_vm1 = vcmp.eq.s32.totalorder %v9156_v40, %v3787_v11  ;;  %v11379_v11 = vpop.f32.mrf.mxu1 }
 0x226   : > { %13519 = vst [vmem:[#allocation61_spill] sm:$0xff] %v11356_v6  ;;  %v3906_v1 = vsel %vm615_vm0, %v3866_v10, 0  ;;  %v1602_v58 = vadd.f32 %v7935_v21, %v11212_v54  ;;  %v7216_v8 = vsel %vm3817_vm1, 1.0, %v13403_v36  ;;  %5296 = vperm.xlu1 %8667, %v11070_v28   ;;  %13523 = vst [vmem:[#allocation65_spill] sm:$0xff] %v11379_v11  ;;  %v13526_v21 = vld [vmem:[#allocation14_spill] sm:$0xff] }
 0x227   : > { %v11363_v2 = vand.u32 4294901760, %v3906_v1  ;;  %v3865_v38 = vadd.f32 %v7216_v8, %v3753_v46  ;;  %v11365_v49 = vpop.f32.mrf.mxu0  ;;  %vm3483_vm3 = vcmp.eq.s32.totalorder %v9156_v40, %v13526_v21 }
 0x228   : > { %13521 = vst [vmem:[#allocation63_spill] sm:$0xff] %v11365_v49  ;;  %v11367_v4 = vadd.f32 %v7967_v3, %v1602_v58  ;;  %v11384_v3 = vld [vmem:[%s8883_s25 + $0x30] sm:$0xff]  ;;  %v11398_v11 = vpop.permute.xlu0 %5057 }
 0x229   : > { %13520 = vst [vmem:[#allocation62_spill] sm:$0xff] %v11363_v2  ;;  %v11372_v7 = vsub.f32 %v3906_v1, %v11363_v2  ;;  %v3903_v54 = vsel %vm615_vm0, %v3865_v38, 0  ;;  %v7938_v42 = vpop.f32.mrf.mxu0  ;;  %v3572_v34 = vpop.permute.xlu1 %3571 }
 0x22a   : > { %13522 = vst [vmem:[#allocation64_spill] sm:$0xff] %v11367_v4  ;;  %v11375_v10 = vand.u32 4294901760, %v3903_v54  ;;  %v1614_v28 = vadd.f32 %v7938_v42, %v11246_v16  ;;  %8668 = vset.pattern.permute.xlu1 %v13471_v24  ;;  %vm3596_vm2 = vcmp.eq.s32.totalorder %v9156_v40, %v3572_v34  ;;  %v7973_v34 = vpop.f32.mrf.mxu1 }
 0x22b   : > { %v11381_v46 = vpop.f32.mrf.mxu0  ;;  %5187 = vperm.xlu1 %8668, %v11384_v3  }
 0x22c   : > { %13524 = vst [vmem:[#allocation66_spill] sm:$0xff] %v11381_v46  ;;  %v11389_v1 = vsub.f32 %v3903_v54, %v11375_v10  ;;  %v11391_v58 = vadd.f32 %v7970_v39, %v1614_v28  ;;  %8218 = vmatprep.mubr.f32.mxu1 %v11375_v10  ;;  %v13527_v54 = vld [vmem:[#allocation5_spill] sm:$0xff]  ;;  %v13528_v39 = vld [vmem:[#allocation23_spill] sm:$0xff]  ;;  %v13529_v28 = vand.u32 4294901760, %v11372_v7  ;;  %v11427_v29 = vpop.permute.xlu0 %5063 }
 0x22d   : > { %v7941_v16 = vpop.f32.mrf.mxu0  ;;  %8219 = vmatmul.mubr.f32.gmra.mxu1 %v11363_v2  ;;  %vm3484_vm4 = vcmp.eq.s32.totalorder %v9156_v40, %v13527_v54  ;;  %vm3595_vm5 = vcmp.eq.s32.totalorder %v9156_v40, %v13528_v39  ;;  %v7170_v39 = vsel %vm3483_vm3, 1.0, %v13403_v36 }
 0x22e   : > { %13525 = vst [vmem:[#allocation67_spill] sm:$0xff] %v11391_v58  ;;  %v1626_v8 = vadd.f32 %v7941_v16, %v11265_v63  ;;  %v3681_v38 = vpop.permute.xlu1 %3680  ;;  %v4088_v63 = vsub.f32 %v11372_v7, %v13529_v28  ;;  %v7187_v16 = vsel %vm3596_vm2, 1.0, %v13403_v36  ;;  %v13531_v21 = vand.u32 4294901760, %v11389_v1 }
 0x22f   : > { %8669 = vset.pattern.permute.xlu1 %v13488_v30  ;;  %v7171_v58 = vsel %vm3484_vm4, 1.0, %v13403_v36  ;;  %v7186_v4 = vsel %vm3595_vm5, 1.0, %v13403_v36  ;;  %vm3707_vm7 = vcmp.eq.s32.totalorder %v9156_v40, %v3681_v38  ;;  %vm3599_vm4 = vcmp.eq.s32.totalorder %v9156_v40, %v10873_v57  ;;  %v11527_v62 = vpop.f32.mrf.mxu0 }
 0x230   : > { %v11411_v42 = vadd.f32 %v7973_v34, %v1626_v8  ;;  %5405 = vperm.xlu1 %8669, %v11275_v17   ;;  %v4078_v54 = vsub.f32 %v11389_v1, %v13531_v21  ;;  %v3644_v52 = vadd.f32 %v7187_v16, %v7171_v58  ;;  %v4089_v17 = vand.u32 4294901760, %v4088_v63  ;;  %13543 = vst [vmem:[#allocation71_spill] sm:$0xff] %v11527_v62  ;;  %v13544_v62 = vld [vmem:[#allocation13_spill] sm:$0xff] }
 0x231   : > { %v7219_v8 = vsel %vm3820_vm6, 1.0, %v13403_v36  ;;  %v3643_v21 = vadd.f32 %v7186_v4, %v7170_v39  ;;  %v7202_v58 = vsel %vm3707_vm7, 1.0, %v13403_v36  ;;  %v11436_v4 = vpop.permute.xlu0 %5066  ;;  %vm3823_vm5 = vcmp.eq.s32.totalorder %v9156_v40, %v11350_v12 }
 0x232   : > { %13530 = vst [vmem:[#allocation14_spill] sm:$0xff] %v11411_v42  ;;  %v3684_v28 = vpop.permute.xlu1 %3683  ;;  %v4079_v46 = vand.u32 4294901760, %v4078_v54 }
 0x233   : > { %vm3708_vm8 = vcmp.eq.s32.totalorder %v9156_v40, %v3684_v28  ;;  %v3755_v54 = vadd.f32 %v7202_v58, %v3643_v21 }
 0x234   : > { %v7203_v34 = vsel %vm3708_vm8, 1.0, %v13403_v36  ;;  %8670 = vset.pattern.permute.xlu1 %v13471_v24  ;;  %8186 = vmatprep.mubr.f32.mxu0 %v4079_v46  ;;  %vm3488_vm8 = vcmp.eq.s32.totalorder %v9156_v40, %v13544_v62 }
 0x235   : > { %v3756_v42 = vadd.f32 %v7203_v34, %v3644_v52  ;;  %5190 = vperm.xlu1 %8670, %v11115_v44   ;;  %8187 = vmatmul.mubr.f32.gmra.mxu0 %v4089_v17  ;;  %v11452_v58 = vpop.permute.xlu0 %5069 }
 0x236   : > { %13534 = vst [vmem:[#allocation68_spill] sm:$0xff] %v11452_v58 }
 0x237   : > { %v3868_v38 = vadd.f32 %v7219_v8, %v3756_v42 }
 0x238   : > { %v3793_v16 = vpop.permute.xlu1 %3792 }
 0x239   : > { %v3912_v63 = vsel %vm615_vm0, %v3868_v38, 0  ;;  %vm3819_vm9 = vcmp.eq.s32.totalorder %v9156_v40, %v3793_v16  ;;  %8671 = vset.pattern.permute.xlu1 %v13497_v14  ;;  %v13535_v38 = vld [vmem:[#allocation10_spill] sm:$0xff]  ;;  %v11481_v6 = vpop.permute.xlu0 %5072 }
 0x23a   : > { %v7218_v46 = vsel %vm3819_vm9, 1.0, %v13403_v36  ;;  %5299 = vperm.xlu1 %8671, %v11384_v3   ;;  %v11438_v52 = vand.u32 4294901760, %v3912_v63  ;;  %vm3485_vm11 = vcmp.eq.s32.totalorder %v9156_v40, %v13535_v38 }
 0x23b   : > { %v3867_v39 = vadd.f32 %v7218_v46, %v3755_v54  ;;  %v13536_v54 = vld [vmem:[#allocation12_spill] sm:$0xff] }
 0x23c   : > { %13532 = vst [vmem:[#allocation5_spill] sm:$0xff] %v11438_v52  ;;  %v11441_v28 = vsub.f32 %v3912_v63, %v11438_v52  ;;  %vm3486_vm13 = vcmp.eq.s32.totalorder %v9156_v40, %v13536_v54  ;;  %v11465_v63 = vld [vmem:[%s8883_s25 + $0x40] sm:$0xff] }
 0x23d   : > { %v3909_v42 = vsel %vm615_vm0, %v3867_v39, 0  ;;  %v3578_v17 = vpop.permute.xlu1 %3577  ;;  %v7173_v38 = vsel %vm3486_vm13, 1.0, %v13403_v36  ;;  %vm5104_vm13 = vcmp.eq.s32.totalorder %v9156_v40, %v11398_v11  ;;  %v11861_v11 = vld [vmem:[%s8883_s25 + $0x70] sm:$0xff] }
 0x23e   : > { %v11444_v8 = vand.u32 4294901760, %v3909_v42  ;;  %5302 = vperm.xlu1 %8671, %v11115_v44   ;;  %v13277_v34 = vand.u32 4294901760, %v11441_v28  ;;  %vm3598_vm10 = vcmp.eq.s32.totalorder %v9156_v40, %v3578_v17  ;;  %v7188_v17 = vsel %vm3597_vm12, 1.0, %v13403_v36 }
 0x23f   : > { %v7189_v39 = vsel %vm3598_vm10, 1.0, %v13403_v36 }
 0x240   : > { %13533 = vst [vmem:[#allocation23_spill] sm:$0xff] %v11444_v8  ;;  %v11449_v21 = vsub.f32 %v3909_v42, %v11444_v8  ;;  %8221 = vmatprep.mubr.f32.mxu1 %v11444_v8  ;;  %v4108_v46 = vsub.f32 %v11441_v28, %v13277_v34  ;;  %v7172_v42 = vsel %vm3485_vm11, 1.0, %v13403_v36  ;;  %v3646_v49 = vadd.f32 %v7189_v39, %v7173_v38 }
 0x241   : > { %8222 = vmatmul.mubr.f32.gmra.mxu1 %v11438_v52  ;;  %v3645_v31 = vadd.f32 %v7188_v17, %v7172_v42  ;;  %v8724_v17 = vld [vmem:[%s8883_s25 + $0x48] sm:$0xff]  ;;  %v7175_v52 = vsel %vm3488_vm8, 1.0, %v13403_v36  ;;  %vm5217_vm11 = vcmp.eq.s32.totalorder %v9156_v40, %v11369_v56 }
 0x242   : > { %8672 = vset.pattern.permute.xlu1 %v13471_v24  ;;  %v3687_v44 = vpop.permute.xlu1 %3686  ;;  %v13278_v16 = vand.u32 4294901760, %v11449_v21 }
 0x243   : > { %5193 = vperm.xlu1 %8672, %v11465_v63   ;;  %vm3709_vm15 = vcmp.eq.s32.totalorder %v9156_v40, %v3687_v44 }
 0x244   : > { %v4098_v23 = vsub.f32 %v11449_v21, %v13278_v16  ;;  %v4109_v16 = vand.u32 4294901760, %v4108_v46  ;;  %v7204_v44 = vsel %vm3709_vm15, 1.0, %v13403_v36 }
 0x245   : > { %v3757_v38 = vadd.f32 %v7204_v44, %v3645_v31 }
 0x246   : > { %v3690_v54 = vpop.permute.xlu1 %3689  ;;  %v4099_v34 = vand.u32 4294901760, %v4098_v23 }
 0x247   : > { %vm3710_vm1 = vcmp.eq.s32.totalorder %v9156_v40, %v3690_v54  ;;  %8673 = vset.pattern.permute.xlu1 %v13488_v30  ;;  %v11490_v54 = vpop.permute.xlu0 %5075 }
 0x248   : > { %v7205_v32 = vsel %vm3710_vm1, 1.0, %v13403_v36  ;;  %5411 = vperm.xlu1 %8673, %v11384_v3   ;;  %8189 = vmatprep.mubr.f32.mxu0 %v4099_v34  ;;  %13537 = vst [vmem:[#allocation10_spill] sm:$0xff] %v11490_v54  ;;  %v13538_v3 = vld [vmem:[#allocation16_spill] sm:$0xff] }
 0x249   : > { %v3758_v48 = vadd.f32 %v7205_v32, %v3646_v49  ;;  %8190 = vmatmul.mubr.f32.gmra.mxu0 %v4109_v16  ;;  %vm3487_vm3 = vcmp.eq.s32.totalorder %v9156_v40, %v13538_v3 }
 0x24a   : > { %v7174_v44 = vsel %vm3487_vm3, 1.0, %v13403_v36 }
 0x24b   : > { %v3870_v23 = vadd.f32 %v7221_v20, %v3758_v48  ;;  %v3799_v39 = vpop.permute.xlu1 %3798  ;;  %v11500_v48 = vpop.f32.mrf.mxu1 }
 0x24c   : > { %vm3821_vm2 = vcmp.eq.s32.totalorder %v9156_v40, %v3799_v39  ;;  %8674 = vset.pattern.permute.xlu1 %v13471_v24  ;;  %13539 = vst [vmem:[#allocation12_spill] sm:$0xff] %v11500_v48  ;;  %v11513_v57 = vpop.permute.xlu0 %5078 }
 0x24d   : > { %v3918_v46 = vsel %vm615_vm0, %v3870_v23, 0  ;;  %v7220_v42 = vsel %vm3821_vm2, 1.0, %v13403_v36  ;;  %5196 = vperm.xlu1 %8674, %v8724_v17   ;;  %v7190_v23 = vsel %vm3599_vm4, 1.0, %v13403_v36  ;;  %13542 = vst [vmem:[#allocation70_spill] sm:$0xff] %v11513_v57  ;;  %vm5106_vm4 = vcmp.eq.s32.totalorder %v9156_v40, %v11427_v29 }
 0x24e   : > { %v3869_v31 = vadd.f32 %v7220_v42, %v3757_v38  ;;  %v11502_v20 = vand.u32 4294901760, %v3918_v46 }
 0x250   : > { %13540 = vst [vmem:[#allocation16_spill] sm:$0xff] %v11502_v20  ;;  %v3915_v49 = vsel %vm615_vm0, %v3869_v31, 0  ;;  %v3584_v34 = vpop.permute.xlu1 %3583  ;;  %v8016_v16 = vpop.f32.mrf.mxu1  ;;  %v11506_v32 = vsub.f32 %v3918_v46, %v11502_v20  ;;  %v3647_v46 = vadd.f32 %v7190_v23, %v7174_v44  ;;  %v7222_v44 = vsel %vm3823_vm5, 1.0, %v13403_v36 }
 0x251   : > { %v11510_v39 = vand.u32 4294901760, %v3915_v49  ;;  %8675 = vset.pattern.permute.xlu1 %v13497_v14  ;;  %vm3600_vm6 = vcmp.eq.s32.totalorder %v9156_v40, %v3584_v34  ;;  %v11543_v34 = vpop.permute.xlu0 %5081 }
 0x252   : > { %5305 = vperm.xlu1 %8675, %v11465_v63   ;;  %v11516_v38 = vpop.f32.mrf.mxu1  ;;  %v13279_v42 = vand.u32 4294901760, %v11506_v32  ;;  %13545 = vst [vmem:[#allocation13_spill] sm:$0xff] %v11543_v34 }
 0x253   : > { %13541 = vst [vmem:[#allocation69_spill] sm:$0xff] %v11510_v39  ;;  %v11520_v3 = vsub.f32 %v3915_v49, %v11510_v39  ;;  %8224 = vmatprep.mubr.f32.mxu1 %v11510_v39 }
 0x254   : > { %8225 = vmatmul.mubr.f32.gmra.mxu1 %v11502_v20  ;;  %v4128_v49 = vsub.f32 %v11506_v32, %v13279_v42  ;;  %v7191_v42 = vsel %vm3600_vm6, 1.0, %v13403_v36  ;;  %vm5107_vm6 = vcmp.eq.s32.totalorder %v9156_v40, %v11436_v4 }
 0x255   : > { %v3693_v31 = vpop.permute.xlu1 %3692  ;;  %v8019_v48 = vpop.f32.mrf.mxu1  ;;  %v13286_v27 = vand.u32 4294901760, %v11520_v3  ;;  %v7231_v29 = vsel %vm5107_vm6, 1.0, %v13403_v36 }
 0x256   : > { %vm3711_vm7 = vcmp.eq.s32.totalorder %v9156_v40, %v3693_v31  ;;  %5308 = vperm.xlu1 %8675, %v8724_v17   ;;  %v4129_v62 = vand.u32 4294901760, %v4128_v49  ;;  %v11563_v8 = vpop.permute.xlu0 %5084 }
 0x257   : > { %v7206_v12 = vsel %vm3711_vm7, 1.0, %v13403_v36  ;;  %v11536_v23 = vpop.f32.mrf.mxu1  ;;  %v4118_v60 = vsub.f32 %v11520_v3, %v13286_v27  ;;  %13549 = vst [vmem:[#allocation75_spill] sm:$0xff] %v11563_v8 }
 0x258   : > { %v3759_v17 = vadd.f32 %v7206_v12, %v3647_v46  ;;  %v7984_v31 = vpop.f32.mrf.mxu0  ;;  %v11555_v12 = vld [vmem:[%s8883_s25 + $0x50] sm:$0xff] }
 0x259   : > { %v3696_v51 = vpop.permute.xlu1 %3695  ;;  %v11546_v54 = vadd.f32 %v8016_v16, %v7984_v31  ;;  %v8022_v57 = vpop.f32.mrf.mxu1  ;;  %v4119_v20 = vand.u32 4294901760, %v4118_v60  ;;  %v3648_v60 = vadd.f32 %v7191_v42, %v7175_v52 }
 0x25a   : > { %v3871_v39 = vadd.f32 %v7222_v44, %v3759_v17  ;;  %vm3712_vm9 = vcmp.eq.s32.totalorder %v9156_v40, %v3696_v51  ;;  %8676 = vset.pattern.permute.xlu1 %v13471_v24  ;;  %v11550_v27 = vpop.f32.mrf.mxu0 }
 0x25b   : > { %13546 = vst [vmem:[#allocation72_spill] sm:$0xff] %v11546_v54  ;;  %v7207_v46 = vsel %vm3712_vm9, 1.0, %v13403_v36  ;;  %5199 = vperm.xlu1 %8676, %v11555_v12   ;;  %8192 = vmatprep.mubr.f32.mxu0 %v4119_v20  ;;  %v11558_v16 = vpop.f32.mrf.mxu1 }
 0x25c   : > { %13547 = vst [vmem:[#allocation73_spill] sm:$0xff] %v11558_v16  ;;  %v3921_v44 = vsel %vm615_vm0, %v3871_v39, 0  ;;  %8193 = vmatmul.mubr.f32.gmra.mxu0 %v4129_v62  ;;  %v3760_v31 = vadd.f32 %v7207_v46, %v3648_v60 }
 0x25d   : > { %v8025_v51 = vpop.f32.mrf.mxu1  ;;  %v11561_v17 = vand.u32 4294901760, %v3921_v44 }
 0x25e   : > { %v3808_v49 = vpop.permute.xlu1 %3807  ;;  %v7987_v34 = vpop.f32.mrf.mxu0 }
 0x25f   : > { %13548 = vst [vmem:[#allocation74_spill] sm:$0xff] %v11561_v17  ;;  %vm3824_vm10 = vcmp.eq.s32.totalorder %v9156_v40, %v3808_v49  ;;  %8677 = vset.pattern.permute.xlu1 %v13488_v30  ;;  %v11567_v2 = vadd.f32 %v8019_v48, %v7987_v34  ;;  %8227 = vmatprep.mubr.f32.mxu1 %v11561_v17  ;;  %v11570_v52 = vpop.f32.mrf.mxu1 }
 0x260   : > { %13551 = vst [vmem:[#allocation77_spill] sm:$0xff] %v11570_v52  ;;  %v11573_v20 = vsub.f32 %v3921_v44, %v11561_v17  ;;  %v7223_v39 = vsel %vm3824_vm10, 1.0, %v13403_v36  ;;  %5417 = vperm.xlu1 %8677, %v11465_v63   ;;  %v11577_v42 = vpop.f32.mrf.mxu0  ;;  %v7295_v63 = vld [vmem:[%s13183_s1 + $0x78] sm:$0xff]  ;;  %v13558_v52 = vand.u32 4294901760, %v10980_v45 }
 0x261   : > { %13550 = vst [vmem:[#allocation76_spill] sm:$0xff] %v11567_v2  ;;  %v3872_v62 = vadd.f32 %v7223_v39, %v3760_v31  ;;  %v11605_v54 = vand.u32 4294901760, %v7295_v63 }
 0x262   : > { %v13295_v46 = vand.u32 4294901760, %v11573_v20  ;;  %v7990_v60 = vpop.f32.mrf.mxu0  ;;  %v8028_v48 = vpop.f32.mrf.mxu1 }
 0x263   : > { %v3924_v34 = vsel %vm615_vm0, %v3872_v62, 0  ;;  %v11581_v49 = vpop.permute.xlu1 %5169  ;;  %v11583_v8 = vadd.f32 %v8022_v57, %v7990_v60  ;;  %v11598_v62 = vpop.permute.xlu0 %5087  ;;  %v8726_v57 = vld [vmem:[%s8883_s25 + $0x58] sm:$0xff] }
 0x264   : > { %v4138_v44 = vsub.f32 %v11573_v20, %v13295_v46  ;;  %v11591_v17 = vand.u32 4294901760, %v3924_v34  ;;  %8678 = vset.pattern.permute.xlu1 %v13471_v24  ;;  %v11594_v31 = vpop.f32.mrf.mxu0  ;;  %v11596_v39 = vpop.f32.mrf.mxu1  ;;  %13556 = vst [vmem:[#allocation82_spill] sm:$0xff] %v11598_v62  ;;  %vm5216_vm14 = vcmp.eq.s32.totalorder %v9156_v40, %v11581_v49 }
 0x265   : > { %13552 = vst [vmem:[#allocation78_spill] sm:$0xff] %v11583_v8  ;;  %13554 = vst [vmem:[#allocation80_spill] sm:$0xff] %v11594_v31  ;;  %5202 = vperm.xlu1 %8678, %v8726_v57  }
 0x266   : > { %13553 = vst [vmem:[#allocation79_spill] sm:$0xff] %v11591_v17  ;;  %13555 = vst [vmem:[#allocation81_spill] sm:$0xff] %v11596_v39  ;;  %v4139_v60 = vand.u32 4294901760, %v4138_v44  ;;  %v11602_v8 = vsub.f32 %v3924_v34, %v11591_v17  ;;  %8228 = vmatmul.mubr.f32.gmra.mxu1 %v11591_v17  ;;  %v7993_v46 = vpop.f32.mrf.mxu0  ;;  %v8031_v2 = vpop.f32.mrf.mxu1  ;;  %v13561_v17 = vand.u32 4294901760, %v10996_v25 }
 0x267   : > { %v11607_v58 = vadd.f32 %v8025_v51, %v7993_v46  ;;  %8270 = vmatprep.mubr.f32.mxu1 %v13558_v52  ;;  %v11626_v46 = vsub.f32 %v7295_v63, %v11605_v54 }
 0x268   : > { %8195 = vmatprep.mubr.f32.mxu0 %v4139_v60  ;;  %v11611_v39 = vpop.permute.xlu1 %5060  ;;  %v11613_v62 = vpop.f32.mrf.mxu0  ;;  %v13299_v44 = vand.u32 4294901760, %v11602_v8 }
 0x269   : > { %13557 = vst [vmem:[#allocation83_spill] sm:$0xff] %v11607_v58  ;;  %13559 = vst [vmem:[#allocation84_spill] sm:$0xff] %v11613_v62  ;;  %8679 = vset.pattern.permute.xlu1 %v13497_v14  ;;  %v11617_v34 = vpop.f32.mrf.mxu1  ;;  %v13564_v62 = vand.u32 4294901760, %v11050_v41  ;;  %v11644_v63 = vand.u32 4294901760, %v11626_v46  ;;  %vm5105_vm12 = vcmp.eq.s32.totalorder %v9156_v40, %v11611_v39  ;;  %v7245_v39 = vsel %vm5217_vm11, 1.0, %v13403_v36 }
 0x26a   : > { %13560 = vst [vmem:[#allocation85_spill] sm:$0xff] %v11617_v34  ;;  %5311 = vperm.xlu1 %8679, %v11555_v12   ;;  %8271 = vmatmul.mubr.f32.vlgmr.msra.gmra.mxu1 %v13561_v17  ;;  %v7996_v51 = vpop.f32.mrf.mxu0  ;;  %v4148_v52 = vsub.f32 %v11602_v8, %v13299_v44  ;;  %13562 = vst [vmem:[#allocation86_spill] sm:$0xff] %v11626_v46  ;;  %v11633_v34 = vpop.permute.xlu0 %5090 }
 0x26b   : > { %v11628_v60 = vadd.f32 %v8028_v48, %v7996_v51  ;;  %v8034_v58 = vpop.f32.mrf.mxu1  ;;  %8273 = vmatprep.mubr.f32.mxu1 %v13564_v62  ;;  %8327 = vmatpush3.msra.mxu1 %v10661_v33  ;;  %13565 = vst [vmem:[#allocation88_spill] sm:$0xff] %v11633_v34  ;;  %13567 = vst [vmem:[#allocation90_spill] sm:$0xff] %v11644_v63  ;;  %v13568_v33 = vand.u32 4294901760, %v11023_v37 }
 0x26c   : > { %v11635_v16 = vpop.f32.mrf.mxu0  ;;  %v4149_v17 = vand.u32 4294901760, %v4148_v52  ;;  %8328 = vmatprep.subr.mxu1 %v10718_v26  ;;  %v13570_v52 = vand.u32 4294901760, %v11193_v5 }
 0x26d   : > { %13563 = vst [vmem:[#allocation87_spill] sm:$0xff] %v11628_v60  ;;  %v11638_v31 = vpop.permute.xlu1 %5281  ;;  %v11640_v44 = vpop.f32.mrf.mxu1  ;;  %8329 = vmatpush3.msra.mxu1 %v10718_v26 }
 0x26e   : > { %13566 = vst [vmem:[#allocation89_spill] sm:$0xff] %v11640_v44  ;;  %5314 = vperm.xlu1 %8679, %v8726_v57   ;;  %8196 = vmatmul.mubr.f32.gmra.mxu0 %v4149_v17  ;;  %v7999_v48 = vpop.f32.mrf.mxu0  ;;  %v11661_v17 = vpop.permute.xlu0 %5093  ;;  %vm5328_vm1 = vcmp.eq.s32.totalorder %v9156_v40, %v11638_v31 }
 0x26f   : > { %8274 = vmatmul.mubr.f32.gmra.mxu1 %v13568_v33  ;;  %v11648_v62 = vadd.f32 %v8031_v2, %v7999_v48  ;;  %v8037_v51 = vpop.f32.mrf.mxu1  ;;  %8238 = vmatprep.mubr.f32.mxu0 %v10980_v45  ;;  %13572 = vst [vmem:[#allocation93_spill] sm:$0xff] %v11661_v17  ;;  %v5814_v2 = vsub.f32 %v11626_v46, %v11644_v63  ;;  %v13573_v48 = vand.u32 4294901760, %v11174_v55  ;;  %v11670_v33 = vld [vmem:[%s8883_s25 + $0x60] sm:$0xff]  ;;  %v13576_v17 = vand.u32 4294901760, %v11302_v61  ;;  %v13589_v46 = vld [vmem:[#allocation18_spill] sm:$0xff] }
 0x270   : > { %8276 = vmatprep.mubr.f32.mxu1 %v13570_v52  ;;  %v11653_v34 = vpop.f32.mrf.mxu0  ;;  %8330 = vmatprep.subr.mxu1 %v10733_v53 }
 0x271   : > { %13569 = vst [vmem:[#allocation91_spill] sm:$0xff] %v11648_v62  ;;  %v11656_v26 = vpop.permute.xlu1 %5284  ;;  %v11658_v57 = vpop.f32.mrf.mxu1  ;;  %8331 = vmatpush3.msra.mxu1 %v10733_v53 }
 0x272   : > { %13571 = vst [vmem:[#allocation92_spill] sm:$0xff] %v11658_v57  ;;  %8680 = vset.pattern.permute.xlu1 %v13471_v24  ;;  %8239 = vmatmul.mubr.f32.vlgmr.msra.gmra.mxu0 %v10996_v25  ;;  %v8002_v45 = vpop.f32.mrf.mxu0  ;;  %vm5329_vm15 = vcmp.eq.s32.totalorder %v9156_v40, %v11656_v26 }
 0x273   : > { %8277 = vmatmul.mubr.f32.gmra.mxu1 %v13573_v48  ;;  %5205 = vperm.xlu1 %8680, %v11670_v33   ;;  %v11673_v52 = vadd.f32 %v8034_v58, %v8002_v45  ;;  %v11675_v53 = vpop.f32.mrf.mxu1  ;;  %v11690_v45 = vand.u32 4294901760, %v5814_v2 }
 0x274   : > { %13575 = vst [vmem:[#allocation95_spill] sm:$0xff] %v11675_v53  ;;  %8241 = vmatprep.mubr.f32.mxu0 %v11050_v41  ;;  %8279 = vmatprep.mubr.f32.mxu1 %v13576_v17  ;;  %v11680_v25 = vpop.f32.mrf.mxu0  ;;  %v13577_v41 = vand.u32 4294901760, %v11288_v22 }
 0x275   : > { %13574 = vst [vmem:[#allocation94_spill] sm:$0xff] %v11673_v52  ;;  %v11682_v62 = vpop.f32.mrf.mxu1  ;;  %8332 = vmatprep.subr.mxu1 %v10759_v35  ;;  %8295 = vmatpush3.msra.mxu0 %v13495_v47  ;;  %v7294_v47 = vld [vmem:[%s13183_s1 + $0x70] sm:$0xff]  ;;  %v11702_v52 = vpop.permute.xlu0 %5096 }
 0x276   : > { %v11686_v48 = vpop.permute.xlu1 %5175  ;;  %8242 = vmatmul.mubr.f32.gmra.mxu0 %v11023_v37  ;;  %v8005_v58 = vpop.f32.mrf.mxu0  ;;  %8333 = vmatpush3.msra.mxu1 %v10759_v35  ;;  %13580 = vst [vmem:[#allocation98_spill] sm:$0xff] %v11702_v52  ;;  %v13581_v35 = vand.u32 4294901760, %v11389_v1 }
 0x277   : > { %8280 = vmatmul.mubr.f32.gmra.mxu1 %v13577_v41  ;;  %8681 = vset.pattern.permute.xlu1 %v13488_v30  ;;  %v11695_v17 = vadd.f32 %v8037_v51, %v8005_v58  ;;  %v11697_v63 = vpop.f32.mrf.mxu1  ;;  %v13584_v51 = vld [vmem:[#allocation21_spill] sm:$0xff]  ;;  %v11717_v41 = vand.u32 4294901760, %v7294_v47  ;;  %vm5218_vm5 = vcmp.eq.s32.totalorder %v9156_v40, %v11686_v48 }
 0x278   : > { %13579 = vst [vmem:[#allocation97_spill] sm:$0xff] %v11697_v63  ;;  %8244 = vmatprep.mubr.f32.mxu0 %v11193_v5  ;;  %8282 = vmatprep.mubr.f32.mxu1 %v13581_v35  ;;  %v11707_v37 = vpop.f32.mrf.mxu0  ;;  %v13585_v5 = vand.u32 4294901760, %v11372_v7 }
 0x279   : > { %13578 = vst [vmem:[#allocation96_spill] sm:$0xff] %v11695_v17  ;;  %13582 = vst [vmem:[#allocation99_spill] sm:$0xff] %v11707_v37  ;;  %5423 = vperm.xlu1 %8681, %v11555_v12   ;;  %v11710_v2 = vpop.f32.mrf.mxu1  ;;  %8296 = vmatprep.subr.mxu0 %v13584_v51  ;;  %v13587_v12 = vand.u32 4294901760, %v11449_v21  ;;  %v11738_v60 = vpop.permute.xlu0 %5099 }
 0x27a   : > { %13583 = vst [vmem:[#allocation100_spill] sm:$0xff] %v11710_v2  ;;  %8245 = vmatmul.mubr.f32.gmra.mxu0 %v11174_v55  ;;  %v11714_v58 = vpop.f32.mrf.mxu0  ;;  %8390 = vmatprep.subr.mxu1 %v11690_v45  ;;  %v7293_v55 = vld [vmem:[%s13183_s1 + $0x68] sm:$0xff]  ;;  %13590 = vst [vmem:[#allocation18_spill] sm:$0xff] %v11738_v60 }
 0x27b   : > { %8283 = vmatmul.mubr.f32.gmra.mxu1 %v13585_v5  ;;  %v11721_v35 = vpop.permute.xlu1 %5393  ;;  %v11723_v52 = vpop.f32.mrf.mxu1  ;;  %8247 = vmatprep.mubr.f32.mxu0 %v11302_v61  ;;  %v8728_v61 = vld [vmem:[%s8883_s25 + $0x68] sm:$0xff]  ;;  %v11747_v37 = vand.u32 4294901760, %v7293_v55 }
 0x27c   : > { %13586 = vst [vmem:[#allocation21_spill] sm:$0xff] %v11723_v52  ;;  %8285 = vmatprep.mubr.f32.mxu1 %v13587_v12  ;;  %v11731_v17 = vpop.f32.mrf.mxu0  ;;  %8297 = vmatpush3.msra.mxu0 %v13584_v51  ;;  %v11745_v12 = vsub.f32 %v7294_v47, %v11717_v41  ;;  %v7292_v51 = vld [vmem:[%s13183_s1 + $0x60] sm:$0xff]  ;;  %vm5440_vm2 = vcmp.eq.s32.totalorder %v9156_v40, %v11721_v35 }
 0x27d   : > { %8682 = vset.pattern.permute.xlu1 %v13471_v24  ;;  %v11735_v5 = vpop.f32.mrf.mxu1  ;;  %8298 = vmatprep.subr.mxu0 %v13589_v46  ;;  %13592 = vst [vmem:[#allocation103_spill] sm:$0xff] %v11747_v37  ;;  %v11767_v53 = vand.u32 4294901760, %v7292_v51 }
 0x27e   : > { %13588 = vst [vmem:[#allocation101_spill] sm:$0xff] %v11735_v5  ;;  %5208 = vperm.xlu1 %8682, %v8728_v61   ;;  %8248 = vmatmul.mubr.f32.gmra.mxu0 %v11288_v22  ;;  %v11742_v57 = vpop.f32.mrf.mxu0  ;;  %13591 = vst [vmem:[#allocation102_spill] sm:$0xff] %v11745_v12  ;;  %v13593_v5 = vand.u32 4294901760, %v11441_v28  ;;  %v13595_v22 = vand.u32 4294901760, %v11520_v3 }
 0x27f   : > { %v11754_v52 = vpop.f32.mrf.mxu1  ;;  %8250 = vmatprep.mubr.f32.mxu0 %v11389_v1  ;;  %8299 = vmatpush3.msra.mxu0 %v13589_v46  ;;  %v13599_v46 = vand.u32 4294901760, %v11506_v32 }
 0x280   : > { %8286 = vmatmul.mubr.f32.gmra.mxu1 %v13593_v5  ;;  %13594 = vst [vmem:[#allocation104_spill] sm:$0xff] %v11754_v52  ;;  %v11759_v60 = vpop.permute.xlu1 %5178  ;;  %v11761_v47 = vpop.f32.mrf.mxu0  ;;  %8300 = vmatprep.subr.mxu0 %v10806_v0  ;;  %v11774_v5 = vand.u32 4294901760, %v11745_v12 }
 0x281   : > { %8288 = vmatprep.mubr.f32.mxu1 %v13595_v22  ;;  %v11764_v63 = vpop.f32.mrf.mxu1  ;;  %v11777_v22 = vsub.f32 %v7293_v55, %v11747_v37  ;;  %8301 = vmatpush3.msra.mxu0 %v10806_v0  ;;  %v11797_v37 = vsub.f32 %v7292_v51, %v11767_v53  ;;  %v13605_v0 = vand.u32 4294901760, %v11602_v8  ;;  %vm5219_vm7 = vcmp.eq.s32.totalorder %v9156_v40, %v11759_v60 }
 0x282   : > { %13596 = vst [vmem:[#allocation105_spill] sm:$0xff] %v11764_v63  ;;  %8683 = vset.pattern.permute.xlu1 %v13497_v14  ;;  %8251 = vmatmul.mubr.f32.gmra.mxu0 %v11372_v7  ;;  %v11771_v1 = vpop.f32.mrf.mxu0  ;;  %13597 = vst [vmem:[#allocation106_spill] sm:$0xff] %v11774_v5  ;;  %v11784_v63 = vpop.permute.xlu0 %5102  ;;  %v13602_v7 = vand.u32 4294901760, %v11573_v20  ;;  %v7247_v48 = vsel %vm5219_vm7, 1.0, %v13403_v36 }
 0x283   : > { %13598 = vst [vmem:[#allocation107_spill] sm:$0xff] %v11777_v22  ;;  %5317 = vperm.xlu1 %8683, %v11670_v33   ;;  %v11782_v52 = vpop.f32.mrf.mxu1  ;;  %13601 = vst [vmem:[#allocation109_spill] sm:$0xff] %v11784_v63  ;;  %8253 = vmatprep.mubr.f32.mxu0 %v11449_v21 }
 0x284   : > { %8289 = vmatmul.mubr.f32.gmra.mxu1 %v13599_v46  ;;  %13600 = vst [vmem:[#allocation108_spill] sm:$0xff] %v11782_v52  ;;  %v11789_v2 = vpop.f32.mrf.mxu0  ;;  %13603 = vst [vmem:[#allocation110_spill] sm:$0xff] %v11797_v37  ;;  %v5821_v46 = vsub.f32 %v11745_v12, %v11774_v5  ;;  %8358 = vmatprep.subr.mxu0 %v11605_v54  ;;  %v7229_v5 = vsel %vm5105_vm12, 1.0, %v13403_v36  ;;  %v7228_v52 = vsel %vm5104_vm13, 1.0, %v13403_v36 }
 0x285   : > { %8291 = vmatprep.mubr.f32.mxu1 %v13602_v7  ;;  %v11791_v44 = vpop.permute.xlu1 %5287  ;;  %v11793_v55 = vpop.f32.mrf.mxu1  ;;  %v11807_v7 = vand.u32 4294901760, %v11777_v22  ;;  %vm5109_vm12 = vcmp.eq.s32.totalorder %v9156_v40, %v11481_v6 }
 0x286   : > { %8254 = vmatmul.mubr.f32.gmra.mxu0 %v11441_v28  ;;  %v11802_v21 = vpop.f32.mrf.mxu0  ;;  %v5822_v12 = vand.u32 4294901760, %v5821_v46  ;;  %v7261_v46 = vsel %vm5329_vm15, 1.0, %v13403_v36  ;;  %vm5330_vm8 = vcmp.eq.s32.totalorder %v9156_v40, %v11791_v44 }
 0x287   : > { %13604 = vst [vmem:[#allocation111_spill] sm:$0xff] %v11807_v7  ;;  %5320 = vperm.xlu1 %8683, %v8728_v61   ;;  %v11814_v56 = vpop.f32.mrf.mxu1  ;;  %8256 = vmatprep.mubr.f32.mxu0 %v11520_v3  ;;  %v5397_v3 = vpop.permute.xlu0 %5396  ;;  %v7262_v4 = vsel %vm5330_vm8, 1.0, %v13403_v36 }
 0x288   : > { %8292 = vmatmul.mubr.f32.gmra.mxu1 %v13605_v0  ;;  %13606 = vst [vmem:[#allocation112_spill] sm:$0xff] %v11814_v56  ;;  %v11822_v28 = vpop.f32.mrf.mxu0  ;;  %v11832_v0 = vand.u32 4294901760, %v11797_v37  ;;  %v5828_v56 = vsub.f32 %v11777_v22, %v11807_v7  ;;  %v5265_v7 = vadd.f32 %v7245_v39, %v7229_v5  ;;  %v7260_v22 = vsel %vm5328_vm1, 1.0, %v13403_v36 }
 0x289   : > { %8334 = vmatprep.mubr.f32.mxu1 %v10931_v50  ;;  %v11827_v61 = vpop.permute.xlu1 %5290  ;;  %v11829_v51 = vpop.f32.mrf.mxu1  ;;  %vm5441_vm3 = vcmp.eq.s32.totalorder %v9156_v40, %v5397_v3  ;;  %v7230_v3 = vsel %vm5106_vm4, 1.0, %v13403_v36 }
 0x28a   : > { %13607 = vst [vmem:[#allocation113_spill] sm:$0xff] %v11829_v51  ;;  %13608 = vst [vmem:[#allocation114_spill] sm:$0xff] %v11832_v0  ;;  %8257 = vmatmul.mubr.f32.gmra.mxu0 %v11506_v32  ;;  %v11838_v63 = vpop.f32.mrf.mxu0  ;;  %v7244_v51 = vsel %vm5216_vm14, 1.0, %v13403_v36  ;;  %v5829_v31 = vand.u32 4294901760, %v5828_v56  ;;  %v5377_v39 = vadd.f32 %v7261_v46, %v5265_v7  ;;  %vm5331_vm9 = vcmp.eq.s32.totalorder %v9156_v40, %v11827_v61 }
 0x28b   : > { %13609 = vst [vmem:[#allocation115_spill] sm:$0xff] %v11838_v63  ;;  %8684 = vset.pattern.permute.xlu1 %v13471_v24  ;;  %v11852_v32 = vpop.f32.mrf.mxu1  ;;  %8259 = vmatprep.mubr.f32.mxu0 %v11573_v20  ;;  %v5264_v20 = vadd.f32 %v7244_v51, %v7228_v52  ;;  %v7277_v52 = vsel %vm5441_vm3, 1.0, %v13403_v36  ;;  %v5403_v56 = vpop.permute.xlu0 %5402 }
 0x28c   : > { %8335 = vmatmul.mubr.f32.vlgmr.msra.gmra.mxu1 %v10962_v19  ;;  %13610 = vst [vmem:[#allocation116_spill] sm:$0xff] %v11852_v32  ;;  %5211 = vperm.xlu1 %8684, %v11861_v11   ;;  %v11865_v49 = vpop.f32.mrf.mxu0  ;;  %v5835_v32 = vsub.f32 %v11797_v37, %v11832_v0  ;;  %vm5443_vm11 = vcmp.eq.s32.totalorder %v9156_v40, %v5403_v56 }
 0x28d   : > { %8337 = vmatprep.mubr.f32.mxu1 %v11030_v15  ;;  %v11873_v26 = vpop.f32.mrf.mxu1  ;;  %8391 = vmatpush3.msra.mxu1 %v11690_v45 }
 0x28e   : > { %13611 = vst [vmem:[#allocation117_spill] sm:$0xff] %v11873_v26  ;;  %v11878_v63 = vpop.permute.xlu1 %5181  ;;  %8260 = vmatmul.mubr.f32.gmra.mxu0 %v11602_v8  ;;  %v11881_v5 = vpop.f32.mrf.mxu0  ;;  %8392 = vmatprep.subr.mxu1 %v5822_v12  ;;  %v7276_v26 = vsel %vm5440_vm2, 1.0, %v13403_v36  ;;  %v5376_v8 = vadd.f32 %v7260_v22, %v5264_v20  ;;  %v5836_v22 = vand.u32 4294901760, %v5835_v32 }
 0x28f   : > { %v11888_v45 = vpop.f32.mrf.mxu1  ;;  %8302 = vmatprep.mubr.f32.mxu0 %v10931_v50  ;;  %8393 = vmatpush3.msra.mxu1 %v5822_v12  ;;  %v7246_v12 = vsel %vm5218_vm5, 1.0, %v13403_v36  ;;  %vm5220_vm2 = vcmp.eq.s32.totalorder %v9156_v40, %v11878_v63 }
 0x290   : > { %8338 = vmatmul.mubr.f32.gmra.mxu1 %v11008_v59  ;;  %13612 = vst [vmem:[#allocation118_spill] sm:$0xff] %v11888_v45  ;;  %8685 = vset.pattern.permute.xlu1 %v13488_v30  ;;  %v11900_v35 = vpop.f32.mrf.mxu0  ;;  %v5488_v7 = vadd.f32 %v7276_v26, %v5376_v8  ;;  %v5266_v60 = vadd.f32 %v7246_v12, %v7230_v3  ;;  %v13614_v3 = vld [vmem:[#allocation80_spill] sm:$0xff] }
 0x291   : > { %8340 = vmatprep.mubr.f32.mxu1 %v11180_v9  ;;  %5429 = vperm.xlu1 %8685, %v11670_v33   ;;  %v11907_v50 = vpop.f32.mrf.mxu1  ;;  %v5489_v33 = vadd.f32 %v7277_v52, %v5377_v39  ;;  %v5267_v39 = vadd.f32 %v7247_v48, %v7231_v29  ;;  %v13617_v29 = vld [vmem:[#allocation77_spill] sm:$0xff] }
 0x292   : > { %8303 = vmatmul.mubr.f32.vlgmr.msra.gmra.mxu0 %v10962_v19  ;;  %v11912_v51 = vpop.f32.mrf.mxu0  ;;  %8394 = vmatprep.subr.mxu1 %v5829_v31  ;;  %v5510_v20 = vsel %vm615_vm0, %v5488_v7, 0  ;;  %v5378_v52 = vadd.f32 %v7262_v4, %v5266_v60  ;;  %v7279_v60 = vsel %vm5443_vm11, 1.0, %v13403_v36 }
 0x293   : > { %v5400_v19 = vpop.permute.xlu1 %5399  ;;  %v11925_v32 = vpop.f32.mrf.mxu1  ;;  %8305 = vmatprep.mubr.f32.mxu0 %v11030_v15  ;;  %8395 = vmatpush3.msra.mxu1 %v5829_v31  ;;  %v2612_v15 = vadd.f32 %v11516_v38, %v11550_v27  ;;  %v7263_v31 = vsel %vm5331_vm9, 1.0, %v13403_v36  ;;  %v11956_v27 = vld [vmem:[%s8883_s25 + $0x78] sm:$0xff]  ;;  %v5513_v38 = vsel %vm615_vm0, %v5489_v33, 0  ;;  %v13615_v33 = vld [vmem:[#allocation73_spill] sm:$0xff]  ;;  %s8810_s25 = smov 32  }
 0x294   : > { %8341 = vmatmul.mubr.f32.gmra.mxu1 %v11164_v18  ;;  %vm5442_vm10 = vcmp.eq.s32.totalorder %v9156_v40, %v5400_v19  ;;  %v11938_v46 = vpop.f32.mrf.mxu0  ;;  %8396 = vmatprep.subr.mxu1 %v5836_v22  ;;  %v2636_v12 = vadd.f32 %v13615_v33, %v13614_v3  ;;  %v13616_v19 = vld [vmem:[#allocation84_spill] sm:$0xff]  ;;  %v11996_v4 = vand.u32 4294901760, %v5513_v38  ;;  %v5409_v3 = vpop.permute.xlu0 %5408 }
 0x295   : > { %8343 = vmatprep.mubr.f32.mxu1 %v11292_v13  ;;  %8687 = vset.pattern.permute.xlu1 %v13471_v24  ;;  %v11947_v26 = vpop.f32.mrf.mxu1  ;;  %v2782_v44 = vadd.f32 %v11731_v17, %v2612_v15  ;;  %v7278_v61 = vsel %vm5442_vm10, 1.0, %v13403_v36  ;;  %v11982_v48 = vadd.f32 %v13617_v29, %v13616_v19  ;;  %v5379_v15 = vadd.f32 %v7263_v31, %v5267_v39  ;;  %v13620_v33 = vld [vmem:[#allocation72_spill] sm:$0xff] }
 0x296   : > { %5214 = vperm.xlu1 %8687, %v11956_v27   ;;  %8306 = vmatmul.mubr.f32.gmra.mxu0 %v11008_v59  ;;  %v11960_v24 = vpop.f32.mrf.mxu0  ;;  %v2624_v59 = vadd.f32 %v11536_v23, %v11577_v42  ;;  %v13618_v23 = vld [vmem:[#allocation68_spill] sm:$0xff]  ;;  %v13619_v42 = vld [vmem:[#allocation81_spill] sm:$0xff]  ;;  %v5490_v31 = vadd.f32 %v7278_v61, %v5378_v52  ;;  %v2789_v19 = vadd.f32 %v11714_v58, %v13620_v33  ;;  %v13623_v52 = vld [vmem:[#allocation78_spill] sm:$0xff] }
 0x297   : > { %13613 = vst [vmem:[#allocation119_spill] sm:$0xff] %v11960_v24  ;;  %v11968_v8 = vpop.f32.mrf.mxu1  ;;  %8308 = vmatprep.mubr.f32.mxu0 %v11180_v9  ;;  %8397 = vmatpush3.msra.mxu1 %v5836_v22  ;;  %v11984_v9 = vand.u32 4294901760, %v5510_v20  ;;  %vm5108_vm13 = vcmp.eq.s32.totalorder %v9156_v40, %v13618_v23  ;;  %v11994_v22 = vadd.f32 %v13619_v42, %v11635_v16  ;;  %v13621_v16 = vld [vmem:[#allocation62_spill] sm:$0xff] }
 0x298   : > { %8344 = vmatmul.mubr.f32.gmra.mxu1 %v11281_v43  ;;  %v5185_v17 = vpop.permute.xlu1 %5184  ;;  %v11976_v7 = vpop.f32.mrf.mxu0  ;;  %8359 = vmatpush3.msra.mxu0 %v11605_v54  ;;  %v2796_v29 = vadd.f32 %v11761_v47, %v2624_v59  ;;  %v2964_v56 = vadd.f32 %v11682_v62, %v2782_v44  ;;  %v2817_v58 = vadd.f32 %v11771_v1, %v13623_v52  ;;  %v13624_v47 = vld [vmem:[#allocation23_spill] sm:$0xff] }
 0x299   : > { %8346 = vmatprep.mubr.f32.mxu1 %v11375_v10  ;;  %v11986_v0 = vpop.f32.mrf.mxu1  ;;  %8454 = vmatprep.subr.mxu1 %v11605_v54  ;;  %vm5221_vm14 = vcmp.eq.s32.totalorder %v9156_v40, %v5185_v17  ;;  %v12023_v62 = vsub.f32 %v5510_v20, %v11984_v9  ;;  %v5491_v44 = vadd.f32 %v7279_v60, %v5379_v15  ;;  %v13626_v20 = vld [vmem:[#allocation89_spill] sm:$0xff]  ;;  %v5516_v15 = vsel %vm615_vm0, %v5490_v31, 0  ;;  %v13629_v31 = vld [vmem:[#allocation95_spill] sm:$0xff] }
 0x29a   : > { %8688 = vset.pattern.permute.xlu1 %v13497_v14  ;;  %8309 = vmatmul.mubr.f32.gmra.mxu0 %v11164_v18  ;;  %v8112_v39 = vpop.f32.mrf.mxu0  ;;  %v7233_v18 = vsel %vm5109_vm12, 1.0, %v13403_v36  ;;  %v13622_v14 = vld [vmem:[#allocation76_spill] sm:$0xff]  ;;  %vm5445_vm15 = vcmp.eq.s32.totalorder %v9156_v40, %v5409_v3  ;;  %v7249_v52 = vsel %vm5221_vm14, 1.0, %v13403_v36  ;;  %v12063_v24 = vand.u32 4294901760, %v5516_v15 }
 0x29b   : > { %5323 = vperm.xlu1 %8688, %v11861_v11   ;;  %v12008_v42 = vpop.f32.mrf.mxu1  ;;  %v2803_v61 = vadd.f32 %v11742_v57, %v13622_v14  ;;  %8311 = vmatprep.mubr.f32.mxu0 %v11292_v13  ;;  %v13625_v57 = vld [vmem:[#allocation85_spill] sm:$0xff]  ;;  %v12036_v13 = vsub.f32 %v5513_v38, %v11996_v4  ;;  %v12040_v14 = vadd.f32 %v13626_v20, %v11680_v25  ;;  %v13628_v25 = vld [vmem:[#allocation100_spill] sm:$0xff] }
 0x29c   : > { %8347 = vmatmul.mubr.f32.gmra.mxu1 %v13621_v16  ;;  %v3166_v11 = vpop.f32.mrf.mxu0  ;;  %8360 = vmatprep.subr.mxu0 %v11717_v41  ;;  %v12033_v1 = vadd.f32 %v13625_v57, %v11653_v34  ;;  %v13627_v38 = vld [vmem:[#allocation5_spill] sm:$0xff]  ;;  %v2980_v57 = vadd.f32 %v13628_v25, %v2796_v29  ;;  %v2972_v20 = vadd.f32 %v13629_v31, %v2789_v19  ;;  %v13633_v31 = vld [vmem:[#allocation103_spill] sm:$0xff] }
 0x29d   : > { %8349 = vmatprep.mubr.f32.mxu1 %v13624_v47  ;;  %v12025_v59 = vpop.permute.xlu1 %5293  ;;  %v3167_v6 = vadd.f32 %v3166_v11, %v2964_v56  ;;  %v12027_v33 = vpop.f32.mrf.mxu1  ;;  %v2810_v56 = vadd.f32 %v11789_v2, %v2636_v12  ;;  %v13631_v2 = vld [vmem:[#allocation69_spill] sm:$0xff]  ;;  %8361 = vmatpush3.msra.mxu0 %v11717_v41 }
 0x29e   : > { %8312 = vmatmul.mubr.f32.gmra.mxu0 %v11281_v43  ;;  %v8115_v60 = vpop.f32.mrf.mxu0  ;;  %v13630_v43 = vld [vmem:[#allocation97_spill] sm:$0xff]  ;;  %v3173_v3 = vadd.f32 %v8112_v39, %v2972_v20  ;;  %8362 = vmatprep.subr.mxu0 %v13633_v31  ;;  %v13636_v20 = vld [vmem:[#allocation83_spill] sm:$0xff]  ;;  %vm5332_vm3 = vcmp.eq.s32.totalorder %v9156_v40, %v12025_v59 }
 0x29f   : > { %v3332_v34 = vadd.f32 %v11947_v26, %v3167_v6  ;;  %5326 = vperm.xlu1 %8688, %v11956_v27   ;;  %v12051_v11 = vpop.f32.mrf.mxu1  ;;  %v2988_v37 = vadd.f32 %v13630_v43, %v2803_v61  ;;  %8314 = vmatprep.mubr.f32.mxu0 %v11375_v10  ;;  %v13632_v12 = vld [vmem:[#allocation21_spill] sm:$0xff]  ;;  %v7281_v26 = vsel %vm5445_vm15, 1.0, %v13403_v36  ;;  %v5519_v6 = vsel %vm615_vm0, %v5491_v44, 0 }
 0x2a0   : > { %8350 = vmatmul.mubr.f32.gmra.mxu1 %v13627_v38  ;;  %v3178_v17 = vpop.f32.mrf.mxu0  ;;  %v3004_v45 = vadd.f32 %v13632_v12, %v2817_v58  ;;  %v13329_v10 = vand.u32 4294901760, %v12023_v62  ;;  %v13328_v61 = vand.u32 4294901760, %v12036_v13  ;;  %v5269_v58 = vadd.f32 %v7249_v52, %v7233_v18  ;;  %v13635_v39 = vld [vmem:[#allocation101_spill] sm:$0xff]  ;;  %8363 = vmatpush3.msra.mxu0 %v13633_v31 }
 0x2a1   : > { %8352 = vmatprep.mubr.f32.mxu1 %v13631_v2  ;;  %v5297_v29 = vpop.permute.xlu1 %5296  ;;  %v3179_v25 = vadd.f32 %v3178_v17, %v2980_v57  ;;  %v12065_v19 = vpop.f32.mrf.mxu1  ;;  %6703 = vrot.lane.b32.xlu0 %v3332_v34, %s8810_s25  ;;  %v2824_v57 = vadd.f32 %v11822_v28, %v11982_v48  ;;  %v13634_v17 = vld [vmem:[#allocation16_spill] sm:$0xff]  ;;  %v2996_v52 = vadd.f32 %v13635_v39, %v2810_v56  ;;  %v12085_v12 = vand.u32 4294901760, %v5519_v6 }
 0x2a2   : > { %vm5333_vm1 = vcmp.eq.s32.totalorder %v9156_v40, %v5297_v29  ;;  %8315 = vmatmul.mubr.f32.gmra.mxu0 %v13621_v16  ;;  %v8118_v44 = vpop.f32.mrf.mxu0  ;;  %v2831_v16 = vadd.f32 %v11802_v21, %v13636_v20  ;;  %v12096_v48 = vsub.f32 %v5516_v15, %v12063_v24  ;;  %v13637_v21 = vld [vmem:[#allocation74_spill] sm:$0xff]  ;;  %v3185_v23 = vadd.f32 %v8115_v60, %v2988_v37  ;;  %v13639_v37 = vld [vmem:[#allocation105_spill] sm:$0xff] }
 0x2a3   : > { %v7265_v34 = vsel %vm5333_vm1, 1.0, %v13403_v36  ;;  %v3344_v43 = vadd.f32 %v11986_v0, %v3179_v25  ;;  %8689 = vset.pattern.permute.xlu1 %v13488_v30  ;;  %v12080_v18 = vpop.f32.mrf.mxu1  ;;  %8317 = vmatprep.mubr.f32.mxu0 %v13624_v47  ;;  %v7232_v0 = vsel %vm5108_vm13, 1.0, %v13403_v36  ;;  %v3338_v47 = vadd.f32 %v11925_v32, %v3173_v3  ;;  %v13638_v3 = vld [vmem:[#allocation79_spill] sm:$0xff] }
 0x2a4   : > { %8353 = vmatmul.mubr.f32.gmra.mxu1 %v13634_v17  ;;  %v5381_v28 = vadd.f32 %v7265_v34, %v5269_v58  ;;  %5438 = vperm.xlu1 %8689, %v11956_v27   ;;  %v3190_v30 = vpop.f32.mrf.mxu0  ;;  %v12105_v27 = vsub.f32 %v12023_v62, %v13329_v10  ;;  %v2838_v34 = vadd.f32 %v11865_v49, %v11994_v22  ;;  %v13640_v49 = vld [vmem:[#allocation99_spill] sm:$0xff]  ;;  %v13641_v22 = vld [vmem:[#allocation92_spill] sm:$0xff] }
 0x2a5   : > { %8355 = vmatprep.mubr.f32.mxu1 %v13637_v21  ;;  %v3191_v56 = vadd.f32 %v3190_v30, %v2996_v52  ;;  %v12099_v29 = vpop.f32.mrf.mxu1  ;;  %6707 = vrot.lane.b32.xlu0 %v3344_v43, %s8810_s25  ;;  %v7248_v43 = vsel %vm5220_vm2, 1.0, %v13403_v36  ;;  %v3012_v60 = vadd.f32 %v13639_v37, %v2824_v57  ;;  %v12135_v63 = vsub.f32 %v5519_v6, %v12085_v12 }
 0x2a6   : > { %v5493_v15 = vadd.f32 %v7281_v26, %v5381_v28  ;;  %v12110_v25 = vpop.permute.xlu1 %5187  ;;  %8318 = vmatmul.mubr.f32.gmra.mxu0 %v13627_v38  ;;  %v8121_v58 = vpop.f32.mrf.mxu0  ;;  %v12128_v38 = vsub.f32 %v12036_v13, %v13328_v61  ;;  %v12132_v26 = vadd.f32 %v13641_v22, %v13640_v49  ;;  %v7264_v57 = vsel %vm5332_vm3, 1.0, %v13403_v36  ;;  %8364 = vmatprep.subr.mxu0 %v11767_v53 }
 0x2a7   : > { %v3356_v32 = vadd.f32 %v12027_v33, %v3191_v56  ;;  %v12121_v39 = vpop.f32.mrf.mxu1  ;;  %8320 = vmatprep.mubr.f32.mxu0 %v13631_v2  ;;  %v3197_v52 = vadd.f32 %v8118_v44, %v3004_v45  ;;  %v13327_v6 = vand.u32 4294901760, %v12096_v48  ;;  %v5268_v28 = vadd.f32 %v7248_v43, %v7232_v0  ;;  %v13644_v43 = vld [vmem:[#allocation115_spill] sm:$0xff]  ;;  %8365 = vmatpush3.msra.mxu0 %v11767_v53 }
 0x2a8   : > { %8356 = vmatmul.mubr.f32.gmra.mxu1 %v13638_v3  ;;  %v5525_v33 = vsel %vm615_vm0, %v5493_v15, 0  ;;  %6705 = vrot.lane.b32.xlu1 %v3338_v47, %s8810_s25  ;;  %v3202_v2 = vpop.f32.mrf.mxu0  ;;  %v3350_v30 = vadd.f32 %v11968_v8, %v3185_v23  ;;  %v13642_v47 = vld [vmem:[#allocation104_spill] sm:$0xff]  ;;  %v2852_v45 = vadd.f32 %v11900_v35, %v12033_v1  ;;  %v3028_v8 = vadd.f32 %v11793_v55, %v2838_v34  ;;  %v13643_v23 = vld [vmem:[#allocation87_spill] sm:$0xff] }
 0x2a9   : > { %8398 = vmatprep.mubr.f32.mxu1 %v11984_v9  ;;  %v3203_v20 = vadd.f32 %v3202_v2, %v3012_v60  ;;  %6711 = vrot.lane.b32.xlu0 %v3356_v32, %s8810_s25  ;;  %v12148_v56 = vand.u32 4294901760, %v5525_v33  ;;  %v3020_v15 = vadd.f32 %v13642_v47, %v2831_v16  ;;  %v3391_v37 = vpop.f32.mrf.mxu1  ;;  %v5630_v16 = vand.u32 4294901760, %v12105_v27  ;;  %v13645_v2 = vld [vmem:[#allocation86_spill] sm:$0xff]  ;;  %v13648_v47 = vld [vmem:[#allocation108_spill] sm:$0xff] }
 0x2aa   : > { %8321 = vmatmul.mubr.f32.gmra.mxu0 %v13634_v17  ;;  %v8124_v59 = vpop.f32.mrf.mxu0  ;;  %v2845_v17 = vadd.f32 %v13644_v43, %v13643_v23  ;;  %v5380_v32 = vadd.f32 %v7264_v57, %v5268_v28  ;;  %v13326_v1 = vand.u32 4294901760, %v12135_v63  ;;  %v5649_v27 = vsub.f32 %v12096_v48, %v13327_v6  ;;  %8422 = vmatprep.subr.mxu0 %v13645_v2  ;;  %v13647_v28 = vld [vmem:[#allocation91_spill] sm:$0xff] }
 0x2ab   : > { %v3368_v44 = vadd.f32 %v12065_v19, %v3203_v20  ;;  %v5406_v0 = vpop.permute.xlu1 %5405  ;;  %8323 = vmatprep.mubr.f32.mxu0 %v13637_v21  ;;  %v3362_v19 = vadd.f32 %v12008_v42, %v3197_v52  ;;  %v12174_v34 = vsub.f32 %v5525_v33, %v12148_v56  ;;  %v3209_v60 = vadd.f32 %v8121_v58, %v3020_v15  ;;  %v12176_v22 = vpop.f32.mrf.mxu1  ;;  %v13646_v33 = vld [vmem:[#allocation113_spill] sm:$0xff] }
 0x2ac   : > { %8399 = vmatmul.mubr.f32.vlgmr.msra.gmra.mxu1 %v11996_v4  ;;  %vm5444_vm4 = vcmp.eq.s32.totalorder %v9156_v40, %v5406_v0  ;;  %6709 = vrot.lane.b32.xlu1 %v3350_v30, %s8810_s25  ;;  %v3214_v35 = vpop.f32.mrf.mxu0  ;;  %v5640_v57 = vand.u32 4294901760, %v12128_v38  ;;  %v2866_v52 = vadd.f32 %v11938_v46, %v12040_v14  ;;  %v3044_v58 = vadd.f32 %v13646_v33, %v2852_v45  ;;  %v13649_v14 = vld [vmem:[#allocation94_spill] sm:$0xff] }
 0x2ad   : > { %8401 = vmatprep.mubr.f32.mxu1 %v12063_v24  ;;  %v7280_v21 = vsel %vm5444_vm4, 1.0, %v13403_v36  ;;  %v3215_v55 = vadd.f32 %v3214_v35, %v3028_v8  ;;  %6715 = vrot.lane.b32.xlu0 %v3368_v44, %s8810_s25  ;;  %v2859_v30 = vadd.f32 %v11881_v5, %v13647_v28  ;;  %v3036_v15 = vadd.f32 %v13648_v47, %v2845_v17  ;;  %v13650_v8 = vld [vmem:[#allocation70_spill] sm:$0xff]  ;;  %v3403_v43 = vpop.f32.mrf.mxu1 }
 0x2ae   : > { %v5492_v49 = vadd.f32 %v7280_v21, %v5380_v32  ;;  %8324 = vmatmul.mubr.f32.gmra.mxu0 %v13638_v3  ;;  %v8127_v42 = vpop.f32.mrf.mxu0  ;;  %v5659_v46 = vsub.f32 %v12135_v63, %v13326_v1  ;;  %8455 = vmatpush3.msra.mxu1 %v11605_v54  ;;  %v5650_v0 = vand.u32 4294901760, %v5649_v27  ;;  %vm5111_vm5 = vcmp.eq.s32.totalorder %v9156_v40, %v13650_v8  ;;  %v13651_v21 = vld [vmem:[#allocation117_spill] sm:$0xff]  ;;  %v13652_v27 = vld [vmem:[#allocation112_spill] sm:$0xff] }
 0x2af   : > { %v3380_v20 = vadd.f32 %v12099_v29, %v3215_v55  ;;  %8366 = vmatprep.mubr.f32.mxu0 %v5630_v16  ;;  %v2873_v29 = vadd.f32 %v11912_v51, %v13649_v14  ;;  %8456 = vmatprep.subr.mxu1 %v11717_v41  ;;  %v3374_v16 = vadd.f32 %v12051_v11, %v3209_v60  ;;  %v13324_v32 = vand.u32 4294901760, %v12174_v34 }
 0x2b0   : > { %8402 = vmatmul.mubr.f32.gmra.mxu1 %v12085_v12  ;;  %v5522_v3 = vsel %vm615_vm0, %v5492_v49, 0  ;;  %6713 = vrot.lane.b32.xlu1 %v3362_v19, %s8810_s25  ;;  %v5191_v38 = vpop.permute.xlu1 %5190  ;;  %v3226_v44 = vpop.f32.mrf.mxu0  ;;  %v3221_v23 = vadd.f32 %v8124_v59, %v3036_v15  ;;  %v2880_v51 = vadd.f32 %v11976_v7, %v12132_v26  ;;  %v3060_v55 = vadd.f32 %v13651_v21, %v2866_v52  ;;  %v13653_v49 = vld [vmem:[#allocation116_spill] sm:$0xff] }
 0x2b1   : > { %v12197_v45 = vand.u32 4294901760, %v5522_v3  ;;  %v3227_v5 = vadd.f32 %v3226_v44, %v3044_v58  ;;  %6719 = vrot.lane.b32.xlu0 %v3380_v20, %s8810_s25  ;;  %8457 = vmatpush3.msra.mxu1 %v11717_v41  ;;  %v3052_v11 = vadd.f32 %v13652_v27, %v2859_v30  ;;  %vm5223_vm6 = vcmp.eq.s32.totalorder %v9156_v40, %v5191_v38  ;;  %v5415_v52 = vpop.permute.xlu0 %5414  ;;  %v8165_v58 = vpop.f32.mrf.mxu1  ;;  %v13656_v38 = vld [vmem:[#allocation102_spill] sm:$0xff] }
 0x2b2   : > { %8367 = vmatmul.mubr.f32.vlgmr.msra.gmra.mxu0 %v5640_v57  ;;  %v8130_v17 = vpop.f32.mrf.mxu0  ;;  %v5660_v60 = vand.u32 4294901760, %v5659_v46  ;;  %v3068_v57 = vadd.f32 %v13653_v49, %v2873_v29  ;;  %v7235_v20 = vsel %vm5111_vm5, 1.0, %v13403_v36  ;;  %v3386_v33 = vadd.f32 %v12080_v18, %v3221_v23  ;;  %8458 = vmatprep.subr.mxu1 %v13633_v31  ;;  %v13655_v46 = vld [vmem:[#allocation119_spill] sm:$0xff] }
 0x2b3   : > { %v12209_v35 = vsub.f32 %v5522_v3, %v12197_v45  ;;  %v3392_v19 = vadd.f32 %v3391_v37, %v3227_v5  ;;  %8369 = vmatprep.mubr.f32.mxu0 %v5650_v0  ;;  %8404 = vmatprep.mubr.f32.mxu1 %v12197_v45  ;;  %v3233_v28 = vadd.f32 %v8127_v42, %v3052_v11  ;;  %v7251_v47 = vsel %vm5223_vm6, 1.0, %v13403_v36  ;;  %v13654_v42 = vld [vmem:[#allocation96_spill] sm:$0xff]  ;;  %v3415_v23 = vpop.f32.mrf.mxu1 }
 0x2b4   : > { %6717 = vrot.lane.b32.xlu1 %v3374_v16, %s8810_s25  ;;  %v3238_v59 = vpop.f32.mrf.mxu0  ;;  %8405 = vmatmul.mubr.f32.gmra.mxu1 %v12148_v56  ;;  %v5679_v3 = vsub.f32 %v12174_v34, %v13324_v32  ;;  %v3076_v44 = vadd.f32 %v11907_v50, %v2880_v51  ;;  %v2887_v14 = vadd.f32 %v13655_v46, %v13654_v42  ;;  %v13657_v51 = vld [vmem:[#allocation107_spill] sm:$0xff] }
 0x2b5   : > { %v12218_v7 = vpop.permute.xlu1 %5299  ;;  %v3239_v26 = vadd.f32 %v3238_v59, %v3060_v55  ;;  %6723 = vrot.lane.b32.xlu0 %v3392_v19, %s8810_s25  ;;  %v13325_v37 = vand.u32 4294901760, %v12209_v35  ;;  %8423 = vmatpush3.msra.mxu0 %v13645_v2  ;;  %vm5447_vm7 = vcmp.eq.s32.totalorder %v9156_v40, %v5415_v52  ;;  %v3245_v5 = vadd.f32 %v8130_v17, %v3068_v57  ;;  %v13658_v19 = vld [vmem:[#allocation10_spill] sm:$0xff] }
 0x2b6   : > { %8370 = vmatmul.mubr.f32.gmra.mxu0 %v5660_v60  ;;  %v8133_v30 = vpop.f32.mrf.mxu0  ;;  %8459 = vmatpush3.msra.mxu1 %v13633_v31  ;;  %v3398_v2 = vadd.f32 %v12121_v39, %v3233_v28  ;;  %v5271_v16 = vadd.f32 %v7251_v47, %v7235_v20  ;;  %vm5110_vm9 = vcmp.eq.s32.totalorder %v9156_v40, %v13658_v19  ;;  %v7283_v39 = vsel %vm5447_vm7, 1.0, %v13403_v36  ;;  %v13659_v55 = vld [vmem:[#allocation118_spill] sm:$0xff] }
 0x2b7   : > { %v3404_v15 = vadd.f32 %v3403_v43, %v3239_v26  ;;  %v5669_v18 = vsub.f32 %v12209_v35, %v13325_v37  ;;  %8424 = vmatprep.subr.mxu0 %v13656_v38  ;;  %v5680_v43 = vand.u32 4294901760, %v5679_v3  ;;  %8460 = vmatprep.subr.mxu1 %v11767_v53  ;;  %vm5222_vm10 = vcmp.eq.s32.totalorder %v9156_v40, %v12110_v25  ;;  %v13660_v60 = vld [vmem:[#allocation110_spill] sm:$0xff] }
 0x2b8   : > { %6721 = vrot.lane.b32.xlu1 %v3386_v33, %s8810_s25  ;;  %v3250_v29 = vpop.f32.mrf.mxu0  ;;  %8425 = vmatpush3.msra.mxu0 %v13656_v38  ;;  %v3084_v27 = vadd.f32 %v13659_v55, %v2887_v14  ;;  %v3410_v59 = vadd.f32 %v12176_v22, %v3245_v5  ;;  %vm5334_vm11 = vcmp.eq.s32.totalorder %v9156_v40, %v12218_v7  ;;  %v7234_v25 = vsel %vm5110_vm9, 1.0, %v13403_v36  ;;  %v13661_v52 = vld [vmem:[#allocation90_spill] sm:$0xff]  ;;  %v13663_v55 = vld [vmem:[#allocation13_spill] sm:$0xff] }
 0x2b9   : > { %v5303_v50 = vpop.permute.xlu1 %5302  ;;  %v3251_v0 = vadd.f32 %v3250_v29, %v3076_v44  ;;  %6727 = vrot.lane.b32.xlu0 %v3404_v15, %s8810_s25  ;;  %v5670_v8 = vand.u32 4294901760, %v5669_v18  ;;  %8426 = vmatprep.subr.mxu0 %v13657_v51  ;;  %v7250_v22 = vsel %vm5222_vm10, 1.0, %v13403_v36  ;;  %v7266_v20 = vsel %vm5334_vm11, 1.0, %v13403_v36 }
 0x2ba   : > { %vm5335_vm8 = vcmp.eq.s32.totalorder %v9156_v40, %v5303_v50  ;;  %8427 = vmatpush3.msra.mxu0 %v13657_v51  ;;  %v3257_v49 = vadd.f32 %v8133_v30, %v3084_v27  ;;  %8461 = vmatpush3.msra.mxu1 %v11767_v53  ;;  %v5270_v33 = vadd.f32 %v7250_v22, %v7234_v25  ;;  %v5421_v50 = vpop.permute.xlu0 %5420 }
 0x2bb   : > { %v7267_v17 = vsel %vm5335_vm8, 1.0, %v13403_v36  ;;  %v3416_v21 = vadd.f32 %v3415_v23, %v3251_v0  ;;  %8372 = vmatprep.mubr.f32.mxu0 %v5670_v8  ;;  %8428 = vmatprep.subr.mxu0 %v13660_v60  ;;  %v13662_v0 = vld [vmem:[#allocation75_spill] sm:$0xff]  ;;  %vm5449_vm15 = vcmp.eq.s32.totalorder %v9156_v40, %v5421_v50  ;;  %vm5112_vm2 = vcmp.eq.s32.totalorder %v9156_v40, %v13663_v55 }
 0x2bc   : > { %v5383_v11 = vadd.f32 %v7267_v17, %v5271_v16  ;;  %6725 = vrot.lane.b32.xlu1 %v3398_v2, %s8810_s25  ;;  %8373 = vmatmul.mubr.f32.gmra.mxu0 %v5680_v43  ;;  %v3422_v28 = vadd.f32 %v8165_v58, %v3257_v49  ;;  %v5382_v47 = vadd.f32 %v7266_v20, %v5270_v33 }
 0x2bd   : > { %6731 = vrot.lane.b32.xlu0 %v3416_v21, %s8810_s25  ;;  %8429 = vmatpush3.msra.mxu0 %v13660_v60  ;;  %vm5113_vm14 = vcmp.eq.s32.totalorder %v9156_v40, %v13662_v0  ;;  %v7236_v60 = vsel %vm5112_vm2, 1.0, %v13403_v36 }
 0x2be   : > { %v5495_v57 = vadd.f32 %v7283_v39, %v5383_v11  ;;  %v5194_v26 = vpop.permute.xlu1 %5193  ;;  %8486 = vmatprep.subr.mxu0 %v13661_v52  ;;  %8518 = vmatprep.subr.mxu1 %v11605_v54  ;;  %v7237_v23 = vsel %vm5113_vm14, 1.0, %v13403_v36  ;;  %v7285_v39 = vsel %vm5449_vm15, 1.0, %v13403_v36  ;;  %v5427_v0 = vpop.permute.xlu0 %5426 }
 0x2bf   : > { %vm5224_vm3 = vcmp.eq.s32.totalorder %v9156_v40, %v5194_v26  ;;  %vm5451_vm8 = vcmp.eq.s32.totalorder %v9156_v40, %v5427_v0 }
 0x2c0   : > { %v5531_v7 = vsel %vm615_vm0, %v5495_v57, 0  ;;  %6729 = vrot.lane.b32.xlu1 %v3410_v59, %s8810_s25  ;;  %v7252_v49 = vsel %vm5224_vm3, 1.0, %v13403_v36  ;;  %v7287_v55 = vsel %vm5451_vm8, 1.0, %v13403_v36 }
 0x2c1   : > { %v12279_v30 = vand.u32 4294901760, %v5531_v7  ;;  %v5272_v22 = vadd.f32 %v7252_v49, %v7236_v60  ;;  %v13665_v49 = vld [vmem:[#allocation82_spill] sm:$0xff] }
 0x2c2   : > { %vm5114_vm11 = vcmp.eq.s32.totalorder %v9156_v40, %v13665_v49  ;;  %v5433_v49 = vpop.permute.xlu0 %5432 }
 0x2c3   : > { %v5412_v3 = vpop.permute.xlu1 %5411  ;;  %v12285_v44 = vsub.f32 %v5531_v7, %v12279_v30 }
 0x2c4   : > { %vm5446_vm12 = vcmp.eq.s32.totalorder %v9156_v40, %v5412_v3  ;;  %6733 = vrot.lane.b32.xlu1 %v3422_v28, %s8810_s25 }
 0x2c5   : > { %v7282_v15 = vsel %vm5446_vm12, 1.0, %v13403_v36  ;;  %v13322_v58 = vand.u32 4294901760, %v12285_v44 }
 0x2c6   : > { %v5494_v18 = vadd.f32 %v7282_v15, %v5382_v47 }
 0x2c7   : > { %v5699_v8 = vsub.f32 %v12285_v44, %v13322_v58 }
 0x2c8   : > { %v5528_v42 = vsel %vm615_vm0, %v5494_v18, 0  ;;  %v5197_v46 = vpop.permute.xlu1 %5196 }
 0x2c9   : > { %v12288_v14 = vand.u32 4294901760, %v5528_v42  ;;  %vm5225_vm13 = vcmp.eq.s32.totalorder %v9156_v40, %v5197_v46  ;;  %v5700_v17 = vand.u32 4294901760, %v5699_v8  ;;  %v13664_v8 = vld [vmem:[#allocation88_spill] sm:$0xff] }
 0x2ca   : > { %v7253_v2 = vsel %vm5225_vm13, 1.0, %v13403_v36  ;;  %vm5115_vm7 = vcmp.eq.s32.totalorder %v9156_v40, %v13664_v8 }
 0x2cb   : > { %v12292_v29 = vsub.f32 %v5528_v42, %v12288_v14  ;;  %8407 = vmatprep.mubr.f32.mxu1 %v12288_v14  ;;  %v5273_v19 = vadd.f32 %v7253_v2, %v7237_v23 }
 0x2cc   : > { %8408 = vmatmul.mubr.f32.gmra.mxu1 %v12279_v30 }
 0x2cd   : > { %v5306_v38 = vpop.permute.xlu1 %5305  ;;  %v13323_v5 = vand.u32 4294901760, %v12292_v29 }
 0x2ce   : > { %vm5336_vm4 = vcmp.eq.s32.totalorder %v9156_v40, %v5306_v38 }
 0x2cf   : > { %v5689_v16 = vsub.f32 %v12292_v29, %v13323_v5  ;;  %v7268_v25 = vsel %vm5336_vm4, 1.0, %v13403_v36 }
 0x2d0   : > { %v5384_v33 = vadd.f32 %v7268_v25, %v5272_v22  ;;  %v7238_v22 = vsel %vm5114_vm11, 1.0, %v13403_v36 }
 0x2d1   : > { %v5309_v43 = vpop.permute.xlu1 %5308  ;;  %v5690_v51 = vand.u32 4294901760, %v5689_v16 }
 0x2d2   : > { %vm5337_vm1 = vcmp.eq.s32.totalorder %v9156_v40, %v5309_v43  ;;  %v7239_v43 = vsel %vm5115_vm7, 1.0, %v13403_v36 }
 0x2d3   : > { %v7269_v21 = vsel %vm5337_vm1, 1.0, %v13403_v36  ;;  %8375 = vmatprep.mubr.f32.mxu0 %v5690_v51  ;;  %vm5453_vm1 = vcmp.eq.s32.totalorder %v9156_v40, %v5433_v49 }
 0x2d4   : > { %v5385_v27 = vadd.f32 %v7269_v21, %v5273_v19  ;;  %8376 = vmatmul.mubr.f32.gmra.mxu0 %v5700_v17 }
 0x2d6   : > { %v5497_v11 = vadd.f32 %v7285_v39, %v5385_v27  ;;  %v5200_v59 = vpop.permute.xlu1 %5199 }
 0x2d7   : > { %vm5226_vm10 = vcmp.eq.s32.totalorder %v9156_v40, %v5200_v59 }
 0x2d8   : > { %v5537_v57 = vsel %vm615_vm0, %v5497_v11, 0 }
 0x2d9   : > { %v12320_v7 = vand.u32 4294901760, %v5537_v57 }
 0x2db   : > { %v5418_v20 = vpop.permute.xlu1 %5417  ;;  %v12325_v28 = vsub.f32 %v5537_v57, %v12320_v7  ;;  %v7254_v57 = vsel %vm5226_vm10, 1.0, %v13403_v36 }
 0x2dc   : > { %vm5448_vm5 = vcmp.eq.s32.totalorder %v9156_v40, %v5418_v20 }
 0x2dd   : > { %v7284_v26 = vsel %vm5448_vm5, 1.0, %v13403_v36  ;;  %v13320_v42 = vand.u32 4294901760, %v12325_v28 }
 0x2de   : > { %v5496_v3 = vadd.f32 %v7284_v26, %v5384_v33  ;;  %v5274_v33 = vadd.f32 %v7254_v57, %v7238_v22 }
 0x2df   : > { %v5719_v2 = vsub.f32 %v12325_v28, %v13320_v42 }
 0x2e0   : > { %v5534_v47 = vsel %vm615_vm0, %v5496_v3, 0  ;;  %v5203_v15 = vpop.permute.xlu1 %5202 }
 0x2e1   : > { %v12328_v18 = vand.u32 4294901760, %v5534_v47  ;;  %vm5227_vm6 = vcmp.eq.s32.totalorder %v9156_v40, %v5203_v15  ;;  %v5720_v21 = vand.u32 4294901760, %v5719_v2  ;;  %v12368_v2 = vpop.f32.mrf.mxu1 }
 0x2e2   : > { %v7255_v16 = vsel %vm5227_vm6, 1.0, %v13403_v36 }
 0x2e3   : > { %v12332_v46 = vsub.f32 %v5534_v47, %v12328_v18  ;;  %8410 = vmatprep.mubr.f32.mxu1 %v12328_v18  ;;  %v5275_v17 = vadd.f32 %v7255_v16, %v7239_v43 }
 0x2e4   : > { %8411 = vmatmul.mubr.f32.gmra.mxu1 %v12320_v7 }
 0x2e5   : > { %v5312_v38 = vpop.permute.xlu1 %5311  ;;  %v13321_v50 = vand.u32 4294901760, %v12332_v46 }
 0x2e6   : > { %vm5338_vm12 = vcmp.eq.s32.totalorder %v9156_v40, %v5312_v38 }
 0x2e7   : > { %v5709_v23 = vsub.f32 %v12332_v46, %v13321_v50  ;;  %v7270_v20 = vsel %vm5338_vm12, 1.0, %v13403_v36 }
 0x2e8   : > { %v5386_v59 = vadd.f32 %v7270_v20, %v5274_v33 }
 0x2e9   : > { %v5315_v51 = vpop.permute.xlu1 %5314  ;;  %v5710_v19 = vand.u32 4294901760, %v5709_v23 }
 0x2ea   : > { %vm5339_vm9 = vcmp.eq.s32.totalorder %v9156_v40, %v5315_v51  ;;  %v12379_v51 = vpop.f32.mrf.mxu1 }
 0x2eb   : > { %v7271_v39 = vsel %vm5339_vm9, 1.0, %v13403_v36  ;;  %8378 = vmatprep.mubr.f32.mxu0 %v5710_v19 }
 0x2ec   : > { %v5387_v27 = vadd.f32 %v7271_v39, %v5275_v17  ;;  %8379 = vmatmul.mubr.f32.gmra.mxu0 %v5720_v21  ;;  %v13668_v21 = vld [vmem:[#allocation98_spill] sm:$0xff] }
 0x2ed   : > { %vm5117_vm15 = vcmp.eq.s32.totalorder %v9156_v40, %v13668_v21  ;;  %v13669_v21 = vld [vmem:[#allocation93_spill] sm:$0xff] }
 0x2ee   : > { %v5499_v11 = vadd.f32 %v7287_v55, %v5387_v27  ;;  %v5206_v60 = vpop.permute.xlu1 %5205  ;;  %v7241_v57 = vsel %vm5117_vm15, 1.0, %v13403_v36  ;;  %vm5116_vm4 = vcmp.eq.s32.totalorder %v9156_v40, %v13669_v21  ;;  %vm6895_vm15 = vcmask 523264  }
 0x2ef   : > { %vm5228_vm3 = vcmp.eq.s32.totalorder %v9156_v40, %v5206_v60 }
 0x2f0   : > { %v5543_v25 = vsel %vm615_vm0, %v5499_v11, 0  ;;  %v12391_v11 = vpop.f32.mrf.mxu0  ;;  %v7256_v49 = vsel %vm5228_vm3, 1.0, %v13403_v36 }
 0x2f1   : > { %v12360_v26 = vand.u32 4294901760, %v5543_v25 }
 0x2f3   : > { %13666 = vst [vmem:[#allocation80_spill] sm:$0xff] %v12360_v26  ;;  %v12365_v15 = vsub.f32 %v5543_v25, %v12360_v26  ;;  %v12394_v25 = vpop.f32.mrf.mxu1 }
 0x2f4   : > { %v5424_v3 = vpop.permute.xlu1 %5423 }
 0x2f5   : > { %vm5450_vm13 = vcmp.eq.s32.totalorder %v9156_v40, %v5424_v3  ;;  %v13318_v23 = vand.u32 4294901760, %v12365_v15 }
 0x2f6   : > { %v7286_v47 = vsel %vm5450_vm13, 1.0, %v13403_v36 }
 0x2f7   : > { %v5498_v38 = vadd.f32 %v7286_v47, %v5386_v59  ;;  %v5739_v39 = vsub.f32 %v12365_v15, %v13318_v23  ;;  %v12399_v47 = vpop.f32.mrf.mxu0 }
 0x2f9   : > { %v5540_v0 = vsel %vm615_vm0, %v5498_v38, 0  ;;  %v5209_v8 = vpop.permute.xlu1 %5208  ;;  %v5740_v3 = vand.u32 4294901760, %v5739_v39 }
 0x2fa   : > { %v12370_v16 = vand.u32 4294901760, %v5540_v0  ;;  %vm5229_vm14 = vcmp.eq.s32.totalorder %v9156_v40, %v5209_v8  ;;  %v7289_v8 = vsel %vm5453_vm1, 1.0, %v13403_v36  ;;  %vm6912_vm1 = vcmask 785408  }
 0x2fb   : > { %v7257_v55 = vsel %vm5229_vm14, 1.0, %v13403_v36 }
 0x2fc   : > { %13667 = vst [vmem:[#allocation73_spill] sm:$0xff] %v12370_v16  ;;  %v12374_v43 = vsub.f32 %v5540_v0, %v12370_v16  ;;  %8413 = vmatprep.mubr.f32.mxu1 %v12370_v16  ;;  %v5277_v33 = vadd.f32 %v7257_v55, %v7241_v57  ;;  %v12402_v0 = vpop.f32.mrf.mxu1  ;;  %v12411_v57 = vpop.f32.mrf.mxu0 }
 0x2fd   : > { %8414 = vmatmul.mubr.f32.gmra.mxu1 %v12360_v26 }
 0x2fe   : > { %v5318_v19 = vpop.permute.xlu1 %5317  ;;  %v13319_v17 = vand.u32 4294901760, %v12374_v43 }
 0x2ff   : > { %vm5340_vm5 = vcmp.eq.s32.totalorder %v9156_v40, %v5318_v19 }
 0x300   : > { %v5729_v27 = vsub.f32 %v12374_v43, %v13319_v17 }
 0x302   : > { %v5321_v22 = vpop.permute.xlu1 %5320  ;;  %v5730_v20 = vand.u32 4294901760, %v5729_v27  ;;  %v12408_v27 = vpop.f32.mrf.mxu1 }
 0x303   : > { %vm5341_vm2 = vcmp.eq.s32.totalorder %v9156_v40, %v5321_v22  ;;  %v7240_v22 = vsel %vm5116_vm4, 1.0, %v13403_v36 }
 0x304   : > { %v7273_v59 = vsel %vm5341_vm2, 1.0, %v13403_v36  ;;  %8381 = vmatprep.mubr.f32.mxu0 %v5730_v20  ;;  %v7272_v20 = vsel %vm5340_vm5, 1.0, %v13403_v36 }
 0x305   : > { %v5389_v38 = vadd.f32 %v7273_v59, %v5277_v33  ;;  %8382 = vmatmul.mubr.f32.gmra.mxu0 %v5740_v3  ;;  %v5276_v33 = vadd.f32 %v7256_v49, %v7240_v22  ;;  %v12418_v59 = vpop.f32.mrf.mxu1 }
 0x307   : > { %v5501_v55 = vadd.f32 %v7289_v8, %v5389_v38  ;;  %v5212_v39 = vpop.permute.xlu1 %5211  ;;  %v12420_v38 = vpop.f32.mrf.mxu0  ;;  %v5388_v8 = vadd.f32 %v7272_v20, %v5276_v33  ;;  %v13672_v33 = vld [vmem:[#allocation18_spill] sm:$0xff] }
 0x308   : > { %v12423_v21 = vpop.f32.mrf.mxu1  ;;  %vm5230_vm7 = vcmp.eq.s32.totalorder %v9156_v40, %v5212_v39  ;;  %vm5118_vm8 = vcmp.eq.s32.totalorder %v9156_v40, %v13672_v33 }
 0x309   : > { %v5549_v60 = vsel %vm615_vm0, %v5501_v55, 0  ;;  %v12426_v55 = vpop.f32.mrf.mxu0 }
 0x30a   : > { %v12416_v3 = vand.u32 4294901760, %v5549_v60  ;;  %v12433_v50 = vpop.f32.mrf.mxu1 }
 0x30c   : > { %13670 = vst [vmem:[#allocation84_spill] sm:$0xff] %v12416_v3  ;;  %v5430_v19 = vpop.permute.xlu1 %5429  ;;  %v12429_v17 = vsub.f32 %v5549_v60, %v12416_v3  ;;  %v12442_v5 = vpop.f32.mrf.mxu1 }
 0x30d   : > { %vm5452_vm6 = vcmp.eq.s32.totalorder %v9156_v40, %v5430_v19  ;;  %v12439_v19 = vpop.f32.mrf.mxu0  ;;  %v5436_v60 = vpop.permute.xlu0 %5435 }
 0x30e   : > { %v7288_v23 = vsel %vm5452_vm6, 1.0, %v13403_v36  ;;  %v13330_v58 = vand.u32 4294901760, %v12429_v17  ;;  %vm5454_vm9 = vcmp.eq.s32.totalorder %v9156_v40, %v5436_v60  ;;  %v12459_v1 = vpop.f32.mrf.mxu1 }
 0x30f   : > { %v5500_v49 = vadd.f32 %v7288_v23, %v5388_v8  ;;  %v7258_v23 = vsel %vm5230_vm7, 1.0, %v13403_v36  ;;  %v12449_v8 = vpop.f32.mrf.mxu0  ;;  %13673 = vst [vmem:[#allocation68_spill] sm:$0xff] %v12459_v1 }
 0x311   : > { %v5546_v22 = vsel %vm615_vm0, %v5500_v49, 0  ;;  %v5215_v42 = vpop.permute.xlu1 %5214  ;;  %v7242_v49 = vsel %vm5118_vm8, 1.0, %v13403_v36  ;;  %v12466_v10 = vpop.f32.mrf.mxu0 }
 0x312   : > { %v12435_v20 = vand.u32 4294901760, %v5546_v22  ;;  %v5278_v37 = vadd.f32 %v7258_v23, %v7242_v49  ;;  %vm5231_vm11 = vcmp.eq.s32.totalorder %v9156_v40, %v5215_v42  ;;  %v13674_v23 = vld [vmem:[#allocation109_spill] sm:$0xff]  ;;  %v12470_v49 = vpop.f32.mrf.mxu1 }
 0x313   : > { %vm5119_vm12 = vcmp.eq.s32.totalorder %v9156_v40, %v13674_v23  ;;  %13675 = vst [vmem:[#allocation81_spill] sm:$0xff] %v12470_v49  ;;  %v7259_v42 = vsel %vm5231_vm11, 1.0, %v13403_v36  ;;  %v12475_v16 = vpop.f32.mrf.mxu0 }
 0x314   : > { %13671 = vst [vmem:[#allocation77_spill] sm:$0xff] %v12435_v20  ;;  %v12446_v39 = vsub.f32 %v5546_v22, %v12435_v20  ;;  %8416 = vmatprep.mubr.f32.mxu1 %v12435_v20  ;;  %v5759_v22 = vsub.f32 %v12429_v17, %v13330_v58 }
 0x315   : > { %8417 = vmatmul.mubr.f32.gmra.mxu1 %v12416_v3 }
 0x316   : > { %v5324_v33 = vpop.permute.xlu1 %5323  ;;  %v13339_v32 = vand.u32 4294901760, %v12446_v39  ;;  %v5760_v26 = vand.u32 4294901760, %v5759_v22 }
 0x317   : > { %vm5342_vm10 = vcmp.eq.s32.totalorder %v9156_v40, %v5324_v33  ;;  %v7290_v33 = vsel %vm5454_vm9, 1.0, %v13403_v36 }
 0x318   : > { %v7274_v6 = vsel %vm5342_vm10, 1.0, %v13403_v36  ;;  %v5749_v61 = vsub.f32 %v12446_v39, %v13339_v32  ;;  %v12480_v32 = vpop.f32.mrf.mxu1 }
 0x319   : > { %v5390_v60 = vadd.f32 %v7274_v6, %v5278_v37  ;;  %v7243_v6 = vsel %vm5119_vm12, 1.0, %v13403_v36  ;;  %13676 = vst [vmem:[#allocation72_spill] sm:$0xff] %v12480_v32 }
 0x31a   : > { %v5327_v58 = vpop.permute.xlu1 %5326  ;;  %v5750_v3 = vand.u32 4294901760, %v5749_v61  ;;  %v5279_v49 = vadd.f32 %v7259_v42, %v7243_v6 }
 0x31b   : > { %v5502_v20 = vadd.f32 %v7290_v33, %v5390_v60  ;;  %vm5343_vm13 = vcmp.eq.s32.totalorder %v9156_v40, %v5327_v58  ;;  %v12484_v60 = vpop.f32.mrf.mxu0  ;;  %v12486_v58 = vpop.f32.mrf.mxu1 }
 0x31c   : > { %8384 = vmatprep.mubr.f32.mxu0 %v5750_v3  ;;  %v7275_v23 = vsel %vm5343_vm13, 1.0, %v13403_v36  ;;  %13678 = vst [vmem:[#allocation76_spill] sm:$0xff] %v12486_v58 }
 0x31d   : > { %v5552_v37 = vsel %vm615_vm0, %v5502_v20, 0  ;;  %8385 = vmatmul.mubr.f32.gmra.mxu0 %v5760_v26  ;;  %v5391_v3 = vadd.f32 %v7275_v23, %v5279_v49  ;;  %v12494_v20 = vpop.f32.mrf.mxu0  ;;  %v12497_v6 = vpop.f32.mrf.mxu1 }
 0x31e   : > { %v12482_v61 = vand.u32 4294901760, %v5552_v37  ;;  %13679 = vst [vmem:[#allocation78_spill] sm:$0xff] %v12497_v6 }
 0x31f   : > { %v5439_v1 = vpop.permute.xlu1 %5438 }
 0x320   : > { %13677 = vst [vmem:[#allocation62_spill] sm:$0xff] %v12482_v61  ;;  %v12489_v22 = vsub.f32 %v5552_v37, %v12482_v61  ;;  %vm5455_vm14 = vcmp.eq.s32.totalorder %v9156_v40, %v5439_v1  ;;  %8419 = vmatprep.mubr.f32.mxu1 %v12482_v61  ;;  %v12505_v40 = vpop.f32.mrf.mxu0 }
 0x321   : > { %v7291_v26 = vsel %vm5455_vm14, 1.0, %v13403_v36 }
 0x322   : > { %v5503_v33 = vadd.f32 %v7291_v26, %v5391_v3  ;;  %v13340_v42 = vand.u32 4294901760, %v12489_v22  ;;  %v12513_v3 = vpop.f32.mrf.mxu0  ;;  %v13683_v26 = vand.u32 4294901760, %v12023_v62 }
 0x323   : > { %13682 = vst [vmem:[#allocation89_spill] sm:$0xff] %v12513_v3 }
 0x324   : > { %v5555_v32 = vsel %vm615_vm0, %v5503_v33, 0  ;;  %v5769_v37 = vsub.f32 %v12489_v22, %v13340_v42 }
 0x325   : > { %v12503_v49 = vand.u32 4294901760, %v5555_v32 }
 0x326   : > { %v12507_v1 = vpop.f32.mrf.mxu1  ;;  %v5770_v36 = vand.u32 4294901760, %v5769_v37  ;;  %v12527_v37 = vpop.f32.mrf.mxu0 }
 0x327   : > { %13680 = vst [vmem:[#allocation23_spill] sm:$0xff] %v12503_v49  ;;  %13681 = vst [vmem:[#allocation85_spill] sm:$0xff] %v12507_v1  ;;  %v12510_v23 = vsub.f32 %v5555_v32, %v12503_v49  ;;  %8420 = vmatmul.mubr.f32.gmra.mxu1 %v12503_v49  ;;  %v13685_v1 = vand.u32 4294901760, %v12036_v13 }
 0x328   : > { %8387 = vmatprep.mubr.f32.mxu0 %v5770_v36  ;;  %8462 = vmatprep.mubr.f32.mxu1 %v13683_v26  ;;  %v12517_v33 = vpop.f32.mrf.mxu1  ;;  %13686 = vst [vmem:[#allocation100_spill] sm:$0xff] %v12527_v37  ;;  %v13687_v36 = vand.u32 4294901760, %v12096_v48 }
 0x329   : > { %13684 = vst [vmem:[#allocation5_spill] sm:$0xff] %v12517_v33  ;;  %v13345_v42 = vand.u32 4294901760, %v12510_v23 }
 0x32a   : > { %v12520_v61 = vpop.f32.mrf.mxu1 }
 0x32b   : > { %8463 = vmatmul.mubr.f32.vlgmr.msra.gmra.mxu1 %v13685_v1  ;;  %v5779_v32 = vsub.f32 %v12510_v23, %v13345_v42  ;;  %v13689_v42 = vand.u32 4294901760, %v12135_v63 }
 0x32c   : > { %8465 = vmatprep.mubr.f32.mxu1 %v13687_v36  ;;  %v12531_v49 = vpop.f32.mrf.mxu1  ;;  %8519 = vmatpush3.msra.mxu1 %v11605_v54  ;;  %v13690_v36 = vand.u32 4294901760, %v12209_v35 }
 0x32d   : > { %v5780_v26 = vand.u32 4294901760, %v5779_v32  ;;  %8520 = vmatprep.subr.mxu1 %v11717_v41 }
 0x32e   : > { %v12535_v33 = vpop.f32.mrf.mxu0  ;;  %8521 = vmatpush3.msra.mxu1 %v11717_v41 }
 0x32f   : > { %13688 = vst [vmem:[#allocation95_spill] sm:$0xff] %v12535_v33  ;;  %v12538_v1 = vpop.f32.mrf.mxu1  ;;  %8388 = vmatmul.mubr.f32.gmra.mxu0 %v5780_v26  ;;  %8466 = vmatmul.mubr.f32.gmra.mxu1 %v13689_v42  ;;  %v13692_v42 = vand.u32 4294901760, %v12174_v34  ;;  %v13693_v26 = vand.u32 4294901760, %v12292_v29  ;;  %v13697_v33 = vld [vmem:[#allocation111_spill] sm:$0xff] }
 0x330   : > { %8430 = vmatprep.mubr.f32.mxu0 %v12023_v62  ;;  %8468 = vmatprep.mubr.f32.mxu1 %v13690_v36  ;;  %v12545_v6 = vpop.f32.mrf.mxu0 }
 0x331   : > { %13691 = vst [vmem:[#allocation97_spill] sm:$0xff] %v12545_v6  ;;  %v12547_v54 = vpop.f32.mrf.mxu1  ;;  %8522 = vmatprep.subr.mxu1 %v13633_v31  ;;  %v13694_v6 = vld [vmem:[#allocation106_spill] sm:$0xff] }
 0x332   : > { %v12550_v32 = vpop.f32.mrf.mxu0  ;;  %8523 = vmatpush3.msra.mxu1 %v13633_v31 }
 0x333   : > { %v12553_v41 = vpop.f32.mrf.mxu1  ;;  %8431 = vmatmul.mubr.f32.vlgmr.msra.gmra.mxu0 %v12036_v13  ;;  %8469 = vmatmul.mubr.f32.gmra.mxu1 %v13692_v42 }
 0x334   : > { %8487 = vmatpush3.msra.mxu0 %v13661_v52  ;;  %8433 = vmatprep.mubr.f32.mxu0 %v12096_v48  ;;  %v12560_v62 = vpop.f32.mrf.mxu0  ;;  %v13695_v48 = vand.u32 4294901760, %v12285_v44  ;;  %v13696_v52 = vand.u32 4294901760, %v12332_v46 }
 0x335   : > { %8471 = vmatprep.mubr.f32.mxu1 %v13693_v26  ;;  %v12564_v36 = vpop.f32.mrf.mxu1  ;;  %8488 = vmatprep.subr.mxu0 %v13694_v6 }
 0x336   : > { %v12567_v31 = vpop.f32.mrf.mxu0  ;;  %8489 = vmatpush3.msra.mxu0 %v13694_v6  ;;  %8524 = vmatprep.subr.mxu1 %v11767_v53 }
 0x337   : > { %v12571_v13 = vpop.f32.mrf.mxu1  ;;  %8434 = vmatmul.mubr.f32.gmra.mxu0 %v12135_v63  ;;  %8472 = vmatmul.mubr.f32.gmra.mxu1 %v13695_v48  ;;  %v13699_v48 = vand.u32 4294901760, %v12374_v43 }
 0x338   : > { %8436 = vmatprep.mubr.f32.mxu0 %v12209_v35  ;;  %8474 = vmatprep.mubr.f32.mxu1 %v13696_v52  ;;  %v12579_v42 = vpop.f32.mrf.mxu0  ;;  %v13698_v35 = vand.u32 4294901760, %v12325_v28 }
 0x339   : > { %v12581_v26 = vpop.f32.mrf.mxu1  ;;  %8490 = vmatprep.subr.mxu0 %v13697_v33  ;;  %8525 = vmatpush3.msra.mxu1 %v11767_v53  ;;  %v13701_v53 = vld [vmem:[#allocation114_spill] sm:$0xff] }
 0x33a   : > { %v12585_v6 = vpop.f32.mrf.mxu0  ;;  %8491 = vmatpush3.msra.mxu0 %v13697_v33 }
 0x33b   : > { %v12588_v63 = vpop.f32.mrf.mxu1  ;;  %8437 = vmatmul.mubr.f32.gmra.mxu0 %v12174_v34  ;;  %8475 = vmatmul.mubr.f32.gmra.mxu1 %v13698_v35  ;;  %v13702_v34 = vand.u32 4294901760, %v12365_v15 }
 0x33c   : > { %8439 = vmatprep.mubr.f32.mxu0 %v12292_v29  ;;  %8477 = vmatprep.mubr.f32.mxu1 %v13699_v48  ;;  %v12596_v52 = vpop.f32.mrf.mxu0  ;;  %v13703_v29 = vand.u32 4294901760, %v12446_v39 }
 0x33d   : > { %v12598_v37 = vpop.f32.mrf.mxu1  ;;  %8492 = vmatprep.subr.mxu0 %v13701_v53 }
 0x33e   : > { %13700 = vst [vmem:[#allocation69_spill] sm:$0xff] %v12598_v37  ;;  %v12601_v58 = vpop.f32.mrf.mxu0  ;;  %8493 = vmatpush3.msra.mxu0 %v13701_v53 }
 0x33f   : > { %8440 = vmatmul.mubr.f32.gmra.mxu0 %v12285_v44  ;;  %8478 = vmatmul.mubr.f32.gmra.mxu1 %v13702_v34  ;;  %v13706_v44 = vand.u32 4294901760, %v12429_v17 }
 0x340   : > { %v12604_v33 = vpop.f32.mrf.mxu1  ;;  %8442 = vmatprep.mubr.f32.mxu0 %v12332_v46  ;;  %8480 = vmatprep.mubr.f32.mxu1 %v13703_v29  ;;  %v12612_v35 = vpop.f32.mrf.mxu0  ;;  %v13707_v46 = vand.u32 4294901760, %v12489_v22 }
 0x342   : > { %v12614_v48 = vpop.f32.mrf.mxu1  ;;  %v12616_v37 = vpop.f32.mrf.mxu0 }
 0x343   : > { %13704 = vst [vmem:[#allocation21_spill] sm:$0xff] %v12614_v48  ;;  %8443 = vmatmul.mubr.f32.gmra.mxu0 %v12325_v28  ;;  %8481 = vmatmul.mubr.f32.gmra.mxu1 %v13706_v44  ;;  %v13710_v28 = vand.u32 4294901760, %v12510_v23 }
 0x344   : > { %v12618_v3 = vpop.f32.mrf.mxu1  ;;  %8445 = vmatprep.mubr.f32.mxu0 %v12374_v43  ;;  %8483 = vmatprep.mubr.f32.mxu1 %v13707_v46  ;;  %v12626_v53 = vpop.f32.mrf.mxu0 }
 0x345   : > { %13705 = vst [vmem:[#allocation103_spill] sm:$0xff] %v12618_v3 }
 0x346   : > { %v12628_v34 = vpop.f32.mrf.mxu1  ;;  %v12630_v29 = vpop.f32.mrf.mxu0 }
 0x347   : > { %13708 = vst [vmem:[#allocation16_spill] sm:$0xff] %v12628_v34  ;;  %8446 = vmatmul.mubr.f32.gmra.mxu0 %v12365_v15  ;;  %8484 = vmatmul.mubr.f32.gmra.mxu1 %v13710_v28  ;;  %v4249_v34 = vadd.f32 %v12368_v2, %v12391_v11  ;;  %v4261_v2 = vadd.f32 %v12394_v25, %v12411_v57 }
 0x348   : > { %v12632_v48 = vpop.f32.mrf.mxu1  ;;  %8448 = vmatprep.mubr.f32.mxu0 %v12446_v39  ;;  %8526 = vmatprep.mubr.f32.mxu1 %v11984_v9  ;;  %v12639_v43 = vpop.f32.mrf.mxu0  ;;  %v4243_v39 = vadd.f32 %v12379_v51, %v12399_v47 }
 0x349   : > { %13709 = vst [vmem:[#allocation101_spill] sm:$0xff] %v12632_v48  ;;  %v4420_v28 = vadd.f32 %v12550_v32, %v4249_v34  ;;  %v4434_v47 = vadd.f32 %v12567_v31, %v4261_v2 }
 0x34a   : > { %v12641_v44 = vpop.f32.mrf.mxu1  ;;  %v12643_v46 = vpop.f32.mrf.mxu0 }
 0x34b   : > { %13711 = vst [vmem:[#allocation83_spill] sm:$0xff] %v12641_v44  ;;  %8449 = vmatmul.mubr.f32.gmra.mxu0 %v12429_v17  ;;  %8527 = vmatmul.mubr.f32.vlgmr.msra.gmra.mxu1 %v11996_v4  ;;  %v4413_v17 = vadd.f32 %v12560_v62, %v4243_v39  ;;  %v4603_v25 = vadd.f32 %v12520_v61, %v4420_v28 }
 0x34c   : > { %v8336_v3 = vpop.f32.mrf.mxu1  ;;  %8451 = vmatprep.mubr.f32.mxu0 %v12489_v22  ;;  %8529 = vmatprep.mubr.f32.mxu1 %v12063_v24  ;;  %v12651_v15 = vpop.f32.mrf.mxu0  ;;  %v4255_v22 = vadd.f32 %v12402_v0, %v12420_v38  ;;  %v4267_v0 = vadd.f32 %v12418_v59, %v12439_v19 }
 0x34e   : > { %v4962_v44 = vpop.f32.mrf.mxu1  ;;  %v12656_v48 = vpop.f32.mrf.mxu0  ;;  %v4427_v57 = vadd.f32 %v12579_v42, %v4255_v22  ;;  %v4619_v42 = vadd.f32 %v12538_v1, %v4434_v47  ;;  %v4441_v59 = vadd.f32 %v12596_v52, %v4267_v0  ;;  %v13713_v47 = vld [vmem:[#allocation73_spill] sm:$0xff] }
 0x34f   : > { %8452 = vmatmul.mubr.f32.gmra.mxu0 %v12510_v23  ;;  %8530 = vmatmul.mubr.f32.gmra.mxu1 %v12085_v12  ;;  %v4273_v23 = vadd.f32 %v12408_v27, %v12426_v55  ;;  %v13717_v0 = vld [vmem:[#allocation77_spill] sm:$0xff] }
 0x350   : > { %v8339_v11 = vpop.f32.mrf.mxu1  ;;  %8494 = vmatprep.mubr.f32.mxu0 %v11984_v9  ;;  %8532 = vmatprep.mubr.f32.mxu1 %v12197_v45  ;;  %v12667_v51 = vpop.f32.mrf.mxu0  ;;  %v4595_v9 = vadd.f32 %v12531_v49, %v4413_v17  ;;  %v4611_v49 = vadd.f32 %v12547_v54, %v4427_v57 }
 0x351   : > { %v4448_v61 = vadd.f32 %v12585_v6, %v4273_v23 }
 0x352   : > { %v4974_v32 = vpop.f32.mrf.mxu1  ;;  %v8304_v62 = vpop.f32.mrf.mxu0 }
 0x353   : > { %v4804_v34 = vadd.f32 %v8304_v62, %v4603_v25  ;;  %8495 = vmatmul.mubr.f32.vlgmr.msra.gmra.mxu0 %v11996_v4  ;;  %8533 = vmatmul.mubr.f32.gmra.mxu1 %v12148_v56  ;;  %v4285_v4 = vadd.f32 %v12423_v21, %v12449_v8 }
 0x354   : > { %v8342_v39 = vpop.f32.mrf.mxu1  ;;  %8497 = vmatprep.mubr.f32.mxu0 %v12063_v24  ;;  %8535 = vmatprep.mubr.f32.mxu1 %v12288_v14  ;;  %v4797_v38 = vpop.f32.mrf.mxu0 }
 0x355   : > { %v4969_v31 = vadd.f32 %v8336_v3, %v4804_v34  ;;  %v4798_v27 = vadd.f32 %v4797_v38, %v4595_v9  ;;  %v4279_v3 = vadd.f32 %v12433_v50, %v12466_v10  ;;  %v4462_v1 = vadd.f32 %v12601_v58, %v4285_v4  ;;  %v13716_v34 = vld [vmem:[#allocation72_spill] sm:$0xff]  ;;  %v13718_v38 = vld [vmem:[#allocation89_spill] sm:$0xff] }
 0x356   : > { %v4986_v55 = vpop.f32.mrf.mxu1  ;;  %v8307_v28 = vpop.f32.mrf.mxu0  ;;  %v4297_v10 = vadd.f32 %v12442_v5, %v12475_v16  ;;  %v13721_v4 = vld [vmem:[#allocation69_spill] sm:$0xff] }
 0x357   : > { %v4963_v19 = vadd.f32 %v4962_v44, %v4798_v27  ;;  %v4816_v24 = vadd.f32 %v8307_v28, %v4619_v42  ;;  %8498 = vmatmul.mubr.f32.gmra.mxu0 %v12085_v12  ;;  %8536 = vmatmul.mubr.f32.gmra.mxu1 %v12279_v30  ;;  %v4635_v12 = vadd.f32 %v12553_v41, %v4448_v61  ;;  %v13719_v61 = vld [vmem:[#allocation76_spill] sm:$0xff] }
 0x358   : > { %v8345_v2 = vpop.f32.mrf.mxu1  ;;  %6769 = vrot.lane.b32.xlu1 %v4969_v31, %s8811_s21  ;;  %8500 = vmatprep.mubr.f32.mxu0 %v12197_v45  ;;  %v4809_v21 = vpop.f32.mrf.mxu0  ;;  %v4455_v50 = vadd.f32 %v12612_v35, %v4279_v3  ;;  %v4627_v45 = vadd.f32 %v12564_v36, %v4441_v59  ;;  %v4651_v16 = vadd.f32 %v12571_v13, %v4462_v1  ;;  %v13714_v36 = vld [vmem:[#allocation81_spill] sm:$0xff]  ;;  %v13723_v59 = vld [vmem:[#allocation78_spill] sm:$0xff]  ;;  %v13725_v1 = vld [vmem:[#allocation95_spill] sm:$0xff] }
 0x359   : > { %v4981_v8 = vadd.f32 %v8339_v11, %v4816_v24  ;;  %8538 = vmatprep.mubr.f32.mxu1 %v12328_v18  ;;  %v4810_v54 = vadd.f32 %v4809_v21, %v4611_v49  ;;  %6767 = vrot.lane.b32.xlu0 %v4963_v19, %s8811_s21  ;;  %v13712_v11 = vld [vmem:[#allocation68_spill] sm:$0xff]  ;;  %v4476_v41 = vadd.f32 %v12616_v37, %v4297_v10  ;;  %v13724_v3 = vld [vmem:[#allocation62_spill] sm:$0xff]  ;;  %v13726_v21 = vld [vmem:[#allocation85_spill] sm:$0xff] }
 0x35a   : > { %v4998_v6 = vpop.f32.mrf.mxu1  ;;  %v8310_v58 = vpop.f32.mrf.mxu0  ;;  %v4291_v22 = vadd.f32 %v13712_v11, %v12484_v60  ;;  %v4309_v25 = vadd.f32 %v13714_v36, %v12494_v20  ;;  %v4643_v57 = vadd.f32 %v12581_v26, %v4455_v50  ;;  %v13715_v37 = vld [vmem:[#allocation80_spill] sm:$0xff]  ;;  %v4321_v31 = vadd.f32 %v13719_v61, %v13718_v38 }
 0x35b   : > { %v4975_v52 = vadd.f32 %v4974_v32, %v4810_v54  ;;  %v4828_v44 = vadd.f32 %v8310_v58, %v4635_v12  ;;  %8501 = vmatmul.mubr.f32.gmra.mxu0 %v12148_v56  ;;  %8539 = vmatmul.mubr.f32.gmra.mxu1 %v12320_v7  ;;  %v13722_v49 = vld [vmem:[#allocation100_spill] sm:$0xff]  ;;  %v13727_v12 = vld [vmem:[#allocation21_spill] sm:$0xff] }
 0x35c   : > { %v8348_v17 = vpop.f32.mrf.mxu1  ;;  %6773 = vrot.lane.b32.xlu1 %v4981_v8, %s8811_s21  ;;  %8503 = vmatprep.mubr.f32.mxu0 %v12288_v14  ;;  %v4821_v5 = vpop.f32.mrf.mxu0  ;;  %v4469_v14 = vadd.f32 %v12626_v53, %v4291_v22  ;;  %v4490_v9 = vadd.f32 %v12630_v29, %v4309_v25  ;;  %v4315_v19 = vadd.f32 %v13723_v59, %v13722_v49  ;;  %v13732_v36 = vld [vmem:[#allocation16_spill] sm:$0xff] }
 0x35d   : > { %v4993_v35 = vadd.f32 %v8342_v39, %v4828_v44  ;;  %8541 = vmatprep.mubr.f32.mxu1 %v13713_v47  ;;  %v4822_v56 = vadd.f32 %v4821_v5, %v4627_v45  ;;  %6771 = vrot.lane.b32.xlu0 %v4975_v52, %s8811_s21  ;;  %v4303_v39 = vadd.f32 %v13716_v34, %v12505_v40  ;;  %v13730_v44 = vld [vmem:[#allocation5_spill] sm:$0xff]  ;;  %v13734_v34 = vld [vmem:[#allocation83_spill] sm:$0xff] }
 0x35e   : > { %v5010_v32 = vpop.f32.mrf.mxu1  ;;  %v8313_v60 = vpop.f32.mrf.mxu0  ;;  %v4659_v28 = vadd.f32 %v13721_v4, %v4469_v14  ;;  %v4504_v24 = vadd.f32 %v12643_v46, %v4321_v31  ;;  %v4333_v8 = vadd.f32 %v13726_v21, %v13725_v1  ;;  %v4497_v50 = vadd.f32 %v12651_v15, %v4315_v19  ;;  %v13729_v46 = vld [vmem:[#allocation97_spill] sm:$0xff]  ;;  %v13731_v15 = vld [vmem:[#allocation103_spill] sm:$0xff] }
 0x35f   : > { %v4987_v62 = vadd.f32 %v4986_v55, %v4822_v56  ;;  %v4840_v23 = vadd.f32 %v8313_v60, %v4651_v16  ;;  %8504 = vmatmul.mubr.f32.gmra.mxu0 %v12279_v30  ;;  %8542 = vmatmul.mubr.f32.gmra.mxu1 %v13715_v37  ;;  %v4667_v30 = vadd.f32 %v12588_v63, %v4476_v41  ;;  %v13733_v14 = vld [vmem:[#allocation101_spill] sm:$0xff] }
 0x360   : > { %v8351_v13 = vpop.f32.mrf.mxu1  ;;  %6777 = vrot.lane.b32.xlu1 %v4993_v35, %s8811_s21  ;;  %8506 = vmatprep.mubr.f32.mxu0 %v12328_v18  ;;  %v4833_v20 = vpop.f32.mrf.mxu0  ;;  %v4483_v40 = vadd.f32 %v12639_v43, %v4303_v39  ;;  %v13720_v18 = vld [vmem:[#allocation84_spill] sm:$0xff]  ;;  %v4683_v43 = vadd.f32 %v12604_v33, %v4490_v9  ;;  %v13728_v33 = vld [vmem:[#allocation23_spill] sm:$0xff]  ;;  %v4518_v11 = vadd.f32 %v12656_v48, %v4333_v8 }
 0x361   : > { %v5005_v26 = vadd.f32 %v8345_v2, %v4840_v23  ;;  %8544 = vmatprep.mubr.f32.mxu1 %v13717_v0  ;;  %v4834_v53 = vadd.f32 %v4833_v20, %v4643_v57  ;;  %6775 = vrot.lane.b32.xlu0 %v4987_v62, %s8811_s21  ;;  %v4699_v16 = vadd.f32 %v13731_v15, %v4504_v24 }
 0x362   : > { %v5022_v27 = vpop.f32.mrf.mxu1  ;;  %v8316_v29 = vpop.f32.mrf.mxu0  ;;  %v4675_v10 = vadd.f32 %v13727_v12, %v4483_v40  ;;  %v4691_v25 = vadd.f32 %v13732_v36, %v4497_v50  ;;  %v4715_v62 = vadd.f32 %v13733_v14, %v4518_v11 }
 0x363   : > { %v4999_v55 = vadd.f32 %v4998_v6, %v4834_v53  ;;  %v4852_v42 = vadd.f32 %v8316_v29, %v4667_v30  ;;  %8507 = vmatmul.mubr.f32.gmra.mxu0 %v12320_v7  ;;  %8545 = vmatmul.mubr.f32.gmra.mxu1 %v13720_v18 }
 0x364   : > { %6781 = vrot.lane.b32.xlu1 %v5005_v26, %s8811_s21  ;;  %8509 = vmatprep.mubr.f32.mxu0 %v13713_v47  ;;  %v4845_v63 = vpop.f32.mrf.mxu0  ;;  %v8354_v54 = vpop.f32.mrf.mxu1 }
 0x365   : > { %v5017_v2 = vadd.f32 %v8348_v17, %v4852_v42  ;;  %8547 = vmatprep.mubr.f32.mxu1 %v13724_v3  ;;  %v4846_v7 = vadd.f32 %v4845_v63, %v4659_v28  ;;  %6779 = vrot.lane.b32.xlu0 %v4999_v55, %s8811_s21  ;;  %v4327_v17 = vadd.f32 %v13730_v44, %v13729_v46 }
 0x366   : > { %v8319_v6 = vpop.f32.mrf.mxu0  ;;  %v5034_v41 = vpop.f32.mrf.mxu1 }
 0x367   : > { %v5011_v58 = vadd.f32 %v5010_v32, %v4846_v7  ;;  %v4864_v52 = vadd.f32 %v8319_v6, %v4683_v43  ;;  %8510 = vmatmul.mubr.f32.gmra.mxu0 %v13715_v37  ;;  %8548 = vmatmul.mubr.f32.gmra.mxu1 %v13728_v33  ;;  %v4511_v47 = vadd.f32 %v12667_v51, %v4327_v17 }
 0x368   : > { %6785 = vrot.lane.b32.xlu1 %v5017_v2, %s8811_s21  ;;  %8512 = vmatprep.mubr.f32.mxu0 %v13717_v0  ;;  %v4857_v45 = vpop.f32.mrf.mxu0  ;;  %v8357_v23 = vpop.f32.mrf.mxu1 }
 0x369   : > { %v5029_v22 = vadd.f32 %v8351_v13, %v4864_v52  ;;  %v4858_v5 = vadd.f32 %v4857_v45, %v4675_v10  ;;  %6783 = vrot.lane.b32.xlu0 %v5011_v58, %s8811_s21  ;;  %v4707_v39 = vadd.f32 %v13734_v34, %v4511_v47 }
 0x36a   : > { %v8322_v35 = vpop.f32.mrf.mxu0  ;;  %v5046_v0 = vpop.f32.mrf.mxu1 }
 0x36b   : > { %v5023_v56 = vadd.f32 %v5022_v27, %v4858_v5  ;;  %v4876_v32 = vadd.f32 %v8322_v35, %v4699_v16  ;;  %8513 = vmatmul.mubr.f32.gmra.mxu0 %v13720_v18 }
 0x36c   : > { %6789 = vrot.lane.b32.xlu1 %v5029_v22, %s8811_s21  ;;  %8515 = vmatprep.mubr.f32.mxu0 %v13724_v3  ;;  %v4869_v48 = vpop.f32.mrf.mxu0  ;;  %v8400_v30 = vpop.f32.mrf.mxu1 }
 0x36d   : > { %v5041_v60 = vadd.f32 %v8354_v54, %v4876_v32  ;;  %v4870_v57 = vadd.f32 %v4869_v48, %v4691_v25  ;;  %6787 = vrot.lane.b32.xlu0 %v5023_v56, %s8811_s21 }
 0x36e   : > { %v8325_v13 = vpop.f32.mrf.mxu0  ;;  %v12765_v38 = vpop.f32.mrf.mxu1 }
 0x36f   : > { %v5035_v51 = vadd.f32 %v5034_v41, %v4870_v57  ;;  %v4888_v37 = vadd.f32 %v8325_v13, %v4715_v62  ;;  %8516 = vmatmul.mubr.f32.gmra.mxu0 %v13728_v33 }
 0x370   : > { %6793 = vrot.lane.b32.xlu1 %v5041_v60, %s8811_s21  ;;  %v4881_v9 = vpop.f32.mrf.mxu0  ;;  %v12767_v61 = vpop.f32.mrf.mxu1 }
 0x371   : > { %v5053_v20 = vadd.f32 %v8357_v23, %v4888_v37  ;;  %v4882_v26 = vadd.f32 %v4881_v9, %v4707_v39  ;;  %6791 = vrot.lane.b32.xlu0 %v5035_v51, %s8811_s21 }
 0x372   : > { %v8368_v31 = vpop.f32.mrf.mxu0  ;;  %v12769_v40 = vpop.f32.mrf.mxu1 }
 0x373   : > { %v5047_v53 = vadd.f32 %v5046_v0, %v4882_v26  ;;  %v5880_v0 = vadd.f32 %v8400_v30, %v8368_v31 }
 0x374   : > { %6797 = vrot.lane.b32.xlu1 %v5053_v20, %s8811_s21  ;;  %v5632_v27 = vpop.f32.mrf.mxu0  ;;  %v12771_v29 = vpop.f32.mrf.mxu1 }
 0x375   : > { %6795 = vrot.lane.b32.xlu0 %v5047_v53, %s8811_s21 }
 0x376   : > { %v8371_v55 = vpop.f32.mrf.mxu0  ;;  %v12773_v42 = vpop.f32.mrf.mxu1 }
 0x378   : > { %v12775_v18 = vpop.f32.mrf.mxu0 }
 0x37c   : > { %v12779_v28 = vpop.f32.mrf.mxu0 }
 0x37e   : > { %v12783_v59 = vpop.f32.mrf.mxu0 }
 0x38c   : > { %v12777_v4 = vpop.f32.mrf.mxu1 }
 0x38e   : > { %v12781_v49 = vpop.f32.mrf.mxu1 }
 0x394   : > { %v12787_v63 = vpop.f32.mrf.mxu0 }
 0x396   : > { %v12791_v24 = vpop.f32.mrf.mxu0 }
 0x3a4   : > { %v12785_v19 = vpop.f32.mrf.mxu1 }
 0x3a6   : > { %v12789_v43 = vpop.f32.mrf.mxu1 }
 0x3ac   : > { %v12795_v3 = vpop.f32.mrf.mxu0 }
 0x3ae   : > { %v12799_v1 = vpop.f32.mrf.mxu0 }
 0x3bd   : > { %v12793_v2 = vpop.f32.mrf.mxu1 }
 0x3bf   : > { %v12797_v7 = vpop.f32.mrf.mxu1 }
 0x3c5   : > { %v12803_v8 = vpop.f32.mrf.mxu0 }
 0x3c7   : > { %v12807_v6 = vpop.f32.mrf.mxu0 }
 0x3d5   : > { %v12801_v21 = vpop.f32.mrf.mxu1 }
 0x3d7   : > { %v12805_v54 = vpop.f32.mrf.mxu1 }
 0x3d8   : > { %13735 = vst [vmem:[#allocation74_spill] sm:$0xff] %v12805_v54 }
 0x3dd   : > { %v12811_v10 = vpop.f32.mrf.mxu0 }
 0x3df   : > { %v12815_v52 = vpop.f32.mrf.mxu0 }
 0x3e7   : > { %v12809_v12 = vpop.f32.mrf.mxu1 }
 0x3e8   : > { %13736 = vst [vmem:[#allocation79_spill] sm:$0xff] %v12809_v12  ;;  %v5892_v12 = vadd.f32 %v12767_v61, %v8371_v55  ;;  %v5898_v61 = vadd.f32 %v12773_v42, %v12783_v59  ;;  %v5910_v42 = vadd.f32 %v12781_v49, %v12791_v24  ;;  %v5922_v24 = vadd.f32 %v12789_v43, %v12799_v1 }
 0x3e9   : > { %v12813_v50 = vpop.f32.mrf.mxu1  ;;  %v5934_v1 = vadd.f32 %v12797_v7, %v12807_v6  ;;  %v13750_v6 = vld [vmem:[#allocation74_spill] sm:$0xff] }
 0x3ea   : > { %13737 = vst [vmem:[#allocation105_spill] sm:$0xff] %v12813_v50 }
 0x3eb   : > { %v8464_v58 = vpop.f32.mrf.mxu1 }
 0x3ed   : > { %v6225_v33 = vpop.f32.mrf.mxu1 }
 0x3ef   : > { %v12817_v46 = vpop.f32.mrf.mxu0  ;;  %v8467_v44 = vpop.f32.mrf.mxu1 }
 0x3f0   : > { %13738 = vst [vmem:[#allocation99_spill] sm:$0xff] %v12817_v46 }
 0x3f1   : > { %v12819_v17 = vpop.f32.mrf.mxu0  ;;  %v6241_v45 = vpop.f32.mrf.mxu1 }
 0x3f2   : > { %13739 = vst [vmem:[#allocation92_spill] sm:$0xff] %v12819_v17 }
 0x3f3   : > { %v8432_v11 = vpop.f32.mrf.mxu0  ;;  %v12821_v22 = vpop.f32.mrf.mxu1 }
 0x3f4   : > { %v6051_v17 = vadd.f32 %v8432_v11, %v5880_v0 }
 0x3f5   : > { %v6043_v5 = vpop.f32.mrf.mxu0  ;;  %v12823_v15 = vpop.f32.mrf.mxu1 }
 0x3f6   : > { %v6234_v30 = vadd.f32 %v8464_v58, %v6051_v17 }
 0x3f7   : > { %v8435_v16 = vpop.f32.mrf.mxu0  ;;  %v12825_v41 = vpop.f32.mrf.mxu1 }
 0x3f9   : > { %v6057_v35 = vpop.f32.mrf.mxu0  ;;  %v12827_v47 = vpop.f32.mrf.mxu1 }
 0x3fb   : > { %v8438_v56 = vpop.f32.mrf.mxu0  ;;  %v12829_v32 = vpop.f32.mrf.mxu1 }
 0x3fd   : > { %v6071_v36 = vpop.f32.mrf.mxu0  ;;  %v12831_v25 = vpop.f32.mrf.mxu1 }
 0x3fe   : > { %v6072_v58 = vadd.f32 %v6071_v36, %v5898_v61  ;;  %v13753_v61 = vld [vmem:[#allocation99_spill] sm:$0xff] }
 0x3ff   : > { %v8441_v48 = vpop.f32.mrf.mxu0  ;;  %v12833_v60 = vpop.f32.mrf.mxu1 }
 0x400   : > { %13740 = vst [vmem:[#allocation104_spill] sm:$0xff] %v12833_v60  ;;  %v6258_v49 = vadd.f32 %v12823_v15, %v6072_v58 }
 0x401   : > { %v6085_v57 = vpop.f32.mrf.mxu0  ;;  %v12835_v14 = vpop.f32.mrf.mxu1 }
 0x402   : > { %13741 = vst [vmem:[#allocation87_spill] sm:$0xff] %v12835_v14 }
 0x403   : > { %v12837_v62 = vpop.f32.mrf.mxu0  ;;  %v12839_v23 = vpop.f32.mrf.mxu1 }
 0x404   : > { %13742 = vst [vmem:[#allocation115_spill] sm:$0xff] %v12839_v23  ;;  %v5874_v23 = vadd.f32 %v12765_v38, %v5632_v27  ;;  %v5904_v38 = vadd.f32 %v12771_v29, %v12779_v28 }
 0x405   : > { %v12841_v13 = vpop.f32.mrf.mxu0  ;;  %v12843_v51 = vpop.f32.mrf.mxu1 }
 0x406   : > { %13743 = vst [vmem:[#allocation86_spill] sm:$0xff] %v12843_v51  ;;  %v6100_v15 = vadd.f32 %v12841_v13, %v5922_v24 }
 0x407   : > { %v12845_v37 = vpop.f32.mrf.mxu0  ;;  %v12847_v34 = vpop.f32.mrf.mxu1 }
 0x408   : > { %13744 = vst [vmem:[#allocation113_spill] sm:$0xff] %v12847_v34  ;;  %v6044_v34 = vadd.f32 %v6043_v5, %v5874_v23  ;;  %v6079_v23 = vadd.f32 %v8438_v56, %v5904_v38  ;;  %v6086_v56 = vadd.f32 %v6085_v57, %v5910_v42  ;;  %v6290_v7 = vadd.f32 %v12831_v25, %v6100_v15 }
 0x409   : > { %v12849_v39 = vpop.f32.mrf.mxu0  ;;  %v12851_v9 = vpop.f32.mrf.mxu1 }
 0x40a   : > { %13745 = vst [vmem:[#allocation91_spill] sm:$0xff] %v12851_v9  ;;  %v5886_v9 = vadd.f32 %v12769_v40, %v12775_v18  ;;  %v6226_v0 = vadd.f32 %v6225_v33, %v6044_v34  ;;  %v5916_v40 = vadd.f32 %v12777_v4, %v12787_v63  ;;  %v6266_v4 = vadd.f32 %v12821_v22, %v6079_v23 }
 0x40b   : > { %v12853_v20 = vpop.f32.mrf.mxu0  ;;  %v8528_v26 = vpop.f32.mrf.mxu1  ;;  %v5928_v63 = vadd.f32 %v12785_v19, %v12795_v3  ;;  %v5940_v3 = vadd.f32 %v12793_v2, %v12803_v8  ;;  %v6274_v43 = vadd.f32 %v12827_v47, %v6086_v56  ;;  %v5952_v8 = vadd.f32 %v12801_v21, %v12811_v10  ;;  %v13752_v21 = vld [vmem:[#allocation104_spill] sm:$0xff] }
 0x40c   : > { %13746 = vst [vmem:[#allocation108_spill] sm:$0xff] %v12853_v20  ;;  %v6065_v20 = vadd.f32 %v8435_v16, %v5892_v12  ;;  %v6058_v27 = vadd.f32 %v6057_v35, %v5886_v9  ;;  %v6093_v16 = vadd.f32 %v8441_v48, %v5916_v40 }
 0x40d   : > { %v12855_v53 = vpop.f32.mrf.mxu0  ;;  %v6593_v50 = vpop.f32.mrf.mxu1 }
 0x40e   : > { %13747 = vst [vmem:[#allocation94_spill] sm:$0xff] %v12855_v53  ;;  %v6250_v54 = vadd.f32 %v8467_v44, %v6065_v20  ;;  %v6242_v28 = vadd.f32 %v6241_v45, %v6058_v27  ;;  %v6282_v19 = vadd.f32 %v12825_v41, %v6093_v16  ;;  %v6121_v20 = vadd.f32 %v12845_v37, %v5940_v3 }
 0x40f   : > { %v12858_v14 = vpop.f32.mrf.mxu0  ;;  %v8531_v51 = vpop.f32.mrf.mxu1  ;;  %v5946_v37 = vadd.f32 %v13750_v6, %v12815_v52  ;;  %v13756_v52 = vld [vmem:[#allocation87_spill] sm:$0xff] }
 0x410   : > { %13748 = vst [vmem:[#allocation70_spill] sm:$0xff] %v12858_v14  ;;  %v6314_v10 = vadd.f32 %v13752_v21, %v6121_v20 }
 0x411   : > { %v12861_v46 = vpop.f32.mrf.mxu0  ;;  %v6605_v60 = vpop.f32.mrf.mxu1 }
 0x412   : > { %13749 = vst [vmem:[#allocation117_spill] sm:$0xff] %v12861_v46 }
 0x413   : > { %v8496_v31 = vpop.f32.mrf.mxu0  ;;  %v8534_v53 = vpop.f32.mrf.mxu1  ;;  %v13751_v27 = vld [vmem:[#allocation108_spill] sm:$0xff] }
 0x414   : > { %v6435_v11 = vadd.f32 %v8496_v31, %v6234_v30  ;;  %v6114_v30 = vadd.f32 %v12849_v39, %v5934_v1  ;;  %v13754_v39 = vld [vmem:[#allocation79_spill] sm:$0xff] }
 0x415   : > { %v6428_v55 = vpop.f32.mrf.mxu0  ;;  %v6617_v5 = vpop.f32.mrf.mxu1  ;;  %v13755_v40 = vld [vmem:[#allocation94_spill] sm:$0xff] }
 0x416   : > { %v6600_v46 = vadd.f32 %v8528_v26, %v6435_v11  ;;  %v6429_v14 = vadd.f32 %v6428_v55, %v6226_v0  ;;  %v6135_v11 = vadd.f32 %v13751_v27, %v5952_v8  ;;  %v5964_v55 = vadd.f32 %v13754_v39, %v13753_v61 }
 0x417   : > { %v8499_v18 = vpop.f32.mrf.mxu0  ;;  %v8537_v12 = vpop.f32.mrf.mxu1  ;;  %v6306_v58 = vadd.f32 %v13756_v52, %v6114_v30  ;;  %v13765_v52 = vld [vmem:[#allocation24_spill] sm:$0xff] }
 0x418   : > { %v6594_v17 = vadd.f32 %v6593_v50, %v6429_v14  ;;  %v6447_v29 = vadd.f32 %v8499_v18, %v6250_v54  ;;  %6833 = vrot.lane.b32.xlu1 %v6600_v46, %s8812_s22  ;;  %v6107_v14 = vadd.f32 %v12837_v62, %v5928_v63  ;;  %v6128_v18 = vadd.f32 %v13755_v40, %v5946_v37 }
 0x419   : > { %v6440_v59 = vpop.f32.mrf.mxu0  ;;  %v6629_v33 = vpop.f32.mrf.mxu1 }
 0x41a   : > { %v6612_v35 = vadd.f32 %v8531_v51, %v6447_v29  ;;  %v6441_v44 = vadd.f32 %v6440_v59, %v6242_v28  ;;  %6831 = vrot.lane.b32.xlu0 %v6594_v17, %s8812_s22  ;;  %v6298_v2 = vadd.f32 %v12829_v32, %v6107_v14  ;;  %v13757_v17 = vld [vmem:[#allocation92_spill] sm:$0xff]  ;;  %v13758_v29 = vld [vmem:[#allocation105_spill] sm:$0xff]  ;;  %v13759_v59 = vld [vmem:[#allocation70_spill] sm:$0xff] }
 0x41b   : > { %v8502_v54 = vpop.f32.mrf.mxu0  ;;  %v8540_v50 = vpop.f32.mrf.mxu1  ;;  %v5958_v28 = vadd.f32 %v13758_v29, %v13757_v17  ;;  %v13767_v29 = vld [vmem:[#allocation39_spill] sm:$0xff] }
 0x41c   : > { %v6606_v46 = vadd.f32 %v6605_v60, %v6441_v44  ;;  %v6459_v45 = vadd.f32 %v8502_v54, %v6266_v4  ;;  %6837 = vrot.lane.b32.xlu1 %v6612_v35, %s8812_s22  ;;  %v13760_v44 = vld [vmem:[#allocation115_spill] sm:$0xff] }
 0x41d   : > { %v6452_v36 = vpop.f32.mrf.mxu0  ;;  %v6641_v48 = vpop.f32.mrf.mxu1  ;;  %v6330_v4 = vadd.f32 %v13760_v44, %v6135_v11  ;;  %v13770_v44 = vld [vmem:[#allocation41_spill] sm:$0xff] }
 0x41e   : > { %v6624_v22 = vadd.f32 %v8534_v53, %v6459_v45  ;;  %v6453_v51 = vadd.f32 %v6452_v36, %v6258_v49  ;;  %6835 = vrot.lane.b32.xlu0 %v6606_v46, %s8812_s22  ;;  %v13762_v49 = vld [vmem:[#allocation86_spill] sm:$0xff] }
 0x41f   : > { %v8505_v60 = vpop.f32.mrf.mxu0  ;;  %v8543_v57 = vpop.f32.mrf.mxu1  ;;  %v6322_v24 = vadd.f32 %v13762_v49, %v6128_v18 }
 0x420   : > { %v6618_v34 = vadd.f32 %v6617_v5, %v6453_v51  ;;  %v6471_v9 = vadd.f32 %v8505_v60, %v6282_v19  ;;  %6841 = vrot.lane.b32.xlu1 %v6624_v22, %s8812_s22  ;;  %v13763_v51 = vld [vmem:[#allocation113_spill] sm:$0xff] }
 0x421   : > { %v6464_v62 = vpop.f32.mrf.mxu0  ;;  %v6653_v13 = vpop.f32.mrf.mxu1 }
 0x422   : > { %v6636_v41 = vadd.f32 %v8537_v12, %v6471_v9  ;;  %v6465_v26 = vadd.f32 %v6464_v62, %v6274_v43  ;;  %6839 = vrot.lane.b32.xlu0 %v6618_v34, %s8812_s22  ;;  %v13764_v9 = vld [vmem:[#allocation91_spill] sm:$0xff] }
 0x423   : > { %v8508_v53 = vpop.f32.mrf.mxu0  ;;  %v8546_v5 = vpop.f32.mrf.mxu1 }
 0x424   : > { %v6630_v47 = vadd.f32 %v6629_v33, %v6465_v26  ;;  %v6483_v31 = vadd.f32 %v8508_v53, %v6298_v2  ;;  %6845 = vrot.lane.b32.xlu1 %v6636_v41, %s8812_s22  ;;  %v6149_v33 = vadd.f32 %v13759_v59, %v5964_v55  ;;  %v13768_v59 = vld [vmem:[#allocation25_spill] sm:$0xff] }
 0x425   : > { %v6476_v38 = vpop.f32.mrf.mxu0  ;;  %v6665_v63 = vpop.f32.mrf.mxu1 }
 0x426   : > { %v6648_v32 = vadd.f32 %v8540_v50, %v6483_v31  ;;  %v6477_v0 = vadd.f32 %v6476_v38, %v6290_v7  ;;  %6843 = vrot.lane.b32.xlu0 %v6630_v47, %s8812_s22  ;;  %v13761_v50 = vld [vmem:[#allocation117_spill] sm:$0xff]  ;;  %v6346_v19 = vadd.f32 %v13763_v51, %v6149_v33  ;;  %v13769_v33 = vld [vmem:[#allocation7_spill] sm:$0xff] }
 0x427   : > { %v8511_v23 = vpop.f32.mrf.mxu0  ;;  %v6142_v56 = vadd.f32 %v13761_v50, %v5958_v28  ;;  %v8549_v3 = vpop.f32.mrf.mxu1  ;;  %v13772_v50 = vld [vmem:[#allocation27_spill] sm:$0xff] }
 0x428   : > { %v6642_v25 = vadd.f32 %v6641_v48, %v6477_v0  ;;  %v6495_v12 = vadd.f32 %v8511_v23, %v6314_v10  ;;  %6849 = vrot.lane.b32.xlu1 %v6648_v32, %s8812_s22  ;;  %v12918_v48 = vpop.permute.xlu1 %6705 }
 0x429   : > { %v6488_v42 = vpop.f32.mrf.mxu0  ;;  %v6338_v43 = vadd.f32 %v13764_v9, %v6142_v56  ;;  %v6677_v41 = vpop.f32.mrf.mxu1  ;;  %v13773_v56 = vld [vmem:[#allocation15_spill] sm:$0xff] }
 0x42a   : > { %v6660_v16 = vadd.f32 %v8543_v57, %v6495_v12  ;;  %v6489_v35 = vadd.f32 %v6488_v42, %v6306_v58  ;;  %6847 = vrot.lane.b32.xlu0 %v6642_v25, %s8812_s22  ;;  %v12922_v57 = vpop.permute.xlu0 %6703  ;;  %v13766_v58 = vld [vmem:[#allocation17_spill] sm:$0xff] }
 0x42b   : > { %v8514_v54 = vpop.f32.mrf.mxu0  ;;  %v981_v17 = vadd.f32 %v13766_v58, %v13765_v52  ;;  %v13782_v52 = vld [vmem:[#allocation45_spill] sm:$0xff] }
 0x42c   : > { %v6654_v46 = vadd.f32 %v6653_v13, %v6489_v35  ;;  %v6507_v45 = vadd.f32 %v8514_v54, %v6330_v4  ;;  %6853 = vrot.lane.b32.xlu1 %v6660_v16, %s8812_s22  ;;  %v12927_v26 = vpop.permute.xlu1 %6709  ;;  %v993_v16 = vadd.f32 %v13769_v33, %v13768_v59  ;;  %v13784_v33 = vld [vmem:[#allocation31_spill] sm:$0xff] }
 0x42d   : > { %v6500_v36 = vpop.f32.mrf.mxu0  ;;  %v1151_v28 = vadd.f32 %v13767_v29, %v981_v17  ;;  %v13783_v17 = vld [vmem:[#allocation38_spill] sm:$0xff] }
 0x42e   : > { %v6672_v14 = vadd.f32 %v8546_v5, %v6507_v45  ;;  %v6501_v22 = vadd.f32 %v6500_v36, %v6322_v24  ;;  %6851 = vrot.lane.b32.xlu0 %v6654_v46, %s8812_s22  ;;  %v12930_v8 = vpop.permute.xlu0 %6707  ;;  %v1165_v4 = vadd.f32 %v13770_v44, %v993_v16  ;;  %v1005_v46 = vadd.f32 %v13773_v56, %v13772_v50  ;;  %v13774_v45 = vld [vmem:[#allocation52_spill] sm:$0xff]  ;;  %v13775_v36 = vld [vmem:[#allocation43_spill] sm:$0xff]  ;;  %v13785_v16 = vld [vmem:[#allocation26_spill] sm:$0xff] }
 0x42f   : > { %v8517_v60 = vpop.f32.mrf.mxu0  ;;  %v1029_v44 = vadd.f32 %v13785_v16, %v13784_v33  ;;  %v13798_v33 = vld [vmem:[#allocation35_spill] sm:$0xff]  ;;  %v13799_v16 = vld [vmem:[#allocation30_spill] sm:$0xff] }
 0x430   : > { %v6666_v15 = vadd.f32 %v6665_v63, %v6501_v22  ;;  %v6519_v34 = vadd.f32 %v8517_v60, %v6346_v19  ;;  %6857 = vrot.lane.b32.xlu1 %v6672_v14, %s8812_s22  ;;  %v12933_v13 = vpop.permute.xlu1 %6713  ;;  %v13771_v63 = vld [vmem:[#allocation34_spill] sm:$0xff]  ;;  %v1179_v14 = vadd.f32 %v13775_v36, %v1005_v46  ;;  %v13776_v22 = vld [vmem:[#allocation36_spill] sm:$0xff] }
 0x431   : > { %v6512_v1 = vpop.f32.mrf.mxu0  ;;  %v1333_v54 = vadd.f32 %v13771_v63, %v1151_v28  ;;  %v1349_v51 = vadd.f32 %v13776_v22, %v1165_v4  ;;  %v13778_v60 = vld [vmem:[#allocation6_spill] sm:$0xff] }
 0x432   : > { %v6684_v62 = vadd.f32 %v8549_v3, %v6519_v34  ;;  %v6513_v20 = vadd.f32 %v6512_v1, %v6338_v43  ;;  %6855 = vrot.lane.b32.xlu0 %v6666_v15, %s8812_s22  ;;  %v12935_v53 = vpop.permute.xlu0 %6711  ;;  %v13777_v3 = vld [vmem:[#allocation29_spill] sm:$0xff]  ;;  %v13779_v34 = vld [vmem:[#allocation8_spill] sm:$0xff]  ;;  %v13780_v43 = vld [vmem:[#allocation55_spill] sm:$0xff]  ;;  %v1365_v29 = vadd.f32 %v13783_v17, %v1179_v14 }
 0x433   : > { %v1536_v49 = vadd.f32 %v13774_v45, %v1333_v54  ;;  %v1017_v15 = vadd.f32 %v13778_v60, %v13777_v3  ;;  %v1548_v1 = vadd.f32 %v13780_v43, %v1349_v51  ;;  %v13787_v54 = vld [vmem:[#allocation9_spill] sm:$0xff]  ;;  %v13790_v14 = vld [vmem:[#allocation40_spill] sm:$0xff]  ;;  %v13797_v17 = vld [vmem:[#allocation42_spill] sm:$0xff] }
 0x434   : > { %v6678_v2 = vadd.f32 %v6677_v41, %v6513_v20  ;;  %6861 = vrot.lane.b32.xlu1 %v6684_v62, %s8812_s22  ;;  %v12937_v30 = vpop.permute.xlu1 %6717  ;;  %v13781_v62 = vld [vmem:[#allocation53_spill] sm:$0xff]  ;;  %v1560_v50 = vadd.f32 %v13787_v54, %v1365_v29  ;;  %v13802_v54 = vld [vmem:[#allocation58_spill] sm:$0xff] }
 0x435   : > { %v1701_v9 = vadd.f32 %v13779_v34, %v1536_v49  ;;  %v6880_v20 = vsel %vm615_vm0, %v13781_v62, %v12918_v48  ;;  %v1193_v58 = vadd.f32 %v13782_v52, %v1017_v15  ;;  %v13789_v49 = vld [vmem:[#allocation47_spill] sm:$0xff]  ;;  %v13791_v60 = vld [vmem:[#allocation33_spill] sm:$0xff]  ;;  %v13792_v15 = vld [vmem:[#allocation28_spill] sm:$0xff] }
 0x436   : > { %6859 = vrot.lane.b32.xlu0 %v6678_v2, %s8812_s22  ;;  %v12939_v47 = vpop.permute.xlu0 %6715  ;;  %v1207_v36 = vadd.f32 %v13789_v49, %v1029_v44  ;;  %v1041_v34 = vadd.f32 %v13792_v15, %v13791_v60  ;;  %v1053_v44 = vadd.f32 %v13799_v16, %v13798_v33  ;;  %v13808_v15 = vld [vmem:[#allocation63_spill] sm:$0xff]  ;;  %v13815_v33 = vld [vmem:[#allocation48_spill] sm:$0xff] }
 0x437   : > { %v6879_v28 = vsel %vm615_vm0, %v1701_v9, %v12922_v57  ;;  %v13788_v57 = vld [vmem:[#allocation56_spill] sm:$0xff]  ;;  %v1381_v22 = vadd.f32 %v13790_v14, %v1193_v58  ;;  %v13793_v9 = vld [vmem:[#allocation51_spill] sm:$0xff]  ;;  %v13796_v58 = vld [vmem:[#allocation49_spill] sm:$0xff] }
 0x438   : > { %v12941_v31 = vpop.permute.xlu1 %6721  ;;  %v6882_v56 = vsel %vm615_vm0, %v13788_v57, %v12927_v26  ;;  %v1725_v43 = vadd.f32 %v13793_v9, %v1560_v50  ;;  %v1397_v29 = vadd.f32 %v13797_v17, %v1207_v36  ;;  %v6886_v50 = vsel %vm615_vm0, %v13802_v54, %v12937_v30  ;;  %v13805_v14 = vld [vmem:[#allocation37_spill] sm:$0xff]  ;;  %v13814_v17 = vld [vmem:[#allocation64_spill] sm:$0xff] }
 0x43a   : > { %v12943_v7 = vpop.permute.xlu0 %6719 }
 0x43c   : > { %v12945_v6 = vpop.permute.xlu1 %6725 }
 0x43e   : > { %v12947_v37 = vpop.permute.xlu0 %6723 }
 0x440   : > { %v12949_v38 = vpop.permute.xlu1 %6729 }
 0x442   : > { %v12951_v27 = vpop.permute.xlu0 %6727 }
 0x444   : > { %v12953_v11 = vpop.permute.xlu1 %6733 }
 0x446   : > { %v12955_v32 = vpop.permute.xlu0 %6731 }
 0x448   : > { %v6770_v0 = vpop.permute.xlu1 %6769 }
 0x449   : > { %v6897_v41 = vsel %vm6895_vm15, %v6880_v20, %v6770_v0  ;;  %v13786_v0 = vld [vmem:[#allocation11_spill] sm:$0xff]  ;;  %v13795_v20 = vld [vmem:[#allocation20_spill] sm:$0xff] }
 0x44a   : > { %v6768_v21 = vpop.permute.xlu0 %6767  ;;  %v1713_v63 = vadd.f32 %v13786_v0, %v1548_v1  ;;  %v13794_v1 = vld [vmem:[#allocation19_spill] sm:$0xff]  ;;  %v13801_v0 = vld [vmem:[#allocation60_spill] sm:$0xff] }
 0x44b   : > { %v6896_v4 = vsel %vm6895_vm15, %v6879_v28, %v6768_v21  ;;  %v1572_v62 = vadd.f32 %v13794_v1, %v1381_v22  ;;  %v6883_v28 = vsel %vm615_vm0, %v1725_v43, %v12935_v53  ;;  %v13806_v22 = vld [vmem:[#allocation32_spill] sm:$0xff]  ;;  %v13810_v1 = vld [vmem:[#allocation50_spill] sm:$0xff] }
 0x44c   : > { %v6774_v10 = vpop.permute.xlu1 %6773  ;;  %v6881_v51 = vsel %vm615_vm0, %v1713_v63, %v12930_v8  ;;  %v1584_v63 = vadd.f32 %v13801_v0, %v1397_v29  ;;  %v1065_v30 = vadd.f32 %v13806_v22, %v13805_v14  ;;  %v6890_v29 = vsel %vm615_vm0, %v13814_v17, %v12945_v6  ;;  %v13818_v0 = vld [vmem:[#allocation67_spill] sm:$0xff] }
 0x44d   : > { %v6899_v45 = vsel %vm6895_vm15, %v6882_v56, %v6774_v10 }
 0x44e   : > { %v6772_v61 = vpop.permute.xlu0 %6771 }
 0x44f   : > { %v6898_v26 = vsel %vm6895_vm15, %v6881_v51, %v6772_v61  ;;  %v1221_v61 = vadd.f32 %v13796_v58, %v1041_v34 }
 0x450   : > { %v6778_v39 = vpop.permute.xlu1 %6777 }
 0x452   : > { %v12957_v55 = vpop.permute.xlu0 %6775 }
 0x454   : > { %v12959_v5 = vpop.permute.xlu1 %6781 }
 0x455   : > { %v6903_v57 = vsel %vm6895_vm15, %v6886_v50, %v12959_v5 }
 0x456   : > { %v12961_v23 = vpop.permute.xlu0 %6779 }
 0x458   : > { %v12963_v40 = vpop.permute.xlu1 %6785 }
 0x45a   : > { %v12965_v18 = vpop.permute.xlu0 %6783 }
 0x45c   : > { %v12967_v25 = vpop.permute.xlu1 %6789 }
 0x45e   : > { %v12969_v12 = vpop.permute.xlu0 %6787 }
 0x460   : > { %v12974_v42 = vpop.permute.xlu1 %6793 }
 0x462   : > { %v12978_v35 = vpop.permute.xlu0 %6791 }
 0x464   : > { %v12986_v24 = vpop.permute.xlu1 %6797 }
 0x466   : > { %v12992_v19 = vpop.permute.xlu0 %6795 }
 0x48a   : > { %v6834_v2 = vpop.permute.xlu1 %6833 }
 0x48b   : > { %v6914_v59 = vsel %vm6912_vm1, %v6897_v41, %v6834_v2  ;;  %v6884_v41 = vsel %vm615_vm0, %v13795_v20, %v12933_v13  ;;  %v6900_v13 = vsel %vm6895_vm15, %v6883_v28, %v12957_v55  ;;  %v13803_v55 = vld [vmem:[#allocation22_spill] sm:$0xff] }
 0x48c   : > { %6930 = vst [vmem:[%s13010_s26 + $0x8] sm:$0xff] %v6914_v59  ;;  %v6832_v48 = vpop.permute.xlu0 %6831  ;;  %v6901_v2 = vsel %vm6895_vm15, %v6884_v41, %v6778_v39 }
 0x48d   : > { %v6913_v46 = vsel %vm6912_vm1, %v6896_v4, %v6832_v48  ;;  %v13800_v4 = vld [vmem:[#allocation54_spill] sm:$0xff] }
 0x48e   : > { %6929 = vst [vmem:[%s13010_s26] sm:$0xff] %v6913_v46  ;;  %v6838_v21 = vpop.permute.xlu1 %6837  ;;  %v1737_v48 = vadd.f32 %v13800_v4, %v1572_v62  ;;  %v1235_v46 = vadd.f32 %v13803_v55, %v1053_v44  ;;  %v13811_v62 = vld [vmem:[#allocation46_spill] sm:$0xff] }
 0x48f   : > { %v6916_v3 = vsel %vm6912_vm1, %v6899_v45, %v6838_v21  ;;  %v13804_v45 = vld [vmem:[#allocation44_spill] sm:$0xff] }
 0x490   : > { %6932 = vst [vmem:[%s13010_s26 + $0x18] sm:$0xff] %v6916_v3  ;;  %v6836_v10 = vpop.permute.xlu0 %6835  ;;  %v1413_v21 = vadd.f32 %v13804_v45, %v1221_v61  ;;  %v6885_v49 = vsel %vm615_vm0, %v1737_v48, %v12939_v47  ;;  %v13807_v3 = vld [vmem:[#allocation57_spill] sm:$0xff]  ;;  %v1429_v20 = vadd.f32 %v13811_v62, %v1235_v46 }
 0x491   : > { %v6915_v8 = vsel %vm6912_vm1, %v6898_v26, %v6836_v10  ;;  %v6902_v51 = vsel %vm6895_vm15, %v6885_v49, %v12961_v23  ;;  %v1749_v60 = vadd.f32 %v13807_v3, %v1584_v63  ;;  %v13809_v26 = vld [vmem:[#allocation61_spill] sm:$0xff]  ;;  %v1249_v23 = vadd.f32 %v13810_v1, %v1065_v30 }
 0x492   : > { %6931 = vst [vmem:[%s13010_s26 + $0x10] sm:$0xff] %v6915_v8  ;;  %v6842_v52 = vpop.permute.xlu1 %6841  ;;  %v1596_v34 = vadd.f32 %v13808_v15, %v1413_v21  ;;  %v6888_v10 = vsel %vm615_vm0, %v13809_v26, %v12941_v31  ;;  %v6892_v63 = vsel %vm615_vm0, %v13818_v0, %v12949_v38  ;;  %v13819_v38 = vld [vmem:[#allocation12_spill] sm:$0xff] }
 0x493   : > { %v6918_v59 = vsel %vm6912_vm1, %v6901_v2, %v6842_v52  ;;  %v6905_v9 = vsel %vm6895_vm15, %v6888_v10, %v12963_v40  ;;  %v6887_v41 = vsel %vm615_vm0, %v1749_v60, %v12943_v7  ;;  %v13812_v52 = vld [vmem:[#allocation59_spill] sm:$0xff]  ;;  %v13813_v40 = vld [vmem:[#allocation66_spill] sm:$0xff]  ;;  %v6907_v7 = vsel %vm6895_vm15, %v6890_v29, %v12967_v25 }
 0x494   : > { %6934 = vst [vmem:[%s13010_s26 + $0x28] sm:$0xff] %v6918_v59  ;;  %v6840_v39 = vpop.permute.xlu0 %6839  ;;  %v6904_v31 = vsel %vm6895_vm15, %v6887_v41, %v12965_v18  ;;  %v1761_v58 = vadd.f32 %v13812_v52, %v1596_v34  ;;  %v1608_v61 = vadd.f32 %v13813_v40, %v1429_v20  ;;  %v1445_v18 = vadd.f32 %v13815_v33, %v1249_v23  ;;  %v13817_v25 = vld [vmem:[#allocation71_spill] sm:$0xff] }
 0x495   : > { %v6917_v53 = vsel %vm6912_vm1, %v6900_v13, %v6840_v39  ;;  %v13816_v39 = vld [vmem:[#allocation65_spill] sm:$0xff]  ;;  %v6909_v54 = vsel %vm6895_vm15, %v6892_v63, %v12974_v42  ;;  %v13820_v42 = vld [vmem:[#allocation14_spill] sm:$0xff] }
 0x496   : > { %6933 = vst [vmem:[%s13010_s26 + $0x20] sm:$0xff] %v6917_v53  ;;  %v6846_v56 = vpop.permute.xlu1 %6845  ;;  %v6889_v16 = vsel %vm615_vm0, %v1761_v58, %v12947_v37  ;;  %v1773_v4 = vadd.f32 %v13816_v39, %v1608_v61  ;;  %v1620_v48 = vadd.f32 %v13817_v25, %v1445_v18  ;;  %v6894_v46 = vsel %vm615_vm0, %v13820_v42, %v12953_v11 }
 0x497   : > { %v6920_v36 = vsel %vm6912_vm1, %v6903_v57, %v6846_v56  ;;  %v6906_v6 = vsel %vm6895_vm15, %v6889_v16, %v12969_v12  ;;  %v6911_v45 = vsel %vm6895_vm15, %v6894_v46, %v12986_v24 }
 0x498   : > { %6936 = vst [vmem:[%s13010_s26 + $0x38] sm:$0xff] %v6920_v36  ;;  %v6844_v5 = vpop.permute.xlu0 %6843  ;;  %v6891_v12 = vsel %vm615_vm0, %v1773_v4, %v12951_v27  ;;  %v1785_v55 = vadd.f32 %v13819_v38, %v1620_v48 }
 0x499   : > { %v6919_v47 = vsel %vm6912_vm1, %v6902_v51, %v6844_v5  ;;  %v6908_v57 = vsel %vm6895_vm15, %v6891_v12, %v12978_v35 }
 0x49a   : > { %6935 = vst [vmem:[%s13010_s26 + $0x30] sm:$0xff] %v6919_v47  ;;  %v6850_v43 = vpop.permute.xlu1 %6849  ;;  %v6893_v21 = vsel %vm615_vm0, %v1785_v55, %v12955_v32 }
 0x49b   : > { %v6922_v8 = vsel %vm6912_vm1, %v6905_v9, %v6850_v43  ;;  %v6910_v11 = vsel %vm6895_vm15, %v6893_v21, %v12992_v19 }
 0x49c   : > { %6938 = vst [vmem:[%s13010_s26 + $0x48] sm:$0xff] %v6922_v8  ;;  %v6848_v2 = vpop.permute.xlu0 %6847 }
 0x49d   : > { %v6921_v28 = vsel %vm6912_vm1, %v6904_v31, %v6848_v2 }
 0x49e   : > { %6937 = vst [vmem:[%s13010_s26 + $0x40] sm:$0xff] %v6921_v28  ;;  %v6854_v59 = vpop.permute.xlu1 %6853 }
 0x49f   : > { %v6924_v44 = vsel %vm6912_vm1, %v6907_v7, %v6854_v59 }
 0x4a0   : > { %6940 = vst [vmem:[%s13010_s26 + $0x58] sm:$0xff] %v6924_v44  ;;  %v6852_v13 = vpop.permute.xlu0 %6851 }
 0x4a1   : > { %v6923_v37 = vsel %vm6912_vm1, %v6906_v6, %v6852_v13 }
 0x4a2   : > { %6939 = vst [vmem:[%s13010_s26 + $0x50] sm:$0xff] %v6923_v37  ;;  %v6858_v50 = vpop.permute.xlu1 %6857 }
 0x4a3   : > { %v6926_v53 = vsel %vm6912_vm1, %v6909_v54, %v6858_v50 }
 0x4a4   : > { %6942 = vst [vmem:[%s13010_s26 + $0x68] sm:$0xff] %v6926_v53  ;;  %v6856_v56 = vpop.permute.xlu0 %6855 }
 0x4a5   : > { %v6925_v27 = vsel %vm6912_vm1, %v6908_v57, %v6856_v56 }
 0x4a6   : > { %6941 = vst [vmem:[%s13010_s26 + $0x60] sm:$0xff] %v6925_v27  ;;  %v6862_v35 = vpop.permute.xlu1 %6861 }
 0x4a7   : > { %v6928_v49 = vsel %vm6912_vm1, %v6911_v45, %v6862_v35 }
 0x4a8   : > { %6944 = vst [vmem:[%s13010_s26 + $0x78] sm:$0xff] %v6928_v49  ;;  %v6860_v24 = vpop.permute.xlu0 %6859 }
 0x4a9   : > { %v6927_v36 = vsel %vm6912_vm1, %v6910_v11, %v6860_v24 }
 0x4aa   : > { %6943 = vst [vmem:[%s13010_s26 + $0x70] sm:$0xff] %v6927_v36 }
 0x4ab   : > { %8744 = shalt.err (!%p8741_p3)
}
 0x4ac   : > { %s8745_s8 = scalar_lea.hbm %s13131_s30, 2048  ;;  %s8749_s17 = scalar_lea.hbm %s13184_s2, 8192 }
 0x4ad   : > { %p8746_p4 = scmp.ne.s32.totalorder %s13131_s30, %s8745_s8  ;;  %p8750_p9 = scmp.lt.s32.totalorder %s13131_s30, %s13184_s2 }
 0x4ae   : > { %p8751_p10 = scmp.lt.s32.totalorder %s8749_s17, %s8745_s8 }
 0x4af   : > { %p8747_p7 = pnand %p8746_p4, %p8869_p5 }
 0x4b0   : > { %p8752_p11 = por %p8751_p10, %p8750_p9 }
 0x4b1   : > { %p8748_p8 = pneg %p8747_p7 }
 0x4b3   : > { %p8753_p12 = pnand %p8752_p11, %p8748_p8 }
 0x4b5   : > { %8756 = shalt.err (!%p8753_p12)
}
 0x4b6   : > { %s8814_s22 = smov 128   ;;  %s8815_s23 = smov 8  }
 0x4b7   : > { %8550 = dma.vmem_to_hbm [thread:$0]  (%p8869_p5), %s13133_s28, 2048, %s13131_s30, %s13142_s3, %s8814_s22, %s8814_s22, %s8815_s23  }
 0x4b8 PF: > { %p8556_p13 = scmp.ge.s32.totalorder %s8791_s12, 2  ;;  %s6974_s24 = sand.u32 1, %s8779_s9  }
 0x4b9   : > { %s6975_s26 = scalar_lea.sflag [#allocation3], %s6974_s24 }
 0x4ba   : > { %p8553_p0 = pnand %p8556_p13, %p8873_p6 }
 0x4bc   : > { %p8554_p1 = pneg %p8553_p0 }
 0x4be   : > { %8774 = dma.done.wait (%p8554_p1), %s6975_s26, 2048  }
 0x4bf   : > { %8776 = vsyncadd (%p8554_p1), %s6975_s26, 4294965248  ;;  %p12_p2 = scmp.ge.s32.totalorder %s8856_s15, 6   ;;  %s13821_s9 = smov %s8783_s10 }
 0x4c0   : > { %s13822_s10 = smov %s8787_s11  ;;  %s13823_s11 = smov %s8867_s18 }
 0x4c1   : > { %s13824_s12 = smov %s8856_s15  ;;  %14 = sbr.rel (!%p12_p2) target bundleno = 3 (0x3), region = 66 }
 0x4c6   :  { %6980 = vsyncpa [#allocation3], 1 }
 0x4c7   :  { %6982 = vsyncpa [#allocation3 + $0x1], 1 }

</bundles_post_ra>
